<compile_context>
chip_gen: v7x
topology: tpu7x:2x2x1
jax: 0.10.0
libtpu: 0.0.40
codegen_flags: <defaults>
</compile_context>

<pallas_src>
import functools

import jax
import jax.numpy as jnp
from jax.experimental import pallas as pl
from jax.experimental.pallas import tpu as pltpu


# ---------------------------------------------------------------------------
# Static network geometry (from the PyTorch module).
# ---------------------------------------------------------------------------
IN_H = IN_W = 28
KH = KW = 4
C1 = C2 = 10
OH1 = OW1 = IN_H - KH + 1          # 25
OH2 = OW2 = OH1 - KH + 1           # 22
ROWS = 32                          # padded rows per image slab (28 -> 32)
XC = 32                            # padded input cols (28 -> 32)
H1C = 256                          # conv1 cols: 25*10 = 250, padded to 256
H2C = OW2 * C2                     # 220
FLAT = ROWS * H2C                  # 7040 = 55*128 (lane-aligned fc1 K)
HID = 256


def _round_up(x, m):
    return ((x + m - 1) // m) * m


# ---------------------------------------------------------------------------
# Kernel 1: fused conv1 + ReLU + conv2 + ReLU over a batch tile.
# Each conv is sum_{ki} shift_rows(act, ki) @ T_ki  (block-Toeplitz in width).
# ---------------------------------------------------------------------------
def _shift_rows(a, k):
    # Rows shifted up by k; the vacated tail rows become zero.  Those rows only
    # ever feed per-image pad rows (h >= 22), which are zeroed before the store.
    if k == 0:
        return a
    pad = jnp.zeros((k, a.shape[1]), a.dtype)
    return jnp.concatenate([a[k:, :], pad], axis=0)


def _conv_kernel(x_ref, t1_ref, b1_ref, t2_ref, b2_ref, o_ref):
    L = x_ref.shape[0]                       # bt * ROWS rows (bt images)
    x = x_ref[...]                           # (L, 32) bf16

    # conv1: h1[r, w*10+co] = sum_{ki,kj} x[r+ki, w+kj] * W1[co, 0, ki, kj]
    acc1 = jnp.zeros((L, H1C), jnp.float32)
    for ki in range(KH):
        acc1 = acc1 + jnp.dot(
            _shift_rows(x, ki), t1_ref[ki * XC:(ki + 1) * XC, :],
            preferred_element_type=jnp.float32)
    h1 = jnp.maximum(acc1 + b1_ref[...], 0.0).astype(jnp.bfloat16)   # (L, 256)

    # conv2: h2[r, w*10+co] = sum_{ki,kj,ci} h1[r+ki, (w+kj)*10+ci] * W2[...]
    acc2 = jnp.zeros((L, H2C), jnp.float32)
    for ki in range(KH):
        acc2 = acc2 + jnp.dot(
            _shift_rows(h1, ki), t2_ref[ki * H1C:(ki + 1) * H1C, :],
            preferred_element_type=jnp.float32)
    h2 = jnp.maximum(acc2 + b2_ref[...], 0.0)

    # Zero the per-image pad rows (h >= 22) so ragged batch tiles can never
    # push garbage/NaN into the fc1 contraction downstream.
    h_idx = jax.lax.broadcasted_iota(jnp.int32, (L, H2C), 0) % ROWS
    o_ref[...] = jnp.where(h_idx < OH2, h2, 0.0).astype(o_ref.dtype)


def conv_stage(xp, t1, b1p, t2, b2p, *, bt):
    """xp: (N*32, 32) bf16 padded image slabs -> (N*32, 220) bf16 conv2 output."""
    rows, _ = xp.shape
    n = rows // ROWS
    blk = bt * ROWS
    return pl.pallas_call(
        _conv_kernel,
        out_shape=jax.ShapeDtypeStruct((rows, H2C), jnp.bfloat16),
        grid=(pl.cdiv(n, bt),),
        in_specs=[
            pl.BlockSpec((blk, XC), lambda i: (i, 0)),     # image slabs
            pl.BlockSpec(t1.shape, lambda i: (0, 0)),      # conv1 Toeplitz (resident)
            pl.BlockSpec(b1p.shape, lambda i: (0, 0)),     # conv1 bias pattern (f32)
            pl.BlockSpec(t2.shape, lambda i: (0, 0)),      # conv2 Toeplitz (resident)
            pl.BlockSpec(b2p.shape, lambda i: (0, 0)),     # conv2 bias pattern (f32)
        ],
        out_specs=pl.BlockSpec((blk, H2C), lambda i: (i, 0)),
        compiler_params=pltpu.CompilerParams(
            dimension_semantics=("parallel",),
            vmem_limit_bytes=48 * 1024 * 1024),
    )(xp, t1, b1p, t2, b2p)


# ---------------------------------------------------------------------------
# Kernel 2: fused fc1 (+ReLU) + fc2.  Both weights VMEM-resident, lane-dense
# 128-wide logits store, f32 epilogue.
# ---------------------------------------------------------------------------
def _mlp_kernel(x_ref, w1_ref, b1_ref, w2_ref, b2_ref, o_ref):
    h = jnp.dot(x_ref[...], w1_ref[...], preferred_element_type=jnp.float32)
    h = jnp.maximum(h + b1_ref[...], 0.0).astype(w2_ref.dtype)
    o = jnp.dot(h, w2_ref[...], preferred_element_type=jnp.float32)
    o_ref[...] = (o + b2_ref[...]).astype(o_ref.dtype)


def mlp_stage(flat, w3p, b3p, w4p, b4p, *, tm):
    """flat: (N, 7040) bf16 -> (N, 128) f32 padded logits."""
    n, k = flat.shape
    npad = w4p.shape[1]
    return pl.pallas_call(
        _mlp_kernel,
        out_shape=jax.ShapeDtypeStruct((n, npad), jnp.float32),
        grid=(pl.cdiv(n, tm),),
        in_specs=[
            pl.BlockSpec((tm, k), lambda i: (i, 0)),       # activation row tile
            pl.BlockSpec(w3p.shape, lambda i: (0, 0)),     # lin1 weight (resident)
            pl.BlockSpec(b3p.shape, lambda i: (0, 0)),     # lin1 bias (f32)
            pl.BlockSpec(w4p.shape, lambda i: (0, 0)),     # lin2 weight (resident)
            pl.BlockSpec(b4p.shape, lambda i: (0, 0)),     # lin2 bias (f32, padded)
        ],
        out_specs=pl.BlockSpec((tm, npad), lambda i: (i, 0)),
        compiler_params=pltpu.CompilerParams(
            dimension_semantics=("parallel",),
            vmem_limit_bytes=48 * 1024 * 1024),
    )(flat, w3p, b3p, w4p, b4p)


# ---------------------------------------------------------------------------
# One-time weight preparation (hoisted out of the jitted forward).
# ---------------------------------------------------------------------------
def prepare_params(params):
    f32 = jnp.float32
    bf16 = jnp.bfloat16

    # conv1 -> width-Toeplitz blocks T1_ki (32, 256):
    #   T1_ki[j, w*10+co] = W1[co, 0, ki, j-w]  if 0 <= j-w < 4 else 0
    w1 = params["conv1_w"].astype(f32)                   # (co, 1, ki, kj)
    wk1 = w1[:, 0].transpose(1, 2, 0)                    # (ki, kj, co)
    j = jnp.arange(XC)
    w = jnp.arange(OW1)
    d = j[:, None] - w[None, :]                          # (32, 25)
    valid = (d >= 0) & (d < KW)
    t1 = wk1[:, jnp.clip(d, 0, KW - 1), :] * valid[None, :, :, None]
    t1 = t1.reshape(KH * XC, OW1 * C1)                   # rows ki*32+j, cols w*10+co
    t1 = jnp.pad(t1, ((0, 0), (0, H1C - OW1 * C1))).astype(bf16)
    b1p = jnp.pad(jnp.tile(params["conv1_b"], OW1),
                  (0, H1C - OW1 * C1)).reshape(1, H1C).astype(f32)

    # conv2 -> width-Toeplitz blocks T2_ki (256, 220):
    #   T2_ki[j*10+ci, w*10+co] = W2[co, ci, ki, j-w]  if 0 <= j-w < 4 else 0
    w2 = params["conv2_w"].astype(f32)                   # (co, ci, ki, kj)
    wk2 = w2.transpose(2, 3, 1, 0)                       # (ki, kj, ci, co)
    j2 = jnp.arange(OW1)
    w2i = jnp.arange(OW2)
    d2 = j2[:, None] - w2i[None, :]                      # (25, 22)
    valid2 = (d2 >= 0) & (d2 < KW)
    t2 = wk2[:, jnp.clip(d2, 0, KW - 1), :, :] * valid2[None, :, :, None, None]
    t2 = t2.transpose(0, 1, 3, 2, 4)                     # (ki, j, ci, w, co)
    t2 = t2.reshape(KH, OW1 * C1, OW2 * C2)
    t2 = jnp.pad(t2, ((0, 0), (0, H1C - OW1 * C1), (0, 0)))
    t2 = t2.reshape(KH * H1C, H2C).astype(bf16)
    b2p = jnp.tile(params["conv2_b"], OW2).reshape(1, H2C).astype(f32)

    # lin1: fold the NCHW flatten order AND the padded 32x220 slab layout into
    # the weight (rows h >= 22 are zero), so flatten is a free HBM reinterpret.
    w3 = params["lin1_w"].reshape(HID, C2, OH2, OW2).transpose(2, 3, 1, 0)
    w3 = w3.reshape(OH2, H2C, HID)                       # (h, w*10+c, out)
    w3p = jnp.zeros((ROWS, H2C, HID), f32).at[:OH2].set(w3)
    w3p = w3p.reshape(FLAT, HID).astype(bf16)
    b3p = params["lin1_b"].reshape(1, HID).astype(f32)

    # lin2: transpose + pad classes to 128 lanes for a dense final store.
    ncls = params["lin2_b"].shape[0]
    npad = _round_up(ncls, 128)
    w4p = jnp.pad(params["lin2_w"].T.astype(f32),
                  ((0, 0), (0, npad - ncls))).astype(bf16)
    b4p = jnp.pad(params["lin2_b"], (0, npad - ncls)).reshape(1, npad).astype(f32)

    return {"t1": t1, "b1": b1p, "t2": t2, "b2": b2p,
            "w3": w3p, "b3": b3p, "w4": w4p, "b4": b4p}


# ---------------------------------------------------------------------------
# Forward pass (mirrors MNIStNN.forward); consumes pre-laid-out weights.
# ---------------------------------------------------------------------------
@functools.partial(jax.jit, static_argnames=("n_classes",))
def mnist_forward(prep, x, *, n_classes):
    n = x.shape[0]

    # NCHW (N,1,28,28) -> zero-padded (32,32) bf16 slab per image (~2 KB/img).
    xh = x.reshape(n, IN_H, IN_W)
    xh = jnp.pad(xh, ((0, 0), (0, ROWS - IN_H), (0, XC - IN_W)))
    xp = xh.astype(jnp.bfloat16).reshape(n * ROWS, XC)

    # Fused conv1+conv2.  Up to 64 images / 2048 rows per grid step; >= 2
    # "parallel" steps whenever n >= 2 (v7x megacore).
    bt = max(1, min(64, (n + 1) // 2))
    h2p = conv_stage(xp, prep["t1"], prep["b1"], prep["t2"], prep["b2"], bt=bt)

    # Free reinterpretation: (N*32, 220) row-major == (N, 7040) row-major.
    flat = h2p.reshape(n, FLAT)

    if n <= 16:
        tm = n                                    # block == full array dims
    else:
        tm = min(256, _round_up((n + 1) // 2, 16))
    logits = mlp_stage(flat, prep["w3"], prep["b3"], prep["w4"], prep["b4"], tm=tm)
    return logits[:, :n_classes]


# ---------------------------------------------------------------------------
# Parameters (deterministic, PyTorch-style uniform(-1/sqrt(fan_in), ...)).
# ---------------------------------------------------------------------------
def init_params(key, n_classes):
    ks = jax.random.split(key, 8)

    def u(k, shape, fan_in):
        bound = 1.0 / jnp.sqrt(fan_in)
        return jax.random.uniform(k, shape, jnp.float32, -bound, bound)

    return {
        "conv1_w": u(ks[0], (C1, 1, KH, KW), 1 * KH * KW),
        "conv1_b": u(ks[1], (C1,), 1 * KH * KW),
        "conv2_w": u(ks[2], (C2, C1, KH, KW), C1 * KH * KW),
        "conv2_b": u(ks[3], (C2,), C1 * KH * KW),
        "lin1_w":  u(ks[4], (HID, C2 * OH2 * OW2), C2 * OH2 * OW2),
        "lin1_b":  u(ks[5], (HID,), C2 * OH2 * OW2),
        "lin2_w":  u(ks[6], (n_classes, HID), HID),
        "lin2_b":  u(ks[7], (n_classes,), HID),
    }


# Pure-JAX f32 reference for the correctness sanity check.
def mnist_forward_ref(params, x):
    def conv(x, w, b):
        y = jax.lax.conv_general_dilated(
            x, w, window_strides=(1, 1), padding="VALID",
            dimension_numbers=("NCHW", "OIHW", "NCHW"))
        return jax.nn.relu(y + b[None, :, None, None])

    h1 = conv(x, params["conv1_w"], params["conv1_b"])
    h2 = conv(h1, params["conv2_w"], params["conv2_b"])
    flat = h2.reshape(h2.shape[0], -1)
    fc1 = jax.nn.relu(flat @ params["lin1_w"].T + params["lin1_b"])
    return fc1 @ params["lin2_w"].T + params["lin2_b"]


if __name__ == "__main__":
    n_classes = 10
    batch = 2

    key = jax.random.PRNGKey(0)
    k_x, k_p = jax.random.split(key)
    x = jax.random.normal(k_x, (batch, 1, IN_H, IN_W), jnp.float32)
    params = init_params(k_p, n_classes)

    # One-time weight prep, outside the jitted forward (perf review item 3).
    prep = prepare_params(params)

    logits = jax.block_until_ready(mnist_forward(prep, x, n_classes=n_classes))
    assert logits.shape == (batch, n_classes)
    assert logits.dtype == jnp.float32

    ref = jax.block_until_ready(mnist_forward_ref(params, x))
    err = jnp.max(jnp.abs(logits - ref))
    assert jnp.allclose(logits, ref, rtol=2e-2, atol=2e-2), f"max abs err {err}"

    print("KERNEL_OK")
</pallas_src>

<mosaic_0001>
module attributes {stable_mosaic.version = 11 : i64} {
  func.func @_mlp_kernel(%arg0: i32, %arg1: memref<2x7040xbf16, #tpu.memory_space<vmem>>, %arg2: memref<7040x256xbf16, #tpu.memory_space<vmem>>, %arg3: memref<1x256xf32, #tpu.memory_space<vmem>>, %arg4: memref<256x128xbf16, #tpu.memory_space<vmem>>, %arg5: memref<1x128xf32, #tpu.memory_space<vmem>>, %arg6: memref<2x128xf32, #tpu.memory_space<vmem>>) attributes {dimension_semantics = [#tpu.dimension_semantics<parallel>], iteration_bounds = array<i64: 1>, scalar_prefetch = 0 : i64, scratch_operands = 0 : i64, tpu.core_type = #tpu.core_type<tc>, window_params = [{transform_indices = @transform_0, window_bounds = array<i64: 2, 7040>}, {pipeline_mode = #tpu.pipeline_mode<synchronous>, transform_indices = @transform_1, window_bounds = array<i64: 7040, 256>}, {pipeline_mode = #tpu.pipeline_mode<synchronous>, transform_indices = @transform_2, window_bounds = array<i64: 1, 256>}, {pipeline_mode = #tpu.pipeline_mode<synchronous>, transform_indices = @transform_3, window_bounds = array<i64: 256, 128>}, {pipeline_mode = #tpu.pipeline_mode<synchronous>, transform_indices = @transform_4, window_bounds = array<i64: 1, 128>}, {transform_indices = @transform_5, window_bounds = array<i64: 2, 128>}]} {
    %c0 = arith.constant 0 : index
    %c0_0 = arith.constant 0 : index
    %0 = vector.load %arg1[%c0, %c0_0] : memref<2x7040xbf16, #tpu.memory_space<vmem>>, vector<2x7040xbf16>
    %c0_1 = arith.constant 0 : index
    %c0_2 = arith.constant 0 : index
    %1 = vector.load %arg2[%c0_1, %c0_2] : memref<7040x256xbf16, #tpu.memory_space<vmem>>, vector<7040x256xbf16>
    %cst = arith.constant dense<0.000000e+00> : vector<2x256xf32>
    %2 = tpu.matmul %0, %1, %cst {dimension_numbers = #tpu.dot_dimension_numbers<[1], [0], [0], [1], [0, 0, 1, 1], [], []>} : vector<2x7040xbf16>, vector<7040x256xbf16>, vector<2x256xf32> -> vector<2x256xf32>
    %c0_3 = arith.constant 0 : index
    %c0_4 = arith.constant 0 : index
    %3 = vector.load %arg3[%c0_3, %c0_4] : memref<1x256xf32, #tpu.memory_space<vmem>>, vector<1x256xf32>
    %4 = vector.broadcast %3 : vector<1x256xf32> to vector<2x256xf32>
    %5 = arith.addf %2, %4 : vector<2x256xf32>
    %cst_5 = arith.constant 0.000000e+00 : f32
    %6 = vector.broadcast %cst_5 : f32 to vector<2x256xf32>
    %7 = arith.maximumf %5, %6 : vector<2x256xf32>
    %8 = arith.truncf %7 : vector<2x256xf32> to vector<2x256xbf16>
    %c0_6 = arith.constant 0 : index
    %c0_7 = arith.constant 0 : index
    %9 = vector.load %arg4[%c0_6, %c0_7] : memref<256x128xbf16, #tpu.memory_space<vmem>>, vector<256x128xbf16>
    %cst_8 = arith.constant dense<0.000000e+00> : vector<2x128xf32>
    %10 = tpu.matmul %8, %9, %cst_8 {dimension_numbers = #tpu.dot_dimension_numbers<[1], [0], [0], [1], [0, 0, 1, 1], [], []>} : vector<2x256xbf16>, vector<256x128xbf16>, vector<2x128xf32> -> vector<2x128xf32>
    %c0_9 = arith.constant 0 : index
    %c0_10 = arith.constant 0 : index
    %11 = vector.load %arg5[%c0_9, %c0_10] : memref<1x128xf32, #tpu.memory_space<vmem>>, vector<1x128xf32>
    %12 = vector.broadcast %11 : vector<1x128xf32> to vector<2x128xf32>
    %13 = arith.addf %10, %12 : vector<2x128xf32>
    %c0_11 = arith.constant 0 : index
    %c0_12 = arith.constant 0 : index
    %14 = vector.load %arg6[%c0_11, %c0_12] : memref<2x128xf32, #tpu.memory_space<vmem>>, vector<2x128xf32>
    tpu.vector_store %arg6[%c0_11, %c0_12], %13 {strides = array<i32>} : memref<2x128xf32, #tpu.memory_space<vmem>>, vector<2x128xf32>,
    return
  }
  func.func @transform_0(%arg0: i32) -> (i32, i32) {
    %c0_i32 = arith.constant 0 : i32
    %c0_i32_0 = arith.constant 0 : i32
    return %arg0, %c0_i32 : i32, i32
  }
  func.func @transform_1(%arg0: i32) -> (i32, i32) {
    %c0_i32 = arith.constant 0 : i32
    %c0_i32_0 = arith.constant 0 : i32
    %c0_i32_1 = arith.constant 0 : i32
    return %c0_i32, %c0_i32_0 : i32, i32
  }
  func.func @transform_2(%arg0: i32) -> (i32, i32) {
    %c0_i32 = arith.constant 0 : i32
    %c0_i32_0 = arith.constant 0 : i32
    %c0_i32_1 = arith.constant 0 : i32
    return %c0_i32, %c0_i32_0 : i32, i32
  }
  func.func @transform_3(%arg0: i32) -> (i32, i32) {
    %c0_i32 = arith.constant 0 : i32
    %c0_i32_0 = arith.constant 0 : i32
    %c0_i32_1 = arith.constant 0 : i32
    return %c0_i32, %c0_i32_0 : i32, i32
  }
  func.func @transform_4(%arg0: i32) -> (i32, i32) {
    %c0_i32 = arith.constant 0 : i32
    %c0_i32_0 = arith.constant 0 : i32
    %c0_i32_1 = arith.constant 0 : i32
    return %c0_i32, %c0_i32_0 : i32, i32
  }
  func.func @transform_5(%arg0: i32) -> (i32, i32) {
    %c0_i32 = arith.constant 0 : i32
    %c0_i32_0 = arith.constant 0 : i32
    return %arg0, %c0_i32 : i32, i32
  }
}

module attributes {stable_mosaic.version = 11 : i64} {
  func.func @_conv_kernel(%arg0: i32, %arg1: memref<32x32xbf16, #tpu.memory_space<vmem>>, %arg2: memref<128x256xbf16, #tpu.memory_space<vmem>>, %arg3: memref<1x256xf32, #tpu.memory_space<vmem>>, %arg4: memref<1024x220xbf16, #tpu.memory_space<vmem>>, %arg5: memref<1x220xf32, #tpu.memory_space<vmem>>, %arg6: memref<32x220xbf16, #tpu.memory_space<vmem>>) attributes {dimension_semantics = [#tpu.dimension_semantics<parallel>], iteration_bounds = array<i64: 2>, scalar_prefetch = 0 : i64, scratch_operands = 0 : i64, tpu.core_type = #tpu.core_type<tc>, window_params = [{transform_indices = @transform_0, window_bounds = array<i64: 32, 32>}, {pipeline_mode = #tpu.pipeline_mode<synchronous>, transform_indices = @transform_1, window_bounds = array<i64: 128, 256>}, {pipeline_mode = #tpu.pipeline_mode<synchronous>, transform_indices = @transform_2, window_bounds = array<i64: 1, 256>}, {pipeline_mode = #tpu.pipeline_mode<synchronous>, transform_indices = @transform_3, window_bounds = array<i64: 1024, 220>}, {pipeline_mode = #tpu.pipeline_mode<synchronous>, transform_indices = @transform_4, window_bounds = array<i64: 1, 220>}, {transform_indices = @transform_5, window_bounds = array<i64: 32, 220>}]} {
    %c0 = arith.constant 0 : index
    %c0_0 = arith.constant 0 : index
    %0 = vector.load %arg1[%c0, %c0_0] : memref<32x32xbf16, #tpu.memory_space<vmem>>, vector<32x32xbf16>
    %cst = arith.constant 0.000000e+00 : f32
    %1 = vector.broadcast %cst : f32 to vector<32x256xf32>
    %c0_1 = arith.constant 0 : index
    %c0_2 = arith.constant 0 : index
    %2 = vector.load %arg2[%c0_1, %c0_2] : memref<128x256xbf16, #tpu.memory_space<vmem>>, vector<32x256xbf16>
    %cst_3 = arith.constant dense<0.000000e+00> : vector<32x256xf32>
    %3 = tpu.matmul %0, %2, %cst_3 {dimension_numbers = #tpu.dot_dimension_numbers<[1], [0], [0], [1], [0, 0, 1, 1], [], []>} : vector<32x32xbf16>, vector<32x256xbf16>, vector<32x256xf32> -> vector<32x256xf32>
    %4 = arith.addf %1, %3 : vector<32x256xf32>
    %cst_4 = arith.constant 0.000000e+00 : bf16
    %5 = vector.broadcast %cst_4 : bf16 to vector<1x32xbf16>
    %6 = vector.extract_strided_slice %0 {offsets = [1, 0], sizes = [31, 32], strides = [1, 1]} : vector<32x32xbf16> to vector<31x32xbf16>
    %7 = tpu.concatenate %6, %5 in 0 : vector<31x32xbf16>, vector<1x32xbf16> -> vector<32x32xbf16>
    %c32 = arith.constant 32 : index
    %c0_5 = arith.constant 0 : index
    %8 = vector.load %arg2[%c32, %c0_5] : memref<128x256xbf16, #tpu.memory_space<vmem>>, vector<32x256xbf16>
    %cst_6 = arith.constant dense<0.000000e+00> : vector<32x256xf32>
    %9 = tpu.matmul %7, %8, %cst_6 {dimension_numbers = #tpu.dot_dimension_numbers<[1], [0], [0], [1], [0, 0, 1, 1], [], []>} : vector<32x32xbf16>, vector<32x256xbf16>, vector<32x256xf32> -> vector<32x256xf32>
    %10 = arith.addf %4, %9 : vector<32x256xf32>
    %cst_7 = arith.constant 0.000000e+00 : bf16
    %11 = vector.broadcast %cst_7 : bf16 to vector<2x32xbf16>
    %12 = vector.extract_strided_slice %0 {offsets = [2, 0], sizes = [30, 32], strides = [1, 1]} : vector<32x32xbf16> to vector<30x32xbf16>
    %13 = tpu.concatenate %12, %11 in 0 : vector<30x32xbf16>, vector<2x32xbf16> -> vector<32x32xbf16>
    %c64 = arith.constant 64 : index
    %c0_8 = arith.constant 0 : index
    %14 = vector.load %arg2[%c64, %c0_8] : memref<128x256xbf16, #tpu.memory_space<vmem>>, vector<32x256xbf16>
    %cst_9 = arith.constant dense<0.000000e+00> : vector<32x256xf32>
    %15 = tpu.matmul %13, %14, %cst_9 {dimension_numbers = #tpu.dot_dimension_numbers<[1], [0], [0], [1], [0, 0, 1, 1], [], []>} : vector<32x32xbf16>, vector<32x256xbf16>, vector<32x256xf32> -> vector<32x256xf32>
    %16 = arith.addf %10, %15 : vector<32x256xf32>
    %cst_10 = arith.constant 0.000000e+00 : bf16
    %17 = vector.broadcast %cst_10 : bf16 to vector<3x32xbf16>
    %18 = vector.extract_strided_slice %0 {offsets = [3, 0], sizes = [29, 32], strides = [1, 1]} : vector<32x32xbf16> to vector<29x32xbf16>
    %19 = tpu.concatenate %18, %17 in 0 : vector<29x32xbf16>, vector<3x32xbf16> -> vector<32x32xbf16>
    %c96 = arith.constant 96 : index
    %c0_11 = arith.constant 0 : index
    %20 = vector.load %arg2[%c96, %c0_11] : memref<128x256xbf16, #tpu.memory_space<vmem>>, vector<32x256xbf16>
    %cst_12 = arith.constant dense<0.000000e+00> : vector<32x256xf32>
    %21 = tpu.matmul %19, %20, %cst_12 {dimension_numbers = #tpu.dot_dimension_numbers<[1], [0], [0], [1], [0, 0, 1, 1], [], []>} : vector<32x32xbf16>, vector<32x256xbf16>, vector<32x256xf32> -> vector<32x256xf32>
    %22 = arith.addf %16, %21 : vector<32x256xf32>
    %c0_13 = arith.constant 0 : index
    %c0_14 = arith.constant 0 : index
    %23 = vector.load %arg3[%c0_13, %c0_14] : memref<1x256xf32, #tpu.memory_space<vmem>>, vector<1x256xf32>
    %24 = vector.broadcast %23 : vector<1x256xf32> to vector<32x256xf32>
    %25 = arith.addf %22, %24 : vector<32x256xf32>
    %cst_15 = arith.constant 0.000000e+00 : f32
    %26 = vector.broadcast %cst_15 : f32 to vector<32x256xf32>
    %27 = arith.maximumf %25, %26 : vector<32x256xf32>
    %28 = arith.truncf %27 : vector<32x256xf32> to vector<32x256xbf16>
    %cst_16 = arith.constant 0.000000e+00 : f32
    %29 = vector.broadcast %cst_16 : f32 to vector<32x220xf32>
    %c0_17 = arith.constant 0 : index
    %c0_18 = arith.constant 0 : index
    %30 = vector.load %arg4[%c0_17, %c0_18] : memref<1024x220xbf16, #tpu.memory_space<vmem>>, vector<256x220xbf16>
    %cst_19 = arith.constant dense<0.000000e+00> : vector<32x220xf32>
    %31 = tpu.matmul %28, %30, %cst_19 {dimension_numbers = #tpu.dot_dimension_numbers<[1], [0], [0], [1], [0, 0, 1, 1], [], []>} : vector<32x256xbf16>, vector<256x220xbf16>, vector<32x220xf32> -> vector<32x220xf32>
    %32 = arith.addf %29, %31 : vector<32x220xf32>
    %cst_20 = arith.constant 0.000000e+00 : bf16
    %33 = vector.broadcast %cst_20 : bf16 to vector<1x256xbf16>
    %34 = vector.extract_strided_slice %28 {offsets = [1, 0], sizes = [31, 256], strides = [1, 1]} : vector<32x256xbf16> to vector<31x256xbf16>
    %35 = tpu.concatenate %34, %33 in 0 : vector<31x256xbf16>, vector<1x256xbf16> -> vector<32x256xbf16>
    %c256 = arith.constant 256 : index
    %c0_21 = arith.constant 0 : index
    %36 = vector.load %arg4[%c256, %c0_21] : memref<1024x220xbf16, #tpu.memory_space<vmem>>, vector<256x220xbf16>
    %cst_22 = arith.constant dense<0.000000e+00> : vector<32x220xf32>
    %37 = tpu.matmul %35, %36, %cst_22 {dimension_numbers = #tpu.dot_dimension_numbers<[1], [0], [0], [1], [0, 0, 1, 1], [], []>} : vector<32x256xbf16>, vector<256x220xbf16>, vector<32x220xf32> -> vector<32x220xf32>
    %38 = arith.addf %32, %37 : vector<32x220xf32>
    %cst_23 = arith.constant 0.000000e+00 : bf16
    %39 = vector.broadcast %cst_23 : bf16 to vector<2x256xbf16>
    %40 = vector.extract_strided_slice %28 {offsets = [2, 0], sizes = [30, 256], strides = [1, 1]} : vector<32x256xbf16> to vector<30x256xbf16>
    %41 = tpu.concatenate %40, %39 in 0 : vector<30x256xbf16>, vector<2x256xbf16> -> vector<32x256xbf16>
    %c512 = arith.constant 512 : index
    %c0_24 = arith.constant 0 : index
    %42 = vector.load %arg4[%c512, %c0_24] : memref<1024x220xbf16, #tpu.memory_space<vmem>>, vector<256x220xbf16>
    %cst_25 = arith.constant dense<0.000000e+00> : vector<32x220xf32>
    %43 = tpu.matmul %41, %42, %cst_25 {dimension_numbers = #tpu.dot_dimension_numbers<[1], [0], [0], [1], [0, 0, 1, 1], [], []>} : vector<32x256xbf16>, vector<256x220xbf16>, vector<32x220xf32> -> vector<32x220xf32>
    %44 = arith.addf %38, %43 : vector<32x220xf32>
    %cst_26 = arith.constant 0.000000e+00 : bf16
    %45 = vector.broadcast %cst_26 : bf16 to vector<3x256xbf16>
    %46 = vector.extract_strided_slice %28 {offsets = [3, 0], sizes = [29, 256], strides = [1, 1]} : vector<32x256xbf16> to vector<29x256xbf16>
    %47 = tpu.concatenate %46, %45 in 0 : vector<29x256xbf16>, vector<3x256xbf16> -> vector<32x256xbf16>
    %c768 = arith.constant 768 : index
    %c0_27 = arith.constant 0 : index
    %48 = vector.load %arg4[%c768, %c0_27] : memref<1024x220xbf16, #tpu.memory_space<vmem>>, vector<256x220xbf16>
    %cst_28 = arith.constant dense<0.000000e+00> : vector<32x220xf32>
    %49 = tpu.matmul %47, %48, %cst_28 {dimension_numbers = #tpu.dot_dimension_numbers<[1], [0], [0], [1], [0, 0, 1, 1], [], []>} : vector<32x256xbf16>, vector<256x220xbf16>, vector<32x220xf32> -> vector<32x220xf32>
    %50 = arith.addf %44, %49 : vector<32x220xf32>
    %c0_29 = arith.constant 0 : index
    %c0_30 = arith.constant 0 : index
    %51 = vector.load %arg5[%c0_29, %c0_30] : memref<1x220xf32, #tpu.memory_space<vmem>>, vector<1x220xf32>
    %52 = vector.broadcast %51 : vector<1x220xf32> to vector<32x220xf32>
    %53 = arith.addf %50, %52 : vector<32x220xf32>
    %cst_31 = arith.constant 0.000000e+00 : f32
    %54 = vector.broadcast %cst_31 : f32 to vector<32x220xf32>
    %55 = arith.maximumf %53, %54 : vector<32x220xf32>
    %56 = tpu.iota {dimensions = array<i32: 0>} : vector<32x220xi32>
    %c32_i32 = arith.constant 32 : i32
    %c0_i32 = arith.constant 0 : i32
    %57 = arith.cmpi eq, %c32_i32, %c0_i32 : i32
    %c1_i32 = arith.constant 1 : i32
    %58 = arith.select %57, %c1_i32, %c32_i32 : i32
    %59 = vector.broadcast %58 : i32 to vector<32x220xi32>
    %60 = arith.remsi %56, %59 : vector<32x220xi32>
    %c0_i32_32 = arith.constant 0 : i32
    %61 = vector.broadcast %c0_i32_32 : i32 to vector<32x220xi32>
    %62 = arith.cmpi ne, %60, %61 : vector<32x220xi32>
    %c0_i32_33 = arith.constant 0 : i32
    %63 = vector.broadcast %c0_i32_33 : i32 to vector<32x220xi32>
    %64 = arith.cmpi slt, %60, %63 : vector<32x220xi32>
    %c0_i32_34 = arith.constant 0 : i32
    %65 = arith.cmpi slt, %58, %c0_i32_34 : i32
    %66 = vector.broadcast %65 : i1 to vector<32x220xi1>
    %67 = vector.broadcast %66 : vector<32x220xi1> to vector<32x220xi1>
    %68 = arith.xori %64, %67 : vector<32x220xi1>
    %69 = arith.andi %68, %62 : vector<32x220xi1>
    %70 = vector.broadcast %58 : i32 to vector<32x220xi32>
    %71 = arith.addi %60, %70 : vector<32x220xi32>
    %72 = arith.select %69, %71, %60 : vector<32x220xi1>, vector<32x220xi32>
    %c22_i32 = arith.constant 22 : i32
    %73 = vector.broadcast %c22_i32 : i32 to vector<32x220xi32>
    %74 = arith.cmpi slt, %72, %73 : vector<32x220xi32>
    %cst_35 = arith.constant 0.000000e+00 : f32
    %75 = vector.broadcast %cst_35 : f32 to vector<32x220xf32>
    %76 = arith.select %74, %55, %75 : vector<32x220xi1>, vector<32x220xf32>
    %77 = arith.truncf %76 : vector<32x220xf32> to vector<32x220xbf16>
    %c0_36 = arith.constant 0 : index
    %c0_37 = arith.constant 0 : index
    %78 = vector.load %arg6[%c0_36, %c0_37] : memref<32x220xbf16, #tpu.memory_space<vmem>>, vector<32x220xbf16>
    tpu.vector_store %arg6[%c0_36, %c0_37], %77 {strides = array<i32>} : memref<32x220xbf16, #tpu.memory_space<vmem>>, vector<32x220xbf16>,
    return
  }
  func.func @transform_0(%arg0: i32) -> (i32, i32) {
    %c0_i32 = arith.constant 0 : i32
    %c0_i32_0 = arith.constant 0 : i32
    return %arg0, %c0_i32 : i32, i32
  }
  func.func @transform_1(%arg0: i32) -> (i32, i32) {
    %c0_i32 = arith.constant 0 : i32
    %c0_i32_0 = arith.constant 0 : i32
    %c0_i32_1 = arith.constant 0 : i32
    return %c0_i32, %c0_i32_0 : i32, i32
  }
  func.func @transform_2(%arg0: i32) -> (i32, i32) {
    %c0_i32 = arith.constant 0 : i32
    %c0_i32_0 = arith.constant 0 : i32
    %c0_i32_1 = arith.constant 0 : i32
    return %c0_i32, %c0_i32_0 : i32, i32
  }
  func.func @transform_3(%arg0: i32) -> (i32, i32) {
    %c0_i32 = arith.constant 0 : i32
    %c0_i32_0 = arith.constant 0 : i32
    %c0_i32_1 = arith.constant 0 : i32
    return %c0_i32, %c0_i32_0 : i32, i32
  }
  func.func @transform_4(%arg0: i32) -> (i32, i32) {
    %c0_i32 = arith.constant 0 : i32
    %c0_i32_0 = arith.constant 0 : i32
    %c0_i32_1 = arith.constant 0 : i32
    return %c0_i32, %c0_i32_0 : i32, i32
  }
  func.func @transform_5(%arg0: i32) -> (i32, i32) {
    %c0_i32 = arith.constant 0 : i32
    %c0_i32_0 = arith.constant 0 : i32
    return %arg0, %c0_i32 : i32, i32
  }
}

</mosaic_0001>

<bundles_post_ra>
// kernel: mnist_forward.2
= control target key start
LH: loop header
LB: loop body
LE: loop exit
PB: predicated region body
PF: predicated region fallthrough
CT: control target
= control target key end

     0   :  { %10 = vsyncpa [#allocation3], 0  ;;  %s3249_s0 = inlined_call_operand.vmem [shape: bf16[64,32], index: 0, kind: input, shape index: {}]   ;;  %s3250_s1 = inlined_call_operand.hbm [shape: bf16[128,256], index: 1, kind: input, shape index: {}]   ;;  %s3251_s2 = inlined_call_operand.hbm [shape: f32[1,256], index: 2, kind: input, shape index: {}]   ;;  %s3252_s3 = inlined_call_operand.vmem [shape: bf16[1024,220], index: 3, kind: input, shape index: {}]   ;;  %s3253_s4 = inlined_call_operand.hbm [shape: f32[1,220], index: 4, kind: input, shape index: {}]   ;;  %s3254_s5 = inlined_call_operand.vmem [shape: bf16[64,220], index: 5, kind: output, shape index: {}]  }
   0x1   :  { %11 = vsyncpa [#allocation5], 0  ;;  %s2602_s18 = smov 0  }
   0x2 LB: > { %s2565_s19 = smov [#allocation4]   ;;  %s1985_s21 = sadd.s32 4294967295, %s2563_s18   ;;  %s2563_s18 = sphi %s2602_s18, %s17_s18  }
   0x3   : > { %s184_s20 = sshll.u32 %s2565_s19, 4  ;;  %p1987_p0 = scmp.ge.s32.totalorder %s2563_s18, 1  ;;  %s185_s20 = int_to_ptr.vmem [resolvable:$true] %s184_s20 }
   0x4   : > { %p158_p1 = scmp.lt.s32.totalorder %s2563_s18, 3  ;;  %p2612_p2 = scmp.eq.s32.totalorder %s1985_s21, 0 }
   0x5   : > { %s2566_s24 = smov [#allocation2]   ;;  %s2567_s27 = smov [#allocation6]  }
   0x6   : > { %s3258_s22 = scalar_select %p2612_p2, 1, 0 }
   0x7   : > { %p2616_p3 = pnand %p1987_p0, %p158_p1  ;;  %s170_s25 = sshll.u32 %s2566_s24, 4  ;;  %s2628_s25 = int_to_ptr.vmem [resolvable:$true] %s170_s25 }
   0x8   : > { %s198_s28 = sshll.u32 %s2567_s27, 4  ;;  %s2465_s6 = scalar_lea.hbm %s3251_s2, 32  ;;  %s2630_s28 = int_to_ptr.vmem [resolvable:$true] %s198_s28 }
   0x9   : > { %s3259_s23 = scalar_select %p2616_p3, 1, 0 }
   0xa   : > { %p2216_p4 = pneg %p2616_p3  ;;  %p2466_p6 = scmp.ne.s32.totalorder %s3251_s2, %s2465_s6 }
   0xb   : > { %p2472_p10 = scmp.lt.u32.totalorder %s2465_s6, %s3251_s2 }
   0xc   : > { %p2624_p5 = pnand %p2612_p2, %p2216_p4 }
   0xe   : > { %p2640_p7 = pneg %p2624_p5 }
  0x10   : > { %p2468_p8 = pnand %p2640_p7, %p2466_p6 }
  0x12   : > { %p2469_p9 = pneg %p2468_p8 }
  0x14   : > { %p2474_p11 = pnand %p2472_p10, %p2469_p9 }
  0x16   : > { %2477 = shalt.err (!%p2474_p11)
}
  0x17   : > { %s2478_s12 = scalar_lea.vmem %s185_s20, 32  ;;  %p2486_p1 = scmp.lt.s32.totalorder %s185_s20, %s185_s20 }
  0x18   : > { %p2479_p12 = scmp.ne.s32.totalorder %s185_s20, %s2478_s12  ;;  %p2487_p4 = scmp.lt.s32.totalorder %s2478_s12, %s2478_s12 }
  0x1a   : > { %p2481_p13 = pnand %p2479_p12, %p2640_p7  ;;  %p2488_p2 = por %p2487_p4, %p2486_p1 }
  0x1c   : > { %p2482_p0 = pneg %p2481_p13 }
  0x1e   : > { %p2489_p3 = pnand %p2488_p2, %p2482_p0 }
  0x20   : > { %2492 = shalt.err (!%p2489_p3)
}
  0x21   : > { %2222 = dma.hbm_to_vmem [thread:$0]  (!%p2624_p5), %s3251_s2, 32, %s185_s20, [#allocation5]  }
  0x22   : > { %s2493_s17 = scalar_lea.hbm %s3250_s1, 2048 }
  0x23   : > { %p2494_p6 = scmp.ne.s32.totalorder %s3250_s1, %s2493_s17  ;;  %p2500_p2 = scmp.lt.u32.totalorder %s2493_s17, %s3250_s1 }
  0x25   : > { %p2496_p8 = pnand %p2494_p6, %p2640_p7 }
  0x27   : > { %p2497_p9 = pneg %p2496_p8 }
  0x29   : > { %p2502_p3 = pnand %p2500_p2, %p2497_p9 }
  0x2b   : > { %2505 = shalt.err (!%p2502_p3)
}
  0x2c   : > { %s2506_s20 = scalar_lea.vmem %s2628_s25, 2048  ;;  %p2514_p13 = scmp.lt.s32.totalorder %s2628_s25, %s2628_s25 }
  0x2d   : > { %p2507_p10 = scmp.ne.s32.totalorder %s2628_s25, %s2506_s20  ;;  %p2515_p0 = scmp.lt.s32.totalorder %s2506_s20, %s2506_s20 }
  0x2f   : > { %p2509_p11 = pnand %p2507_p10, %p2640_p7  ;;  %p2516_p1 = por %p2515_p0, %p2514_p13 }
  0x31   : > { %p2510_p12 = pneg %p2509_p11 }
  0x33   : > { %p2517_p4 = pnand %p2516_p1, %p2510_p12 }
  0x35   : > { %2520 = shalt.err (!%p2517_p4)
}
  0x36   : > { %s2568_s30 = smov 128   ;;  %s2569_s6 = smov 8  }
  0x37   : > { %2219 = dma.hbm_to_vmem [thread:$0]  (!%p2624_p5), %s3250_s1, 2048, %s2628_s25, [#allocation3], %s2568_s30, %s2568_s30, %s2569_s6  }
  0x38   : > { %s2521_s12 = scalar_lea.hbm %s3253_s4, 32 }
  0x39   : > { %p2522_p6 = scmp.ne.s32.totalorder %s3253_s4, %s2521_s12  ;;  %p2528_p2 = scmp.lt.u32.totalorder %s2521_s12, %s3253_s4 }
  0x3b   : > { %p2524_p8 = pnand %p2522_p6, %p2640_p7 }
  0x3d   : > { %p2525_p9 = pneg %p2524_p8 }
  0x3f   : > { %p2530_p3 = pnand %p2528_p2, %p2525_p9 }
  0x41   : > { %2533 = shalt.err (!%p2530_p3)
}
  0x42   : > { %s2534_s25 = scalar_lea.vmem %s2630_s28, 32  ;;  %p2542_p13 = scmp.lt.s32.totalorder %s2630_s28, %s2630_s28 }
  0x43   : > { %p2535_p10 = scmp.ne.s32.totalorder %s2630_s28, %s2534_s25  ;;  %p2543_p0 = scmp.lt.s32.totalorder %s2534_s25, %s2534_s25 }
  0x45   : > { %p2537_p11 = pnand %p2535_p10, %p2640_p7  ;;  %p2544_p1 = por %p2543_p0, %p2542_p13 }
  0x47   : > { %p2538_p12 = pneg %p2537_p11 }
  0x49   : > { %p2545_p4 = pnand %p2544_p1, %p2538_p12 }
  0x4b   : > { %2548 = shalt.err (!%p2545_p4)
}
  0x4c   : > { %2225 = dma.hbm_to_vmem [thread:$0]  (!%p2624_p5), %s3253_s4, 32, %s2630_s28, [#allocation5]  }
  0x4d   : > { %p3262_p6 = scmp.ne.s32.totalorder %s3259_s23, 0 }
  0x4e   : > { %p3263_p8 = scmp.ne.s32.totalorder (!%p3262_p6), %s3258_s22, 0 }
  0x4f   : > { %220 = sbr.rel (%p3262_p6) target bundleno = 655 (0x28f), region = 40 }
  0x56   : > { %2554 = dma.done.wait (%p3263_p8), [#allocation3], 2048  }
  0x57   : > { %2556 = vsyncadd (%p3263_p8), [#allocation3], 4294965248 }
  0x58   : > { %2558 = dma.done.wait (%p3263_p8), [#allocation5], 64  }
  0x59   : > { %2560 = vsyncadd (%p3263_p8), [#allocation5], 4294967232  ;;  %s1996_s26 = sshll.u32 %s1985_s21, 2  ;;  %v2570_v0 = vmov 0   ;;  %v2247_v1 = vld [vmem:[#allocation2 + $0x24] ss:$8 sps:$4 sm:$0xff]  }
  0x5a   : > { %372 = vmatprep.mubr.bf16.mxu1 %v2570_v0  ;;  %539 = vmatprep.mubr.bf16.mxu0 %v2570_v0  ;;  %p258_p5 = scmp.lt.s32.totalorder %s1996_s26, 7  ;;  %v2249_v2 = vld [vmem:[#allocation2 + $0x44] ss:$8 sps:$4 sm:$0xff]   ;;  %v2251_v3 = vld [vmem:[#allocation2 + $0x20] ss:$8 sps:$4 sm:$0xff]   ;;  %vm470_vm0 = vcmask 1046528  }
  0x5b   : > { %340 = vmatprep.subr.bf16.mxu1 %v2247_v1  ;;  %v2252_v4 = vld [vmem:[#allocation2 + $0x40] ss:$8 sps:$4 sm:$0xff]   ;;  %507 = vmatprep.subr.bf16.mxu0 %v2249_v2  ;;  %v2253_v5 = vld [vmem:[#allocation2 + $0x34] ss:$8 sps:$4 sm:$0xff]   ;;  %v2257_v7 = vld [vmem:[#allocation2 + $0x30] ss:$8 sps:$4 sm:$0xff]  }
  0x5c   : > { %s3271_s26 = smov (!%p258_p5, %s1996_s26), 7  ;;  %341 = vmatpush1.bf16.msra.mxu1 %v2251_v3  ;;  %508 = vmatpush1.bf16.msra.mxu0 %v2252_v4  ;;  %v2255_v6 = vld [vmem:[#allocation2 + $0x54] ss:$8 sps:$4 sm:$0xff]   ;;  %v2258_v8 = vld [vmem:[#allocation2 + $0x50] ss:$8 sps:$4 sm:$0xff]   ;;  %vm333_vm1 = vcmask 261120  }
  0x5d   : > { %s1997_s23 = sshll.u32 %s3271_s26, 2  ;;  %342 = vmatprep.subr.bf16.mxu1 %v2253_v5  ;;  %509 = vmatprep.subr.bf16.mxu0 %v2255_v6  ;;  %v2263_v13 = vld [vmem:[#allocation2 + $0x4] ss:$8 sps:$4 sm:$0xff]   ;;  %v2264_v18 = vld [vmem:[#allocation2 + $0x60] ss:$8 sps:$4 sm:$0xff]   ;;  %vm306_vm3 = vcmask 1047552  }
  0x5e   : > { %s261_s21 = scalar_lea.vmem %s3249_s0, %s1997_s23  ;;  %vm289_vm2 = vsmask.f32 7424  ;;  %v2266_v21 = vld [vmem:[#allocation2 + $0x64] ss:$8 sps:$4 sm:$0xff]   ;;  %v2261_v23 = vld [vmem:[#allocation2] ss:$8 sps:$4 sm:$0xff]  }
  0x5f   : > { %v2722_v9 = vld [vmem:[%s261_s21] sm:$0xff]   ;;  %v2724_v10 = vld [vmem:[%s261_s21 + $0x8] sm:$0xff]   ;;  %v2269_v25 = vld [vmem:[#allocation2 + $0x14] ss:$8 sps:$4 sm:$0xff]   ;;  %vm568_vm5 = vsmask.f32 6400 }
  0x60   : > { %343 = vmatpush1.bf16.msra.mxu1 %v2257_v7  ;;  %510 = vmatpush1.bf16.msra.mxu0 %v2258_v8  ;;  %v291_v11 = vshrl.u32 %v2722_v9, 16  ;;  %v293_v12 = vshll.u32 %v2722_v9, 16  ;;  %v298_v14 = vshll.u32 %v2724_v10, 16  ;;  %v471_v15 = vrot.slane %v2722_v9, 1  ;;  %v2272_v26 = vld [vmem:[#allocation2 + $0x74] ss:$8 sps:$4 sm:$0xff]   ;;  %vm2742_vm4 = vmand %vm306_vm3, %vm289_vm2 }
  0x61   : > { %v472_v16 = vrot.slane %v2724_v10, 1  ;;  %417 = vmatprep.subr.bf16.mxu1 %v2263_v13  ;;  %v302_v24 = vshrl.u32 %v2724_v10, 16  ;;  %609 = vmatprep.subr.bf16.mxu0 %v2266_v21  ;;  %v2270_v28 = vld [vmem:[#allocation2 + $0x70] ss:$8 sps:$4 sm:$0xff]   ;;  %v2278_v33 = vld [vmem:[%s3252_s3 + $0x104] ss:$8 sps:$4 sm:$0xff]   ;;  %vm2766_vm6 = vmand %vm470_vm0, %vm568_vm5 }
  0x62   : > { %v295_v17 = vrot.slane %v293_v12, 1  ;;  %v300_v19 = vrot.slane %v298_v14, 1  ;;  %v569_v29 = vrot.slane %v291_v11, 1  ;;  %v570_v30 = vrot.slane %v293_v12, 2  ;;  %v2267_v32 = vld [vmem:[#allocation2 + $0x10] ss:$8 sps:$4 sm:$0xff]  }
  0x63   : > { %v473_v20 = vsel %vm470_vm0, %v471_v15, %v472_v16  ;;  %v573_v34 = vrot.slane %v298_v14, 2  ;;  %v572_v36 = vrot.slane %v302_v24, 1  ;;  %v477_v37 = vsel %vm470_vm0, %v472_v16, 0  ;;  %v2275_v38 = vld [vmem:[%s3252_s3 + $0x204] ss:$8 sps:$4 sm:$0xff]   ;;  %s2163_s29 = sshll.u32 %s3271_s26, 3 }
  0x64   : > { %v296_v22 = vor.u32 %v295_v17, %v291_v11  ;;  %2019 = vmatmul.mubr.msk.bf16.vlgmr.msra.gmra.mrb[0].mxu0 %vm333_vm1, %v473_v20  ;;  %v304_v31 = vor.u32 %v302_v24, %v300_v19  ;;  %v571_v41 = vor.u32 %v570_v30, %v569_v29  ;;  %v2276_v43 = vld [vmem:[%s3252_s3 + $0x100] ss:$8 sps:$4 sm:$0xff]   ;;  %v2284_v44 = vld [vmem:[%s3252_s3 + $0x114] ss:$8 sps:$4 sm:$0xff]   ;;  %v2282_v48 = vld [vmem:[%s3252_s3 + $0x110] ss:$8 sps:$4 sm:$0xff]   ;;  %s3227_s6 = scalar_lea.vmem %s3254_s5, %s2163_s29 }
  0x65   : > { %549 = vmatprep.mubr.bf16.mxu0 %v2570_v0  ;;  %610 = vmatpush1.bf16.msra.mxu0 %v2264_v18  ;;  %v574_v40 = vor.u32 %v573_v34, %v572_v36  ;;  %v2273_v46 = vld [vmem:[%s3252_s3 + $0x200] ss:$8 sps:$4 sm:$0xff]   ;;  %v2281_v47 = vld [vmem:[%s3252_s3 + $0x214] ss:$8 sps:$4 sm:$0xff]   ;;  %v2290_v49 = vld [vmem:[%s3252_s3 + $0x124] ss:$8 sps:$4 sm:$0xff]  }
  0x66   : > { %v301_v27 = vsel %vm289_vm2, %v296_v22, %v300_v19  ;;  %611 = vmatprep.subr.bf16.mxu0 %v2272_v26  ;;  %v308_v39 = vsel %vm2742_vm4, %v304_v31, 0  ;;  %v2279_v50 = vld [vmem:[%s3252_s3 + $0x210] ss:$8 sps:$4 sm:$0xff]   ;;  %v2287_v52 = vld [vmem:[%s3252_s3 + $0x224] ss:$8 sps:$4 sm:$0xff]   ;;  %vm1889_vm7 = vcmask 1043456  }
  0x67   : > { %2007 = vmatmul.mubr.msk.bf16.vlgmr.msra.gmra.mrb[0].mxu1 %vm333_vm1, %v301_v27  ;;  %v575_v42 = vsel %vm568_vm5, %v571_v41, %v574_v40  ;;  %v578_v51 = vsel %vm2766_vm6, %v574_v40, 0  ;;  %v2288_v53 = vld [vmem:[%s3252_s3 + $0x120] ss:$8 sps:$4 sm:$0xff]   ;;  %v2296_v54 = vld [vmem:[%s3252_s3 + $0x134] ss:$8 sps:$4 sm:$0xff]   ;;  %vm1890_vm8 = vcmask 752644  }
  0x68   : > { %418 = vmatpush1.bf16.msra.mxu1 %v2261_v23  ;;  %382 = vmatprep.mubr.bf16.mxu1 %v2570_v0  ;;  %v2285_v55 = vld [vmem:[%s3252_s3 + $0x220] ss:$8 sps:$4 sm:$0xff]   ;;  %v2293_v56 = vld [vmem:[%s3252_s3 + $0x234] ss:$8 sps:$4 sm:$0xff]   ;;  %v2294_v57 = vld [vmem:[%s3252_s3 + $0x130] ss:$8 sps:$4 sm:$0xff]  }
  0x69   : > { %419 = vmatprep.subr.bf16.mxu1 %v2269_v25  ;;  %612 = vmatpush1.bf16.msra.mxu0 %v2270_v28  ;;  %v2302_v58 = vld [vmem:[%s3252_s3 + $0x144] ss:$8 sps:$4 sm:$0xff]   ;;  %v2291_v59 = vld [vmem:[%s3252_s3 + $0x230] ss:$8 sps:$4 sm:$0xff]   ;;  %v2300_v61 = vld [vmem:[%s3252_s3 + $0x140] ss:$8 sps:$4 sm:$0xff]  }
  0x6a   : > { %962 = vmatprep.subr.bf16.mxu0 %v2278_v33  ;;  %v2299_v60 = vld [vmem:[%s3252_s3 + $0x244] ss:$8 sps:$4 sm:$0xff]   ;;  %v2308_v62 = vld [vmem:[%s3252_s3 + $0x154] ss:$8 sps:$4 sm:$0xff]   ;;  %v2297_v63 = vld [vmem:[%s3252_s3 + $0x240] ss:$8 sps:$4 sm:$0xff]  }
  0x6b   : > { %v2306_v1 = vld [vmem:[%s3252_s3 + $0x150] ss:$8 sps:$4 sm:$0xff]   ;;  %v2314_v2 = vld [vmem:[%s3252_s3 + $0x164] ss:$8 sps:$4 sm:$0xff]   ;;  %v2312_v5 = vld [vmem:[%s3252_s3 + $0x160] ss:$8 sps:$4 sm:$0xff]  }
  0x6c   : > { %2020 = vmatmul.mubr.msk.bf16.gmra.mrb[4].mxu0 %vm333_vm1, %v477_v37  ;;  %420 = vmatpush1.bf16.msra.mxu1 %v2267_v32  ;;  %v2303_v3 = vld [vmem:[%s3252_s3 + $0x250] ss:$8 sps:$4 sm:$0xff]   ;;  %v2311_v4 = vld [vmem:[%s3252_s3 + $0x264] ss:$8 sps:$4 sm:$0xff]   ;;  %v2320_v6 = vld [vmem:[%s3252_s3 + $0x174] ss:$8 sps:$4 sm:$0xff]  }
  0x6d   : > { %641 = vmatprep.mubr.bf16.mxu0 %v2570_v0  ;;  %1438 = vmatprep.subr.bf16.mxu1 %v2275_v38  ;;  %v2309_v7 = vld [vmem:[%s3252_s3 + $0x260] ss:$8 sps:$4 sm:$0xff]   ;;  %v2317_v8 = vld [vmem:[%s3252_s3 + $0x274] ss:$8 sps:$4 sm:$0xff]   ;;  %v2315_v11 = vld [vmem:[%s3252_s3 + $0x270] ss:$8 sps:$4 sm:$0xff]  }
  0x6e   : > { %v2323_v12 = vld [vmem:[%s3252_s3 + $0x284] ss:$8 sps:$4 sm:$0xff]   ;;  %v2324_v13 = vld [vmem:[%s3252_s3 + $0x180] ss:$8 sps:$4 sm:$0xff]   ;;  %v2332_v14 = vld [vmem:[%s3252_s3 + $0x194] ss:$8 sps:$4 sm:$0xff]  }
  0x6f   : > { %2008 = vmatmul.mubr.msk.bf16.gmra.mrb[4].mxu1 %vm333_vm1, %v308_v39  ;;  %v2321_v15 = vld [vmem:[%s3252_s3 + $0x280] ss:$8 sps:$4 sm:$0xff]   ;;  %v2329_v16 = vld [vmem:[%s3252_s3 + $0x294] ss:$8 sps:$4 sm:$0xff]   ;;  %v2330_v17 = vld [vmem:[%s3252_s3 + $0x190] ss:$8 sps:$4 sm:$0xff]  }
  0x70   : > { %449 = vmatprep.mubr.bf16.mxu1 %v2570_v0  ;;  %v2327_v18 = vld [vmem:[%s3252_s3 + $0x290] ss:$8 sps:$4 sm:$0xff]   ;;  %v2335_v19 = vld [vmem:[%s3252_s3 + $0x2a4] ss:$8 sps:$4 sm:$0xff]   ;;  %v2333_v20 = vld [vmem:[%s3252_s3 + $0x2a0] ss:$8 sps:$4 sm:$0xff]  }
  0x71   : > { %v2338_v21 = vld [vmem:[%s3252_s3 + $0x1a4] ss:$8 sps:$4 sm:$0xff]   ;;  %v2336_v22 = vld [vmem:[%s3252_s3 + $0x1a0] ss:$8 sps:$4 sm:$0xff]   ;;  %v2341_v23 = vld [vmem:[%s3252_s3 + $0x2b4] ss:$8 sps:$4 sm:$0xff]  }
  0x72   : > { %v2339_v24 = vld [vmem:[%s3252_s3 + $0x2b0] ss:$8 sps:$4 sm:$0xff]   ;;  %v2344_v25 = vld [vmem:[%s3252_s3 + $0x1b4] ss:$8 sps:$4 sm:$0xff]   ;;  %v2347_v27 = vld [vmem:[%s3252_s3 + $0x2c4] ss:$8 sps:$4 sm:$0xff]  }
  0x73   : > { %v2342_v26 = vld [vmem:[%s3252_s3 + $0x1b0] ss:$8 sps:$4 sm:$0xff]   ;;  %v2345_v28 = vld [vmem:[%s3252_s3 + $0x2c0] ss:$8 sps:$4 sm:$0xff]   ;;  %v2350_v29 = vld [vmem:[%s3252_s3 + $0x1c4] ss:$8 sps:$4 sm:$0xff]  }
  0x74   : > { %2025 = vmatmul.mubr.msk.bf16.vlgmr.msra.gmra.mrb[0].mxu0 %vm333_vm1, %v575_v42  ;;  %v2348_v30 = vld [vmem:[%s3252_s3 + $0x1c0] ss:$8 sps:$4 sm:$0xff]   ;;  %v2353_v31 = vld [vmem:[%s3252_s3 + $0x2d4] ss:$8 sps:$4 sm:$0xff]   ;;  %v2351_v32 = vld [vmem:[%s3252_s3 + $0x2d0] ss:$8 sps:$4 sm:$0xff]  }
  0x75   : > { %651 = vmatprep.mubr.bf16.mxu0 %v2570_v0  ;;  %963 = vmatpush1.bf16.msra.mxu0 %v2276_v43  ;;  %v2356_v33 = vld [vmem:[%s3252_s3 + $0x1d4] ss:$8 sps:$4 sm:$0xff]   ;;  %v2354_v34 = vld [vmem:[%s3252_s3 + $0x1d0] ss:$8 sps:$4 sm:$0xff]   ;;  %v2359_v36 = vld [vmem:[%s3252_s3 + $0x2e4] ss:$8 sps:$4 sm:$0xff]  }
  0x76   : > { %964 = vmatprep.subr.bf16.mxu0 %v2284_v44  ;;  %v2357_v37 = vld [vmem:[%s3252_s3 + $0x2e0] ss:$8 sps:$4 sm:$0xff]   ;;  %v2362_v38 = vld [vmem:[%s3252_s3 + $0x1e4] ss:$8 sps:$4 sm:$0xff]   ;;  %v2365_v40 = vld [vmem:[%s3252_s3 + $0x2f4] ss:$8 sps:$4 sm:$0xff]  }
  0x77   : > { %2013 = vmatmul.mubr.msk.bf16.vlgmr.msra.gmra.mrb[0].mxu1 %vm333_vm1, %v2722_v9  ;;  %v2318_v9 = vld [vmem:[%s3252_s3 + $0x170] ss:$8 sps:$4 sm:$0xff]   ;;  %v2360_v39 = vld [vmem:[%s3252_s3 + $0x1e0] ss:$8 sps:$4 sm:$0xff]   ;;  %v2368_v43 = vld [vmem:[%s3252_s3 + $0x1f4] ss:$8 sps:$4 sm:$0xff]  }
  0x78   : > { %459 = vmatprep.mubr.bf16.mxu1 %v2570_v0  ;;  %1439 = vmatpush1.bf16.msra.mxu1 %v2273_v46  ;;  %v2305_v0 = vld [vmem:[%s3252_s3 + $0x254] ss:$8 sps:$4 sm:$0xff]   ;;  %v2363_v41 = vld [vmem:[%s3252_s3 + $0x2f0] ss:$8 sps:$4 sm:$0xff]   ;;  %v2371_v44 = vld [vmem:[%s3252_s3 + $0x304] ss:$8 sps:$4 sm:$0xff]  }
  0x79   : > { %1440 = vmatprep.subr.bf16.mxu1 %v2281_v47  ;;  %965 = vmatpush1.bf16.msra.mxu0 %v2282_v48  ;;  %v2366_v42 = vld [vmem:[%s3252_s3 + $0x1f0] ss:$8 sps:$4 sm:$0xff]   ;;  %v2374_v46 = vld [vmem:[%s3252_s3 + $0x4] ss:$8 sps:$4 sm:$0xff]   ;;  %v672_v47 = vlaneseq  ;;  %vm3229_vm9 = vmor %vm1890_vm8, %vm1889_vm7 }
  0x7a   : > { %966 = vmatprep.subr.bf16.mxu0 %v2290_v49  ;;  %v2398_v35 = vld [vmem:[%s3252_s3 + $0x44] ss:$8 sps:$4 sm:$0xff]  }
  0x7b   : > { %v2965_v48 = vshrl.u32 %v672_v47, 7  ;;  %v2369_v47 = vld [vmem:[%s3252_s3 + $0x300] ss:$8 sps:$4 sm:$0xff]  }
  0x7c   : > { %2026 = vmatmul.mubr.msk.bf16.gmra.mrb[4].mxu0 %vm333_vm1, %v578_v51  ;;  %1441 = vmatpush1.bf16.msra.mxu1 %v2279_v50  ;;  %v670_v50 = vld [vmem:[#allocation4] sm:$0x3] }
  0x7d   : > { %1442 = vmatprep.subr.bf16.mxu1 %v2287_v52  ;;  %967 = vmatpush1.bf16.msra.mxu0 %v2288_v53  ;;  %v674_v49 = vsub.s32 0, %v2965_v48  ;;  %v678_v51 = vsub.s32 1, %v2965_v48 }
  0x7e   : > { %968 = vmatprep.subr.bf16.mxu0 %v2296_v54 }
  0x7f   : > { %2014 = vmatmul.mubr.msk.bf16.gmra.mrb[4].mxu1 %vm333_vm1, %v2724_v10  ;;  %v2326_v10 = vld [vmem:[%s3252_s3 + $0x184] ss:$8 sps:$4 sm:$0xff]   ;;  %v675_v54 = vrot.slane %v670_v50, %v674_v49 }
  0x80   : > { %1443 = vmatpush1.bf16.msra.mxu1 %v2285_v55 }
  0x81   : > { %1444 = vmatprep.subr.bf16.mxu1 %v2293_v56  ;;  %969 = vmatpush1.bf16.msra.mxu0 %v2294_v57  ;;  %v679_v57 = vrot.slane %v670_v50, %v678_v51 }
  0x82   : > { %970 = vmatprep.subr.bf16.mxu0 %v2302_v58 }
  0x84   : > { %1445 = vmatpush1.bf16.msra.mxu1 %v2291_v59 }
  0x85   : > { %1446 = vmatprep.subr.bf16.mxu1 %v2299_v60  ;;  %971 = vmatpush1.bf16.msra.mxu0 %v2300_v61 }
  0x86   : > { %972 = vmatprep.subr.bf16.mxu0 %v2308_v62 }
  0x88   : > { %1447 = vmatpush1.bf16.msra.mxu1 %v2297_v63 }
  0x89   : > { %1448 = vmatprep.subr.bf16.mxu1 %v2305_v0  ;;  %973 = vmatpush1.bf16.msra.mxu0 %v2306_v1 }
  0x8a   : > { %974 = vmatprep.subr.bf16.mxu0 %v2314_v2 }
  0x8c   : > { %1449 = vmatpush1.bf16.msra.mxu1 %v2303_v3 }
  0x8d   : > { %1450 = vmatprep.subr.bf16.mxu1 %v2311_v4  ;;  %975 = vmatpush1.bf16.msra.mxu0 %v2312_v5 }
  0x8e   : > { %976 = vmatprep.subr.bf16.mxu0 %v2320_v6 }
  0x90   : > { %1451 = vmatpush1.bf16.msra.mxu1 %v2309_v7 }
  0x91   : > { %1452 = vmatprep.subr.bf16.mxu1 %v2317_v8  ;;  %977 = vmatpush1.bf16.msra.mxu0 %v2318_v9 }
  0x92   : > { %978 = vmatprep.subr.bf16.mxu0 %v2326_v10 }
  0x94   : > { %1453 = vmatpush1.bf16.msra.mxu1 %v2315_v11 }
  0x95   : > { %1454 = vmatprep.subr.bf16.mxu1 %v2323_v12  ;;  %979 = vmatpush1.bf16.msra.mxu0 %v2324_v13 }
  0x96   : > { %980 = vmatprep.subr.bf16.mxu0 %v2332_v14 }
  0x98   : > { %1455 = vmatpush1.bf16.msra.mxu1 %v2321_v15 }
  0x99   : > { %1456 = vmatprep.subr.bf16.mxu1 %v2329_v16  ;;  %981 = vmatpush1.bf16.msra.mxu0 %v2330_v17 }
  0x9a   : > { %982 = vmatprep.subr.bf16.mxu0 %v2338_v21 }
  0x9c   : > { %1457 = vmatpush1.bf16.msra.mxu1 %v2327_v18 }
  0x9d   : > { %1458 = vmatprep.subr.bf16.mxu1 %v2335_v19  ;;  %983 = vmatpush1.bf16.msra.mxu0 %v2336_v22 }
  0x9e   : > { %984 = vmatprep.subr.bf16.mxu0 %v2344_v25 }
  0xa0   : > { %1459 = vmatpush1.bf16.msra.mxu1 %v2333_v20 }
  0xa1   : > { %1460 = vmatprep.subr.bf16.mxu1 %v2341_v23  ;;  %985 = vmatpush1.bf16.msra.mxu0 %v2342_v26 }
  0xa2   : > { %986 = vmatprep.subr.bf16.mxu0 %v2350_v29 }
  0xa4   : > { %1461 = vmatpush1.bf16.msra.mxu1 %v2339_v24 }
  0xa5   : > { %1462 = vmatprep.subr.bf16.mxu1 %v2347_v27  ;;  %987 = vmatpush1.bf16.msra.mxu0 %v2348_v30 }
  0xa6   : > { %988 = vmatprep.subr.bf16.mxu0 %v2356_v33 }
  0xa8   : > { %1463 = vmatpush1.bf16.msra.mxu1 %v2345_v28 }
  0xa9   : > { %1464 = vmatprep.subr.bf16.mxu1 %v2353_v31  ;;  %989 = vmatpush1.bf16.msra.mxu0 %v2354_v34 }
  0xaa   : > { %990 = vmatprep.subr.bf16.mxu0 %v2362_v38 }
  0xac   : > { %1465 = vmatpush1.bf16.msra.mxu1 %v2351_v32 }
  0xad   : > { %1466 = vmatprep.subr.bf16.mxu1 %v2359_v36  ;;  %991 = vmatpush1.bf16.msra.mxu0 %v2360_v39 }
  0xae   : > { %992 = vmatprep.subr.bf16.mxu0 %v2368_v43 }
  0xb0   : > { %1467 = vmatpush1.bf16.msra.mxu1 %v2357_v37 }
  0xb1   : > { %1468 = vmatprep.subr.bf16.mxu1 %v2365_v40  ;;  %993 = vmatpush1.bf16.msra.mxu0 %v2366_v42 }
  0xb2   : > { %1175 = vmatprep.subr.bf16.mxu0 %v2374_v46 }
  0xb4   : > { %1469 = vmatpush1.bf16.msra.mxu1 %v2363_v41 }
  0xb5   : > { %1711 = vmatprep.subr.bf16.mxu1 %v2371_v44 }
 0x147   : > { %v643_v52 = vpop.f32.mrb[0].mxu0 }
 0x148   : > { %v645_v53 = vpop.f32.mrb[1].mxu0 }
 0x149   : > { %v647_v55 = vpop.f32.mrb[2].mxu0 }
 0x14a   : > { %v451_v56 = vpop.f32.mrb[0].mxu1  ;;  %v649_v58 = vpop.f32.mrb[3].mxu0 }
 0x14b   : > { %v2168_v59 = vadd.f32 %v643_v52, %v451_v56  ;;  %v453_v60 = vpop.f32.mrb[1].mxu1 }
 0x14c   : > { %v2169_v61 = vadd.f32 %v645_v53, %v453_v60  ;;  %v455_v62 = vpop.f32.mrb[2].mxu1 }
 0x14d   : > { %v682_v63 = vadd.f32 %v2168_v59, %v675_v54  ;;  %v2170_v0 = vadd.f32 %v647_v55, %v455_v62  ;;  %v457_v1 = vpop.f32.mrb[3].mxu1 }
 0x14e   : > { %v683_v2 = vadd.f32 %v2169_v61, %v679_v57  ;;  %v2171_v3 = vadd.f32 %v649_v58, %v457_v1  ;;  %v2372_v58 = vld [vmem:[%s3252_s3] ss:$8 sps:$4 sm:$0xff]  }
 0x14f   : > { %v684_v4 = vadd.f32 %v2170_v0, %v675_v54  ;;  %v653_v5 = vpop.f32.mrb[4].mxu0  ;;  %v690_v8 = vmax.f32 %v682_v63, 0.0  ;;  %v2377_v63 = vld [vmem:[%s3252_s3 + $0x314] ss:$8 sps:$4 sm:$0xff]  }
 0x150   : > { %v685_v6 = vadd.f32 %v2171_v3, %v679_v57  ;;  %v655_v7 = vpop.f32.mrb[5].mxu0  ;;  %v691_v11 = vmax.f32 %v683_v2, 0.0  ;;  %v2380_v0 = vld [vmem:[%s3252_s3 + $0x14] ss:$8 sps:$4 sm:$0xff]   ;;  %v2375_v3 = vld [vmem:[%s3252_s3 + $0x310] ss:$8 sps:$4 sm:$0xff]  }
 0x151   : > { %v692_v9 = vmax.f32 %v684_v4, 0.0  ;;  %v657_v10 = vpop.f32.mrb[6].mxu0 }
 0x152   : > { %v693_v12 = vmax.f32 %v685_v6, 0.0  ;;  %v461_v13 = vpop.f32.mrb[4].mxu1  ;;  %v659_v14 = vpop.f32.mrb[7].mxu0 }
 0x153   : > { %v2973_v15 = vpack.c.bf16 %v692_v9, %v690_v8  ;;  %v2172_v16 = vadd.f32 %v653_v5, %v461_v13  ;;  %v463_v17 = vpop.f32.mrb[5].mxu1  ;;  %v2383_v5 = vld [vmem:[%s3252_s3 + $0x324] ss:$8 sps:$4 sm:$0xff]   ;;  %v2378_v8 = vld [vmem:[%s3252_s3 + $0x10] ss:$8 sps:$4 sm:$0xff]  }
 0x154   : > { %v2975_v18 = vpack.c.bf16 %v693_v12, %v691_v11  ;;  %v2173_v19 = vadd.f32 %v655_v7, %v463_v17  ;;  %v465_v20 = vpop.f32.mrb[6].mxu1  ;;  %v2381_v12 = vld [vmem:[%s3252_s3 + $0x320] ss:$8 sps:$4 sm:$0xff]  }
 0x155   : > { %v686_v21 = vadd.f32 %v2172_v16, %v675_v54  ;;  %v2174_v22 = vadd.f32 %v657_v10, %v465_v20  ;;  %v467_v23 = vpop.f32.mrb[7].mxu1  ;;  %v737_v29 = vshll.u32 %v2973_v15, 16  ;;  %v1232_v50 = vrot.slane %v2973_v15, 1  ;;  %v2386_v10 = vld [vmem:[%s3252_s3 + $0x24] ss:$8 sps:$4 sm:$0xff]  }
 0x156   : > { %v687_v24 = vadd.f32 %v2173_v19, %v679_v57  ;;  %v2175_v25 = vadd.f32 %v659_v14, %v467_v23  ;;  %v749_v28 = vshll.u32 %v2975_v18, 16  ;;  %v1235_v38 = vrot.slane %v2975_v18, 1  ;;  %v2389_v16 = vld [vmem:[%s3252_s3 + $0x334] ss:$8 sps:$4 sm:$0xff]   ;;  %v2384_v17 = vld [vmem:[%s3252_s3 + $0x20] ss:$8 sps:$4 sm:$0xff]  }
 0x157   : > { %v688_v26 = vadd.f32 %v2174_v22, %v675_v54  ;;  %v694_v30 = vmax.f32 %v686_v21, 0.0  ;;  %v739_v40 = vrot.slane %v737_v29, 1  ;;  %v747_v43 = vshrl.u32 %v2975_v18, 16  ;;  %v2392_v20 = vld [vmem:[%s3252_s3 + $0x34] ss:$8 sps:$4 sm:$0xff]  }
 0x158   : > { %v689_v27 = vadd.f32 %v2175_v25, %v679_v57  ;;  %v695_v32 = vmax.f32 %v687_v24, 0.0  ;;  %v751_v37 = vrot.slane %v749_v28, 1  ;;  %v735_v52 = vshrl.u32 %v2973_v15, 16  ;;  %v2387_v22 = vld [vmem:[%s3252_s3 + $0x330] ss:$8 sps:$4 sm:$0xff]  }
 0x159   : > { %v696_v31 = vmax.f32 %v688_v26, 0.0  ;;  %v1506_v6 = vrot.slane %v747_v43, 1  ;;  %v1507_v7 = vrot.slane %v749_v28, 2  ;;  %v2395_v23 = vld [vmem:[%s3252_s3 + $0x344] ss:$8 sps:$4 sm:$0xff]  }
 0x15a   : > { %v697_v33 = vmax.f32 %v689_v27, 0.0  ;;  %v752_v55 = vor.u32 %v751_v37, %v747_v43  ;;  %v740_v59 = vor.u32 %v739_v40, %v735_v52  ;;  %v2390_v24 = vld [vmem:[%s3252_s3 + $0x30] ss:$8 sps:$4 sm:$0xff]   ;;  %v2393_v25 = vld [vmem:[%s3252_s3 + $0x340] ss:$8 sps:$4 sm:$0xff]  }
 0x15b   : > { %v2979_v34 = vpack.c.bf16 %v696_v31, %v694_v30  ;;  %v1508_v14 = vor.u32 %v1507_v7, %v1506_v6  ;;  %v2401_v26 = vld [vmem:[%s3252_s3 + $0x354] ss:$8 sps:$4 sm:$0xff]   ;;  %v2399_v28 = vld [vmem:[%s3252_s3 + $0x350] ss:$8 sps:$4 sm:$0xff]   ;;  %v2407_v30 = vld [vmem:[%s3252_s3 + $0x364] ss:$8 sps:$4 sm:$0xff]  }
 0x15c   : > { %v2981_v36 = vpack.c.bf16 %v697_v33, %v695_v32  ;;  %v2404_v27 = vld [vmem:[%s3252_s3 + $0x54] ss:$8 sps:$4 sm:$0xff]   ;;  %v2402_v31 = vld [vmem:[%s3252_s3 + $0x50] ss:$8 sps:$4 sm:$0xff]   ;;  %v2410_v32 = vld [vmem:[%s3252_s3 + $0x64] ss:$8 sps:$4 sm:$0xff]  }
 0x15d   : > { %v1233_v39 = vrot.slane %v2979_v34, 1  ;;  %v742_v41 = vshll.u32 %v2979_v34, 16  ;;  %v758_v9 = vshrl.u32 %v2979_v34, 16  ;;  %v2405_v33 = vld [vmem:[%s3252_s3 + $0x360] ss:$8 sps:$4 sm:$0xff]  }
 0x15e   : > { %v1236_v42 = vrot.slane %v2981_v36, 1  ;;  %v754_v44 = vshll.u32 %v2981_v36, 16  ;;  %v761_v46 = vshrl.u32 %v2981_v36, 16  ;;  %v2413_v37 = vld [vmem:[%s3252_s3 + $0x374] ss:$8 sps:$4 sm:$0xff]  }
 0x15f   : > { %v744_v53 = vrot.slane %v742_v41, 1  ;;  %v1234_v57 = vsel %vm470_vm0, %v1232_v50, %v1233_v39  ;;  %v2411_v40 = vld [vmem:[%s3252_s3 + $0x370] ss:$8 sps:$4 sm:$0xff]   ;;  %v2420_v50 = vld [vmem:[%s3252_s3 + $0x80] ss:$8 sps:$4 sm:$0xff]  }
 0x160   : > { %v1237_v54 = vsel %vm470_vm0, %v1235_v38, %v1236_v42  ;;  %v756_v56 = vrot.slane %v754_v44, 1  ;;  %v1509_v62 = vrot.slane %v761_v46, 1  ;;  %v1510_v1 = vrot.slane %v754_v44, 2  ;;  %v2408_v38 = vld [vmem:[%s3252_s3 + $0x60] ss:$8 sps:$4 sm:$0xff]  }
 0x161   : > { %1470 = vmatprep.mubr.bf16.mxu1 %v1237_v54  ;;  %v745_v2 = vsel %vm289_vm2, %v740_v59, %v744_v53  ;;  %v760_v13 = vor.u32 %v758_v9, %v744_v53  ;;  %v2414_v43 = vld [vmem:[%s3252_s3 + $0x70] ss:$8 sps:$4 sm:$0xff]   ;;  %v2422_v44 = vld [vmem:[%s3252_s3 + $0x84] ss:$8 sps:$4 sm:$0xff]   ;;  %v2428_v53 = vld [vmem:[%s3252_s3 + $0x94] ss:$8 sps:$4 sm:$0xff]  }
 0x162   : > { %1471 = vmatmul.mubr.bf16.vlgmr.msra.gmra.mrb[8].mxu1 %v1234_v57  ;;  %v757_v60 = vsel %vm289_vm2, %v752_v55, %v756_v56  ;;  %v763_v61 = vor.u32 %v761_v46, %v756_v56  ;;  %v3030_v11 = vor.u32 %v1510_v1, %v1509_v62  ;;  %v2417_v46 = vld [vmem:[%s3252_s3 + $0x380] ss:$8 sps:$4 sm:$0xff]   ;;  %v2423_v54 = vld [vmem:[%s3252_s3 + $0x390] ss:$8 sps:$4 sm:$0xff]   ;;  %v2431_v55 = vld [vmem:[%s3252_s3 + $0x3a4] ss:$8 sps:$4 sm:$0xff]  }
 0x163   : > { %1712 = vmatpush1.bf16.msra.mxu1 %v2369_v47  ;;  %994 = vmatprep.mubr.bf16.mxu0 %v757_v60  ;;  %v768_v21 = vsel %vm2742_vm4, %v760_v13, 0  ;;  %v2425_v47 = vld [vmem:[%s3252_s3 + $0x394] ss:$8 sps:$4 sm:$0xff]   ;;  %v2426_v56 = vld [vmem:[%s3252_s3 + $0x90] ss:$8 sps:$4 sm:$0xff]  }
 0x164   : > { %2123 = vmatprep.mubr.msk.bf16.mxu1 %vm470_vm0, %v1236_v42  ;;  %995 = vmatmul.mubr.bf16.vlgmr.msra.gmra.mrb[8].mxu0 %v745_v2  ;;  %v769_v4 = vsel %vm2742_vm4, %v763_v61, 0  ;;  %v1512_v19 = vsel %vm568_vm5, %v1508_v14, %v3030_v11  ;;  %v2419_v42 = vld [vmem:[%s3252_s3 + $0x384] ss:$8 sps:$4 sm:$0xff]   ;;  %v2437_v59 = vld [vmem:[%s3252_s3 + $0x3b4] ss:$8 sps:$4 sm:$0xff]   ;;  %v1502_v14 = vrot.slane %v758_v9, 1 }
 0x165   : > { %1176 = vmatpush1.bf16.msra.mxu0 %v2372_v58  ;;  %1004 = vmatprep.mubr.bf16.mxu0 %v769_v4  ;;  %v2434_v57 = vld [vmem:[%s3252_s3 + $0xa4] ss:$8 sps:$4 sm:$0xff]   ;;  %v2429_v58 = vld [vmem:[%s3252_s3 + $0x3a0] ss:$8 sps:$4 sm:$0xff]   ;;  %v2440_v61 = vld [vmem:[%s3252_s3 + $0xb4] ss:$8 sps:$4 sm:$0xff]  }
 0x166   : > { %1713 = vmatprep.subr.bf16.mxu1 %v2377_v63  ;;  %1177 = vmatprep.subr.bf16.mxu0 %v2380_v0  ;;  %v2432_v60 = vld [vmem:[%s3252_s3 + $0xa0] ss:$8 sps:$4 sm:$0xff]   ;;  %v2435_v62 = vld [vmem:[%s3252_s3 + $0x3b0] ss:$8 sps:$4 sm:$0xff]   ;;  %v2443_v63 = vld [vmem:[%s3252_s3 + $0x3c4] ss:$8 sps:$4 sm:$0xff]  }
 0x167   : > { %1714 = vmatpush1.bf16.msra.mxu1 %v2375_v3  ;;  %v2438_v0 = vld [vmem:[%s3252_s3 + $0xb0] ss:$8 sps:$4 sm:$0xff]   ;;  %v2446_v1 = vld [vmem:[%s3252_s3 + $0xc4] ss:$8 sps:$4 sm:$0xff]   ;;  %v2441_v2 = vld [vmem:[%s3252_s3 + $0x3c0] ss:$8 sps:$4 sm:$0xff]  }
 0x168   : > { %1715 = vmatprep.subr.bf16.mxu1 %v2383_v5  ;;  %v2449_v3 = vld [vmem:[%s3252_s3 + $0x3d4] ss:$8 sps:$4 sm:$0xff]   ;;  %v2444_v4 = vld [vmem:[%s3252_s3 + $0xc0] ss:$8 sps:$4 sm:$0xff]   ;;  %v2447_v6 = vld [vmem:[%s3252_s3 + $0x3d0] ss:$8 sps:$4 sm:$0xff]  }
 0x169   : > { %1178 = vmatpush1.bf16.msra.mxu0 %v2378_v8  ;;  %v2452_v5 = vld [vmem:[%s3252_s3 + $0xd4] ss:$8 sps:$4 sm:$0xff]   ;;  %v2455_v7 = vld [vmem:[%s3252_s3 + $0x3e4] ss:$8 sps:$4 sm:$0xff]   ;;  %v2450_v8 = vld [vmem:[%s3252_s3 + $0xd0] ss:$8 sps:$4 sm:$0xff]  }
 0x16a   : > { %2124 = vmatmul.mubr.msk.bf16.gmra.mrb[12].mxu1 %vm470_vm0, %v1233_v39  ;;  %1179 = vmatprep.subr.bf16.mxu0 %v2386_v10  ;;  %v2416_v39 = vld [vmem:[%s3252_s3 + $0x74] ss:$8 sps:$4 sm:$0xff]   ;;  %v2458_v10 = vld [vmem:[%s3252_s3 + $0xe4] ss:$8 sps:$4 sm:$0xff]   ;;  %v1499_v9 = vrot.slane %v735_v52, 1  ;;  %v1518_v52 = vsel %vm2766_vm6, %v3030_v11, 0 }
 0x16b   : > { %1716 = vmatpush1.bf16.msra.mxu1 %v2381_v12  ;;  %1743 = vmatprep.mubr.bf16.mxu1 %v1512_v19  ;;  %v2453_v12 = vld [vmem:[%s3252_s3 + $0x3e0] ss:$8 sps:$4 sm:$0xff]   ;;  %v2461_v13 = vld [vmem:[%s3252_s3 + $0x3f4] ss:$8 sps:$4 sm:$0xff]  }
 0x16c   : > { %1005 = vmatmul.mubr.bf16.gmra.mrb[12].mxu0 %v768_v21  ;;  %1717 = vmatprep.subr.bf16.mxu1 %v2389_v16  ;;  %v1503_v16 = vrot.slane %v742_v41, 2  ;;  %v2464_v19 = vld [vmem:[%s3252_s3 + $0xf4] ss:$8 sps:$4 sm:$0xff]   ;;  %v1500_v41 = vrot.slane %v737_v29, 2  ;;  %v1772_v11 = vld [vmem:[#allocation6] sm:$0x3] }
 0x16d   : > { %1180 = vmatpush1.bf16.msra.mxu0 %v2384_v17  ;;  %1207 = vmatprep.mubr.bf16.mxu0 %v2975_v18  ;;  %v2396_v18 = vld [vmem:[%s3252_s3 + $0x40] ss:$8 sps:$4 sm:$0xff]  }
 0x16e   : > { %1181 = vmatprep.subr.bf16.mxu0 %v2392_v20  ;;  %v2456_v17 = vld [vmem:[%s3252_s3 + $0xe0] ss:$8 sps:$4 sm:$0xff]   ;;  %v2459_v20 = vld [vmem:[%s3252_s3 + $0x3f0] ss:$8 sps:$4 sm:$0xff]   ;;  %v1504_v21 = vor.u32 %v1503_v16, %v1502_v14 }
 0x16f   : > { %1718 = vmatpush1.bf16.msra.mxu1 %v2387_v22  ;;  %v2462_v22 = vld [vmem:[%s3252_s3 + $0xf0] ss:$8 sps:$4 sm:$0xff]  }
 0x170   : > { %1719 = vmatprep.subr.bf16.mxu1 %v2395_v23  ;;  %v1501_v23 = vor.u32 %v1500_v41, %v1499_v9  ;;  %v1517_v29 = vsel %vm2766_vm6, %v1504_v21, 0  ;;  %v2571_v41 = vmov 0.0|0.0  }
 0x171   : > { %1182 = vmatpush1.bf16.msra.mxu0 %v2390_v24  ;;  %1895 = vst.msk [vmem:[%s3227_s6 + $0x18] sm:$0xff] %vm3229_vm9, %v2571_v41 }
 0x172   : > { %1183 = vmatprep.subr.bf16.mxu0 %v2398_v35  ;;  %v1505_v24 = vsel %vm568_vm5, %v1501_v23, %v1504_v21 }
 0x173   : > { %1720 = vmatpush1.bf16.msra.mxu1 %v2393_v25 }
 0x174   : > { %1721 = vmatprep.subr.bf16.mxu1 %v2401_v26 }
 0x175   : > { %1184 = vmatpush1.bf16.msra.mxu0 %v2396_v18 }
 0x176   : > { %1185 = vmatprep.subr.bf16.mxu0 %v2404_v27 }
 0x177   : > { %1722 = vmatpush1.bf16.msra.mxu1 %v2399_v28 }
 0x178   : > { %1723 = vmatprep.subr.bf16.mxu1 %v2407_v30 }
 0x179   : > { %1186 = vmatpush1.bf16.msra.mxu0 %v2402_v31 }
 0x17a   : > { %1187 = vmatprep.subr.bf16.mxu0 %v2410_v32 }
 0x17b   : > { %1724 = vmatpush1.bf16.msra.mxu1 %v2405_v33 }
 0x17c   : > { %1725 = vmatprep.subr.bf16.mxu1 %v2413_v37 }
 0x17d   : > { %1188 = vmatpush1.bf16.msra.mxu0 %v2408_v38 }
 0x17e   : > { %1189 = vmatprep.subr.bf16.mxu0 %v2416_v39 }
 0x17f   : > { %1726 = vmatpush1.bf16.msra.mxu1 %v2411_v40 }
 0x180   : > { %1727 = vmatprep.subr.bf16.mxu1 %v2419_v42 }
 0x181   : > { %1190 = vmatpush1.bf16.msra.mxu0 %v2414_v43 }
 0x182   : > { %1191 = vmatprep.subr.bf16.mxu0 %v2422_v44 }
 0x183   : > { %1728 = vmatpush1.bf16.msra.mxu1 %v2417_v46 }
 0x184   : > { %1729 = vmatprep.subr.bf16.mxu1 %v2425_v47 }
 0x185   : > { %1192 = vmatpush1.bf16.msra.mxu0 %v2420_v50 }
 0x186   : > { %1193 = vmatprep.subr.bf16.mxu0 %v2428_v53 }
 0x187   : > { %1730 = vmatpush1.bf16.msra.mxu1 %v2423_v54 }
 0x188   : > { %1731 = vmatprep.subr.bf16.mxu1 %v2431_v55 }
 0x189   : > { %1194 = vmatpush1.bf16.msra.mxu0 %v2426_v56 }
 0x18a   : > { %1195 = vmatprep.subr.bf16.mxu0 %v2434_v57 }
 0x18b   : > { %1732 = vmatpush1.bf16.msra.mxu1 %v2429_v58 }
 0x18c   : > { %1733 = vmatprep.subr.bf16.mxu1 %v2437_v59 }
 0x18d   : > { %1196 = vmatpush1.bf16.msra.mxu0 %v2432_v60 }
 0x18e   : > { %1197 = vmatprep.subr.bf16.mxu0 %v2440_v61 }
 0x18f   : > { %1734 = vmatpush1.bf16.msra.mxu1 %v2435_v62  ;;  %v1803_v62 = vadd.s32 16, %v2965_v48 }
 0x190   : > { %1735 = vmatprep.subr.bf16.mxu1 %v2443_v63 }
 0x191   : > { %1198 = vmatpush1.bf16.msra.mxu0 %v2438_v0 }
 0x192   : > { %1199 = vmatprep.subr.bf16.mxu0 %v2446_v1 }
 0x193   : > { %1736 = vmatpush1.bf16.msra.mxu1 %v2441_v2 }
 0x194   : > { %1737 = vmatprep.subr.bf16.mxu1 %v2449_v3 }
 0x195   : > { %1200 = vmatpush1.bf16.msra.mxu0 %v2444_v4 }
 0x196   : > { %1201 = vmatprep.subr.bf16.mxu0 %v2452_v5 }
 0x197   : > { %1738 = vmatpush1.bf16.msra.mxu1 %v2447_v6 }
 0x198   : > { %1739 = vmatprep.subr.bf16.mxu1 %v2455_v7 }
 0x199   : > { %1202 = vmatpush1.bf16.msra.mxu0 %v2450_v8  ;;  %v1823_v8 = vand.u32 31, %v1803_v62 }
 0x19a   : > { %1203 = vmatprep.subr.bf16.mxu0 %v2458_v10 }
 0x19b   : > { %1740 = vmatpush1.bf16.msra.mxu1 %v2453_v12  ;;  %vm1855_vm10 = vcmp.lt.s32.totalorder %v1823_v8, 22 }
 0x19c   : > { %1741 = vmatprep.subr.bf16.mxu1 %v2461_v13 }
 0x19d   : > { %1204 = vmatpush1.bf16.msra.mxu0 %v2456_v17 }
 0x19e   : > { %1205 = vmatprep.subr.bf16.mxu0 %v2464_v19 }
 0x19f   : > { %1742 = vmatpush1.bf16.msra.mxu1 %v2459_v20 }
 0x1a1   : > { %1206 = vmatpush1.bf16.msra.mxu0 %v2462_v22 }
 0x1a2   : > { %1744 = vmatmul.mubr.bf16.vlgmr.msra.gmra.mrb[8].mxu1 %v1505_v24 }
 0x1a3   : > { %1753 = vmatprep.mubr.bf16.mxu1 %v1518_v52 }
 0x1a4   : > { %1208 = vmatmul.mubr.bf16.vlgmr.msra.gmra.mrb[8].mxu0 %v2973_v15 }
 0x1a5   : > { %1217 = vmatprep.mubr.bf16.mxu0 %v2981_v36  ;;  %v1777_v36 = vrot.slane %v1772_v11, %v674_v49 }
 0x1aa   : > { %1754 = vmatmul.mubr.bf16.gmra.mrb[16].mxu1 %v1517_v29 }
 0x1ac   : > { %1218 = vmatmul.mubr.bf16.gmra.mrb[16].mxu0 %v2979_v34  ;;  %v1781_v34 = vrot.slane %v1772_v11, %v678_v51 }
 0x23d   : > { %v1482_v35 = vpop.f32.mrb[12].mxu1 }
 0x23e   : > { %v1484_v25 = vpop.f32.mrb[13].mxu1 }
 0x23f   : > { %v1006_v26 = vpop.f32.mrb[12].mxu0  ;;  %v1486_v18 = vpop.f32.mrb[14].mxu1 }
 0x240   : > { %v1008_v27 = vpop.f32.mrb[13].mxu0  ;;  %v1488_v28 = vpop.f32.mrb[15].mxu1 }
 0x241   : > { %v1010_v30 = vpop.f32.mrb[14].mxu0 }
 0x242   : > { %v1012_v31 = vpop.f32.mrb[15].mxu0 }
 0x275   : > { %v1745_v32 = vpop.f32.mrb[8].mxu1 }
 0x276   : > { %v1747_v15 = vpop.f32.mrb[9].mxu1 }
 0x277   : > { %v1209_v45 = vpop.f32.mrb[8].mxu0  ;;  %v1749_v33 = vpop.f32.mrb[10].mxu1 }
 0x278   : > { %v2176_v37 = vadd.f32 %v1745_v32, %v1209_v45  ;;  %v1211_v38 = vpop.f32.mrb[9].mxu0  ;;  %v1751_v39 = vpop.f32.mrb[11].mxu1 }
 0x279   : > { %v2177_v40 = vadd.f32 %v1747_v15, %v1211_v38  ;;  %v1213_v42 = vpop.f32.mrb[10].mxu0 }
 0x27a   : > { %v1784_v43 = vadd.f32 %v2176_v37, %v1777_v36  ;;  %v2178_v44 = vadd.f32 %v1749_v33, %v1213_v42  ;;  %v1215_v46 = vpop.f32.mrb[11].mxu0 }
 0x27b   : > { %v1785_v47 = vadd.f32 %v2177_v40, %v1781_v34  ;;  %v2179_v50 = vadd.f32 %v1751_v39, %v1215_v46 }
 0x27c   : > { %v1792_v53 = vmax.f32 %v1784_v43, 0.0  ;;  %v1786_v49 = vadd.f32 %v2178_v44, %v1777_v36 }
 0x27d   : > { %v1793_v54 = vmax.f32 %v1785_v47, 0.0  ;;  %v1787_v55 = vadd.f32 %v2179_v50, %v1781_v34  ;;  %v1755_v56 = vpop.f32.mrb[16].mxu1 }
 0x27e   : > { %v1794_v57 = vmax.f32 %v1786_v49, 0.0  ;;  %v1757_v58 = vpop.f32.mrb[17].mxu1 }
 0x27f   : > { %v2164_v59 = vpack.c.bf16 %v1793_v54, %v1792_v53  ;;  %v1795_v60 = vmax.f32 %v1787_v55, 0.0  ;;  %v1219_v61 = vpop.f32.mrb[16].mxu0  ;;  %v1759_v63 = vpop.f32.mrb[18].mxu1 }
 0x280   : > { %v1220_v0 = vadd.f32 %v1219_v61, %v1006_v26  ;;  %v1221_v1 = vpop.f32.mrb[17].mxu0  ;;  %v1761_v2 = vpop.f32.mrb[19].mxu1 }
 0x281   : > { %1892 = vst.msk [vmem:[%s3227_s6] sm:$0xff] %vm3229_vm9, %v2164_v59  ;;  %v2165_v3 = vpack.c.bf16 %v1795_v60, %v1794_v57  ;;  %v1222_v4 = vadd.f32 %v1221_v1, %v1008_v27  ;;  %v1223_v5 = vpop.f32.mrb[18].mxu0 }
 0x282   : > { %v1495_v6 = vadd.f32 %v1482_v35, %v1220_v0  ;;  %v1225_v7 = vpop.f32.mrb[19].mxu0 }
 0x283   : > { %1893 = vst.msk [vmem:[%s3227_s6 + $0x8] sm:$0xff] %vm3229_vm9, %v2165_v3  ;;  %v1496_v10 = vadd.f32 %v1484_v25, %v1222_v4 }
 0x284   : > { %v1768_v48 = vadd.f32 %v1755_v56, %v1495_v6 }
 0x285   : > { %v1769_v12 = vadd.f32 %v1757_v58, %v1496_v10 }
 0x286   : > { %v1788_v13 = vadd.f32 %v1777_v36, %v1768_v48 }
 0x287   : > { %v1789_v14 = vadd.f32 %v1781_v34, %v1769_v12 }
 0x288   : > { %v1796_v16 = vmax.f32 %v1788_v13, 0.0 }
 0x289   : > { %v1797_v17 = vmax.f32 %v1789_v14, 0.0 }
 0x28a   : > { %v1861_v19 = vsel %vm1855_vm10, %v1796_v16, 0.0 }
 0x28b   : > { %v1862_v20 = vsel %vm1855_vm10, %v1797_v17, 0.0 }
 0x28c   : > { %v2166_v9 = vpack.c.bf16 %v1862_v20, %v1861_v19 }
 0x28e   : > { %1894 = vst.msk [vmem:[%s3227_s6 + $0x10] sm:$0xff] %vm3229_vm9, %v2166_v9 }
 0x28f PF: > { %s17_s18 = sadd.s32 1, %s2563_s18  }
 0x290   : > { %p14_p7 = scmp.ge.s32.totalorder %s17_s18, 4  }
 0x292   :  { %16 = sbr.rel (!%p14_p7) target bundleno = 2 (0x2), region = 83 }
 0x299   :  { %1920 = vsyncpa [#allocation3], 1 }
 0x29a   :  { %1922 = vsyncpa [#allocation3 + $0x1], 1 }
 0x29b   :  { %1923 = vsyncpa [#allocation5], 1 }

// kernel: mnist_forward.3
= control target key start
LH: loop header
LB: loop body
LE: loop exit
PB: predicated region body
PF: predicated region fallthrough
CT: control target
= control target key end

     0   :  { %10 = vsyncpa [#allocation3], 0  ;;  %s10015_s0 = inlined_call_operand.vmem [shape: bf16[2,7040], index: 0, kind: input, shape index: {}]   ;;  %s10016_s1 = inlined_call_operand.hbm [shape: bf16[7040,256], index: 1, kind: input, shape index: {}]   ;;  %s10017_s2 = inlined_call_operand.hbm [shape: f32[1,256], index: 2, kind: input, shape index: {}]   ;;  %s10018_s3 = inlined_call_operand.hbm [shape: bf16[256,128], index: 3, kind: input, shape index: {}]   ;;  %s10019_s4 = inlined_call_operand.hbm [shape: f32[1,128], index: 4, kind: input, shape index: {}]   ;;  %s10020_s5 = inlined_call_operand.hbm [shape: f32[2,128], index: 5, kind: output, shape index: {}]  }
   0x1   :  { %11 = vsyncpa [#allocation6], 0 }
   0x2   :  { %12 = vsyncpa [#allocation9], 0 }
   0x3   :  { %13 = vsyncpa [#allocation4], 0  ;;  %s9620_s18 = smov [#allocation5]   ;;  %s9621_s20 = smov [#allocation2]  }
   0x4   :  { %s34_s19 = sshll.u32 %s9620_s18, 4  ;;  %s21_s21 = sshll.u32 %s9621_s20, 4  ;;  %s35_s19 = int_to_ptr.vmem [resolvable:$true] %s34_s19  ;;  %s9661_s21 = int_to_ptr.vmem [resolvable:$true] %s21_s21 }
   0x5   :  { %s9502_s24 = scalar_lea.hbm %s10017_s2, 32 }
   0x6   :  { %p9503_p0 = scmp.ne.s32.totalorder %s10017_s2, %s9502_s24  ;;  %p9506_p1 = scmp.lt.u32.totalorder %s9502_s24, %s10017_s2 }
   0x8   :  { %p9508_p2 = pnand %p9506_p1, %p9503_p0 }
   0xa   :  { %9511 = shalt.err (!%p9508_p2)
}
   0xb   :  { %s9512_s29 = scalar_lea.vmem %s35_s19, 32  ;;  %p9517_p4 = scmp.lt.s32.totalorder %s35_s19, %s35_s19 }
   0xc   :  { %p9513_p3 = scmp.ne.s32.totalorder %s35_s19, %s9512_s29  ;;  %p9518_p5 = scmp.lt.s32.totalorder %s9512_s29, %s9512_s29 }
   0xe   :  { %p9519_p6 = por %p9518_p5, %p9517_p4 }
  0x10   :  { %p9520_p7 = pnand %p9519_p6, %p9513_p3 }
  0x12   :  { %9523 = shalt.err (!%p9520_p7)
}
  0x13   :  { %37 = dma.hbm_to_vmem [thread:$0]  %s10017_s2, 32, %s35_s19, [#allocation6]  }
  0x14   :  { %s9524_s9 = scalar_lea.hbm %s10016_s1, 112640 }
  0x15   :  { %p9525_p8 = scmp.ne.s32.totalorder %s10016_s1, %s9524_s9  ;;  %p9528_p9 = scmp.lt.u32.totalorder %s9524_s9, %s10016_s1 }
  0x17   :  { %p9530_p10 = pnand %p9528_p9, %p9525_p8 }
  0x19   :  { %9533 = shalt.err (!%p9530_p10)
}
  0x1a   :  { %s9534_s14 = scalar_lea.vmem %s9661_s21, 112640  ;;  %p9539_p12 = scmp.lt.s32.totalorder %s9661_s21, %s9661_s21 }
  0x1b   :  { %p9535_p11 = scmp.ne.s32.totalorder %s9661_s21, %s9534_s14  ;;  %p9540_p13 = scmp.lt.s32.totalorder %s9534_s14, %s9534_s14 }
  0x1d   :  { %p9541_p0 = por %p9540_p13, %p9539_p12 }
  0x1f   :  { %p9542_p1 = pnand %p9541_p0, %p9535_p11 }
  0x21   :  { %9545 = shalt.err (!%p9542_p1)
}
  0x22   :  { %s9622_s2 = smov 128   ;;  %s9623_s15 = smov 8  }
  0x23   :  { %27 = dma.hbm_to_vmem [thread:$0]  %s10016_s1, 112640, %s9661_s21, [#allocation3], %s9622_s2, %s9622_s2, %s9623_s15  }
  0x24   :  { %s9624_s18 = smov [#allocation7]   ;;  %s9546_s23 = scalar_lea.hbm %s10018_s3, 2048 }
  0x25   :  { %s43_s19 = sshll.u32 %s9624_s18, 4  ;;  %p9547_p2 = scmp.ne.s32.totalorder %s10018_s3, %s9546_s23  ;;  %s44_s19 = int_to_ptr.vmem [resolvable:$true] %s43_s19 }
  0x26   :  { %p9550_p3 = scmp.lt.u32.totalorder %s9546_s23, %s10018_s3 }
  0x28   :  { %p9552_p4 = pnand %p9550_p3, %p9547_p2 }
  0x2a   :  { %9555 = shalt.err (!%p9552_p4)
}
  0x2b   :  { %s9556_s28 = scalar_lea.vmem %s44_s19, 2048  ;;  %p9561_p6 = scmp.lt.s32.totalorder %s44_s19, %s44_s19 }
  0x2c   :  { %p9557_p5 = scmp.ne.s32.totalorder %s44_s19, %s9556_s28  ;;  %p9562_p7 = scmp.lt.s32.totalorder %s9556_s28, %s9556_s28 }
  0x2e   :  { %p9563_p8 = por %p9562_p7, %p9561_p6 }
  0x30   :  { %p9564_p9 = pnand %p9563_p8, %p9557_p5 }
  0x32   :  { %9567 = shalt.err (!%p9564_p9)
}
  0x33   :  { %s9625_s1 = smov 64   ;;  %s9626_s21 = smov 4  }
  0x34   :  { %49 = dma.hbm_to_vmem [thread:$0]  %s10018_s3, 2048, %s44_s19, [#allocation6], %s9625_s1, %s9625_s1, %s9626_s21  }
  0x35   :  { %s9627_s6 = smov [#allocation8]   ;;  %s9568_s10 = scalar_lea.hbm %s10019_s4, 16 }
  0x36   :  { %s56_s7 = sshll.u32 %s9627_s6, 4  ;;  %p9569_p10 = scmp.ne.s32.totalorder %s10019_s4, %s9568_s10  ;;  %s57_s7 = int_to_ptr.vmem [resolvable:$true] %s56_s7 }
  0x37   :  { %p9572_p11 = scmp.lt.u32.totalorder %s9568_s10, %s10019_s4 }
  0x39   :  { %p9574_p12 = pnand %p9572_p11, %p9569_p10 }
  0x3b   :  { %9577 = shalt.err (!%p9574_p12)
}
  0x3c   :  { %s9578_s2 = scalar_lea.vmem %s57_s7, 16  ;;  %s9582_s3 = scalar_lea.vmem %s57_s7, 32 }
  0x3d   :  { %p9579_p13 = scmp.ne.s32.totalorder %s57_s7, %s9578_s2  ;;  %p9583_p0 = scmp.lt.s32.totalorder %s57_s7, %s57_s7 }
  0x3e   :  { %p9584_p1 = scmp.lt.s32.totalorder %s9582_s3, %s9578_s2 }
  0x40   :  { %p9585_p2 = por %p9584_p1, %p9583_p0 }
  0x42   :  { %p9586_p3 = pnand %p9585_p2, %p9579_p13 }
  0x44   :  { %9589 = shalt.err (!%p9586_p3)
}
  0x45   :  { %59 = dma.hbm_to_vmem [thread:$0]  %s10019_s4, 16, %s57_s7, [#allocation9]  }
  0x46   :  { %9612 = dma.done.wait [#allocation3], 112640  }
  0x47   :  { %9613 = vsyncadd [#allocation3], 4294854656 }
  0x48   :  { %9614 = dma.done.wait [#allocation6], 2080  }
  0x49   :  { %9615 = vsyncadd [#allocation6], 4294965216 }
  0x4a   :  { %9616 = dma.done.wait [#allocation9], 16  }
  0x4b   :  { %9617 = vsyncadd [#allocation9], 4294967280  ;;  %v8157_v0 = vld [vmem:[#allocation2 + $0x4] ss:$8 sps:$4 sm:$0xff]   ;;  %v8161_v2 = vld [vmem:[#allocation2] ss:$8 sps:$4 sm:$0xff]   ;;  %v962_v38 = vlaneseq }
  0x4c   :  { %v8159_v1 = vld [vmem:[#allocation2 + $0xd04] ss:$8 sps:$4 sm:$0xff]   ;;  %5776 = vmatprep.subr.bf16.mxu1 %v8157_v0  ;;  %v8162_v3 = vld [vmem:[#allocation2 + $0xd00] ss:$8 sps:$4 sm:$0xff]   ;;  %v8163_v4 = vld [vmem:[#allocation2 + $0x14] ss:$8 sps:$4 sm:$0xff]  }
  0x4d   :  { %6309 = vmatprep.subr.bf16.mxu0 %v8159_v1  ;;  %5777 = vmatpush1.bf16.msra.mxu1 %v8161_v2  ;;  %v8165_v5 = vld [vmem:[#allocation2 + $0xd14] ss:$8 sps:$4 sm:$0xff]   ;;  %v8167_v6 = vld [vmem:[#allocation2 + $0x10] ss:$8 sps:$4 sm:$0xff]   ;;  %v8169_v8 = vld [vmem:[#allocation2 + $0x24] ss:$8 sps:$4 sm:$0xff]  }
  0x4e   :  { %6310 = vmatpush1.bf16.msra.mxu0 %v8162_v3  ;;  %5778 = vmatprep.subr.bf16.mxu1 %v8163_v4  ;;  %v8168_v7 = vld [vmem:[#allocation2 + $0xd10] ss:$8 sps:$4 sm:$0xff]   ;;  %v8171_v9 = vld [vmem:[#allocation2 + $0xd24] ss:$8 sps:$4 sm:$0xff]   ;;  %v8173_v10 = vld [vmem:[#allocation2 + $0x20] ss:$8 sps:$4 sm:$0xff]  }
  0x4f   :  { %6311 = vmatprep.subr.bf16.mxu0 %v8165_v5  ;;  %v8174_v11 = vld [vmem:[#allocation2 + $0xd20] ss:$8 sps:$4 sm:$0xff]   ;;  %v8175_v12 = vld [vmem:[#allocation2 + $0x34] ss:$8 sps:$4 sm:$0xff]   ;;  %v8179_v14 = vld [vmem:[#allocation2 + $0x30] ss:$8 sps:$4 sm:$0xff]  }
  0x50   :  { %v8177_v13 = vld [vmem:[#allocation2 + $0xd34] ss:$8 sps:$4 sm:$0xff]   ;;  %v8180_v15 = vld [vmem:[#allocation2 + $0xd30] ss:$8 sps:$4 sm:$0xff]   ;;  %v8181_v16 = vld [vmem:[#allocation2 + $0x44] ss:$8 sps:$4 sm:$0xff]  }
  0x51   :  { %5779 = vmatpush1.bf16.msra.mxu1 %v8167_v6  ;;  %v8183_v17 = vld [vmem:[#allocation2 + $0xd44] ss:$8 sps:$4 sm:$0xff]   ;;  %v8185_v18 = vld [vmem:[#allocation2 + $0x40] ss:$8 sps:$4 sm:$0xff]   ;;  %v8187_v20 = vld [vmem:[#allocation2 + $0x54] ss:$8 sps:$4 sm:$0xff]  }
  0x52   :  { %6312 = vmatpush1.bf16.msra.mxu0 %v8168_v7  ;;  %5780 = vmatprep.subr.bf16.mxu1 %v8169_v8  ;;  %v8186_v19 = vld [vmem:[#allocation2 + $0xd40] ss:$8 sps:$4 sm:$0xff]   ;;  %v8189_v21 = vld [vmem:[#allocation2 + $0xd54] ss:$8 sps:$4 sm:$0xff]   ;;  %v8191_v22 = vld [vmem:[#allocation2 + $0x50] ss:$8 sps:$4 sm:$0xff]  }
  0x53   :  { %6313 = vmatprep.subr.bf16.mxu0 %v8171_v9  ;;  %v8192_v23 = vld [vmem:[#allocation2 + $0xd50] ss:$8 sps:$4 sm:$0xff]   ;;  %v8193_v24 = vld [vmem:[#allocation2 + $0x64] ss:$8 sps:$4 sm:$0xff]   ;;  %v8197_v26 = vld [vmem:[#allocation2 + $0x60] ss:$8 sps:$4 sm:$0xff]  }
  0x54   :  { %v8195_v25 = vld [vmem:[#allocation2 + $0xd64] ss:$8 sps:$4 sm:$0xff]   ;;  %v8198_v27 = vld [vmem:[#allocation2 + $0xd60] ss:$8 sps:$4 sm:$0xff]   ;;  %v8199_v28 = vld [vmem:[#allocation2 + $0x74] ss:$8 sps:$4 sm:$0xff]  }
  0x55   :  { %5781 = vmatpush1.bf16.msra.mxu1 %v8173_v10  ;;  %v8201_v29 = vld [vmem:[#allocation2 + $0xd74] ss:$8 sps:$4 sm:$0xff]   ;;  %v8203_v30 = vld [vmem:[#allocation2 + $0x70] ss:$8 sps:$4 sm:$0xff]   ;;  %v8205_v32 = vld [vmem:[#allocation2 + $0x84] ss:$8 sps:$4 sm:$0xff]  }
  0x56   :  { %6314 = vmatpush1.bf16.msra.mxu0 %v8174_v11  ;;  %5782 = vmatprep.subr.bf16.mxu1 %v8175_v12  ;;  %v8204_v31 = vld [vmem:[#allocation2 + $0xd70] ss:$8 sps:$4 sm:$0xff]   ;;  %v8207_v33 = vld [vmem:[#allocation2 + $0xd84] ss:$8 sps:$4 sm:$0xff]   ;;  %v8209_v34 = vld [vmem:[#allocation2 + $0x80] ss:$8 sps:$4 sm:$0xff]  }
  0x57   :  { %6315 = vmatprep.subr.bf16.mxu0 %v8177_v13  ;;  %v8210_v35 = vld [vmem:[#allocation2 + $0xd80] ss:$8 sps:$4 sm:$0xff]   ;;  %v8211_v36 = vld [vmem:[#allocation2 + $0x94] ss:$8 sps:$4 sm:$0xff]   ;;  %v9628_v39 = vmov 1966171168  }
  0x58   :  { %v8213_v37 = vld [vmem:[#allocation2 + $0xd94] ss:$8 sps:$4 sm:$0xff]   ;;  %v981_v40 = vunpack.c.l.s4 %v9628_v39  ;;  %v8215_v41 = vld [vmem:[#allocation2 + $0x90] ss:$8 sps:$4 sm:$0xff]   ;;  %v8217_v43 = vld [vmem:[#allocation2 + $0xa4] ss:$8 sps:$4 sm:$0xff]  }
  0x59   :  { %5783 = vmatpush1.bf16.msra.mxu1 %v8179_v14  ;;  %v8216_v42 = vld [vmem:[#allocation2 + $0xd90] ss:$8 sps:$4 sm:$0xff]   ;;  %v8219_v44 = vld [vmem:[#allocation2 + $0xda4] ss:$8 sps:$4 sm:$0xff]   ;;  %v9716_v45 = vshrl.u32 %v962_v38, 7 }
  0x5a   :  { %6316 = vmatpush1.bf16.msra.mxu0 %v8180_v15  ;;  %5784 = vmatprep.subr.bf16.mxu1 %v8181_v16  ;;  %v982_v46 = vunpack.c.0.s8 %v981_v40  ;;  %v8221_v47 = vld [vmem:[#allocation2 + $0xa0] ss:$8 sps:$4 sm:$0xff]   ;;  %v8223_v49 = vld [vmem:[#allocation2 + $0xb4] ss:$8 sps:$4 sm:$0xff]   ;;  %v8227_v53 = vld [vmem:[#allocation2 + $0xb0] ss:$8 sps:$4 sm:$0xff]  }
  0x5b   :  { %6317 = vmatprep.subr.bf16.mxu0 %v8183_v17  ;;  %v8222_v48 = vld [vmem:[#allocation2 + $0xda0] ss:$8 sps:$4 sm:$0xff]   ;;  %v8225_v50 = vld [vmem:[#allocation2 + $0xdb4] ss:$8 sps:$4 sm:$0xff]   ;;  %v8228_v55 = vld [vmem:[#allocation2 + $0xdb0] ss:$8 sps:$4 sm:$0xff]  }
  0x5c   :  { %v9719_v51 = vsub.s32 %v982_v46, %v9716_v45  ;;  %v9724_v52 = vld [vmem:[%s10015_s0] sm:$0xff]  ;;  %v76_v56 = vld [vmem:[%s10015_s0 + $0x18] sm:$0xff] }
  0x5d   :  { %5785 = vmatpush1.bf16.msra.mxu1 %v8185_v18  ;;  %v8229_v57 = vld [vmem:[#allocation2 + $0xc4] ss:$8 sps:$4 sm:$0xff]   ;;  %v8233_v63 = vld [vmem:[#allocation2 + $0xc0] ss:$8 sps:$4 sm:$0xff]   ;;  %v8235_v1 = vld [vmem:[#allocation2 + $0xd4] ss:$8 sps:$4 sm:$0xff]   ;;  %v1126_v9 = vcombine.high %v76_v56, %v76_v56 }
  0x5e   :  { %6318 = vmatpush1.bf16.msra.mxu0 %v8186_v19  ;;  %5786 = vmatprep.subr.bf16.mxu1 %v8187_v20  ;;  %v986_v54 = vrot.slane %v9724_v52, %v9719_v51  ;;  %v8231_v58 = vld [vmem:[#allocation2 + $0xdc4] ss:$8 sps:$4 sm:$0xff]   ;;  %v1133_v60 = vrot.slane %v76_v56, %v9719_v51  ;;  %v8234_v0 = vld [vmem:[#allocation2 + $0xdc0] ss:$8 sps:$4 sm:$0xff]   ;;  %v8237_v2 = vld [vmem:[#allocation2 + $0xdd4] ss:$8 sps:$4 sm:$0xff]  }
  0x5f   :  { %6319 = vmatprep.subr.bf16.mxu0 %v8189_v21  ;;  %v8239_v5 = vld [vmem:[#allocation2 + $0xd0] ss:$8 sps:$4 sm:$0xff]   ;;  %v8241_v7 = vld [vmem:[#allocation2 + $0xe4] ss:$8 sps:$4 sm:$0xff]   ;;  %v8245_v10 = vld [vmem:[#allocation2 + $0xe0] ss:$8 sps:$4 sm:$0xff]   ;;  %v9742_v14 = vrot.slane %v1126_v9, %v9719_v51 }
  0x60   :  { %v994_v59 = vcombine.high %v986_v54, %v986_v54  ;;  %v1141_v62 = vcombine.high %v1133_v60, %v1133_v60  ;;  %v8240_v6 = vld [vmem:[#allocation2 + $0xdd0] ss:$8 sps:$4 sm:$0xff]   ;;  %v8243_v8 = vld [vmem:[#allocation2 + $0xde4] ss:$8 sps:$4 sm:$0xff]   ;;  %v8246_v11 = vld [vmem:[#allocation2 + $0xde0] ss:$8 sps:$4 sm:$0xff]   ;;  %v9745_v15 = vrot.slane %v1133_v60, %v9719_v51  ;;  %v9750_v21 = vrot.slane %v986_v54, %v9719_v51 }
  0x61   :  { %5787 = vmatpush1.bf16.msra.mxu1 %v8191_v22  ;;  %v8247_v12 = vld [vmem:[#allocation2 + $0xf4] ss:$8 sps:$4 sm:$0xff]   ;;  %v8251_v16 = vld [vmem:[#allocation2 + $0xf0] ss:$8 sps:$4 sm:$0xff]   ;;  %v8256_v18 = vld [vmem:[#allocation2 + $0x104] ss:$8 sps:$4 sm:$0xff]   ;;  %v1142_v20 = vcombine.high %v9742_v14, %v9742_v14 }
  0x62   :  { %6320 = vmatpush1.bf16.msra.mxu0 %v8192_v23  ;;  %5788 = vmatprep.subr.bf16.mxu1 %v8193_v24  ;;  %v9733_v61 = vrot.slane %v994_v59, %v9719_v51  ;;  %v9736_v3 = vrot.slane %v1141_v62, %v9719_v51  ;;  %v8249_v13 = vld [vmem:[#allocation2 + $0xdf4] ss:$8 sps:$4 sm:$0xff]   ;;  %v8252_v17 = vld [vmem:[#allocation2 + $0xdf0] ss:$8 sps:$4 sm:$0xff]   ;;  %v8260_v19 = vld [vmem:[#allocation2 + $0xe04] ss:$8 sps:$4 sm:$0xff]   ;;  %v1171_v22 = vcombine.high %v9745_v15, %v9745_v15 }
  0x63   :  { %6321 = vmatprep.subr.bf16.mxu0 %v8195_v25  ;;  %v8254_v23 = vld [vmem:[#allocation2 + $0x100] ss:$8 sps:$4 sm:$0xff]   ;;  %v8263_v25 = vld [vmem:[#allocation2 + $0x114] ss:$8 sps:$4 sm:$0xff]   ;;  %v8276_v38 = vld [vmem:[#allocation2 + $0xe30] ss:$8 sps:$4 sm:$0xff]  }
  0x64   :  { %5808 = vmatprep.mubr.bf16.mxu1 %v9733_v61  ;;  %v1173_v4 = vcombine.high %v9736_v3, %v9736_v3  ;;  %v8258_v24 = vld [vmem:[#allocation2 + $0xe00] ss:$8 sps:$4 sm:$0xff]   ;;  %v8281_v39 = vld [vmem:[#allocation2 + $0x144] ss:$8 sps:$4 sm:$0xff]   ;;  %v8285_v46 = vld [vmem:[#allocation2 + $0x150] ss:$8 sps:$4 sm:$0xff]  }
  0x65   :  { %5789 = vmatpush1.bf16.msra.mxu1 %v8197_v26  ;;  %v8266_v26 = vld [vmem:[#allocation2 + $0xe14] ss:$8 sps:$4 sm:$0xff]   ;;  %v8284_v40 = vld [vmem:[#allocation2 + $0xe44] ss:$8 sps:$4 sm:$0xff]   ;;  %v8297_v56 = vld [vmem:[#allocation2 + $0x170] ss:$8 sps:$4 sm:$0xff]  }
  0x66   :  { %6322 = vmatpush1.bf16.msra.mxu0 %v8198_v27  ;;  %5790 = vmatprep.subr.bf16.mxu1 %v8199_v28  ;;  %v1026_v27 = vcombine.high %v9733_v61, %v9733_v61  ;;  %v9757_v28 = vrot.slane %v1142_v20, %v9719_v51  ;;  %v8299_v54 = vld [vmem:[#allocation2 + $0x174] ss:$8 sps:$4 sm:$0xff]   ;;  %v8308_v59 = vld [vmem:[#allocation2 + $0xe84] ss:$8 sps:$4 sm:$0xff]   ;;  %v8303_v60 = vld [vmem:[#allocation2 + $0x180] ss:$8 sps:$4 sm:$0xff]  }
  0x67   :  { %6323 = vmatprep.subr.bf16.mxu0 %v8201_v29  ;;  %6341 = vmatprep.mubr.bf16.mxu0 %v1173_v4  ;;  %v8261_v29 = vld [vmem:[#allocation2 + $0x110] ss:$8 sps:$4 sm:$0xff]   ;;  %v8306_v61 = vld [vmem:[#allocation2 + $0xe80] ss:$8 sps:$4 sm:$0xff]   ;;  %v8311_v62 = vld [vmem:[#allocation2 + $0x194] ss:$8 sps:$4 sm:$0xff]  }
  0x68   :  { %v8320_v4 = vld [vmem:[#allocation2 + $0xea4] ss:$8 sps:$4 sm:$0xff]   ;;  %v8321_v9 = vld [vmem:[#allocation2 + $0x1b0] ss:$8 sps:$4 sm:$0xff]  }
  0x69   :  { %5791 = vmatpush1.bf16.msra.mxu1 %v8203_v30  ;;  %v8264_v30 = vld [vmem:[#allocation2 + $0xe10] ss:$8 sps:$4 sm:$0xff]  }
  0x6a   :  { %6324 = vmatpush1.bf16.msra.mxu0 %v8204_v31  ;;  %5792 = vmatprep.subr.bf16.mxu1 %v8205_v32  ;;  %v8269_v31 = vld [vmem:[#allocation2 + $0x124] ss:$8 sps:$4 sm:$0xff]   ;;  %v8336_v20 = vld [vmem:[#allocation2 + $0xed0] ss:$8 sps:$4 sm:$0xff]  }
  0x6b   :  { %6325 = vmatprep.subr.bf16.mxu0 %v8207_v33  ;;  %v8272_v32 = vld [vmem:[#allocation2 + $0xe24] ss:$8 sps:$4 sm:$0xff]   ;;  %v8267_v33 = vld [vmem:[#allocation2 + $0x120] ss:$8 sps:$4 sm:$0xff]  }
  0x6d   :  { %5793 = vmatpush1.bf16.msra.mxu1 %v8209_v34  ;;  %v8270_v34 = vld [vmem:[#allocation2 + $0xe20] ss:$8 sps:$4 sm:$0xff]  }
  0x6e   :  { %6326 = vmatpush1.bf16.msra.mxu0 %v8210_v35  ;;  %5794 = vmatprep.subr.bf16.mxu1 %v8211_v36  ;;  %v8275_v35 = vld [vmem:[#allocation2 + $0x134] ss:$8 sps:$4 sm:$0xff]  }
  0x6f   :  { %6327 = vmatprep.subr.bf16.mxu0 %v8213_v37  ;;  %v8278_v36 = vld [vmem:[#allocation2 + $0xe34] ss:$8 sps:$4 sm:$0xff]   ;;  %v8273_v37 = vld [vmem:[#allocation2 + $0x130] ss:$8 sps:$4 sm:$0xff]  }
  0x71   :  { %5795 = vmatpush1.bf16.msra.mxu1 %v8215_v41  ;;  %v8279_v41 = vld [vmem:[#allocation2 + $0x140] ss:$8 sps:$4 sm:$0xff]  }
  0x72   :  { %6328 = vmatpush1.bf16.msra.mxu0 %v8216_v42  ;;  %5796 = vmatprep.subr.bf16.mxu1 %v8217_v43  ;;  %v8282_v42 = vld [vmem:[#allocation2 + $0xe40] ss:$8 sps:$4 sm:$0xff]   ;;  %v8287_v43 = vld [vmem:[#allocation2 + $0x154] ss:$8 sps:$4 sm:$0xff]  }
  0x73   :  { %6329 = vmatprep.subr.bf16.mxu0 %v8219_v44  ;;  %v8290_v44 = vld [vmem:[#allocation2 + $0xe54] ss:$8 sps:$4 sm:$0xff]  }
  0x75   :  { %5797 = vmatpush1.bf16.msra.mxu1 %v8221_v47  ;;  %v8288_v47 = vld [vmem:[#allocation2 + $0xe50] ss:$8 sps:$4 sm:$0xff]  }
  0x76   :  { %6330 = vmatpush1.bf16.msra.mxu0 %v8222_v48  ;;  %5798 = vmatprep.subr.bf16.mxu1 %v8223_v49  ;;  %v8293_v48 = vld [vmem:[#allocation2 + $0x164] ss:$8 sps:$4 sm:$0xff]  }
  0x77   :  { %6331 = vmatprep.subr.bf16.mxu0 %v8225_v50  ;;  %v8296_v49 = vld [vmem:[#allocation2 + $0xe64] ss:$8 sps:$4 sm:$0xff]   ;;  %v8291_v50 = vld [vmem:[#allocation2 + $0x160] ss:$8 sps:$4 sm:$0xff]  }
  0x79   :  { %5799 = vmatpush1.bf16.msra.mxu1 %v8227_v53  ;;  %v8294_v53 = vld [vmem:[#allocation2 + $0xe60] ss:$8 sps:$4 sm:$0xff]  }
  0x7a   :  { %6332 = vmatpush1.bf16.msra.mxu0 %v8228_v55  ;;  %5800 = vmatprep.subr.bf16.mxu1 %v8229_v57  ;;  %v8302_v55 = vld [vmem:[#allocation2 + $0xe74] ss:$8 sps:$4 sm:$0xff]   ;;  %v8300_v57 = vld [vmem:[#allocation2 + $0xe70] ss:$8 sps:$4 sm:$0xff]  }
  0x7b   :  { %6333 = vmatprep.subr.bf16.mxu0 %v8231_v58  ;;  %v8305_v58 = vld [vmem:[#allocation2 + $0x184] ss:$8 sps:$4 sm:$0xff]  }
  0x7d   :  { %5801 = vmatpush1.bf16.msra.mxu1 %v8233_v63  ;;  %v8314_v63 = vld [vmem:[#allocation2 + $0xe94] ss:$8 sps:$4 sm:$0xff]  }
  0x7e   :  { %6334 = vmatpush1.bf16.msra.mxu0 %v8234_v0  ;;  %5802 = vmatprep.subr.bf16.mxu1 %v8235_v1  ;;  %v8309_v0 = vld [vmem:[#allocation2 + $0x190] ss:$8 sps:$4 sm:$0xff]  }
  0x7f   :  { %6335 = vmatprep.subr.bf16.mxu0 %v8237_v2  ;;  %v8312_v1 = vld [vmem:[#allocation2 + $0xe90] ss:$8 sps:$4 sm:$0xff]   ;;  %v8317_v2 = vld [vmem:[#allocation2 + $0x1a4] ss:$8 sps:$4 sm:$0xff]  }
  0x81   :  { %5803 = vmatpush1.bf16.msra.mxu1 %v8239_v5  ;;  %v8315_v5 = vld [vmem:[#allocation2 + $0x1a0] ss:$8 sps:$4 sm:$0xff]  }
  0x82   :  { %6336 = vmatpush1.bf16.msra.mxu0 %v8240_v6  ;;  %5804 = vmatprep.subr.bf16.mxu1 %v8241_v7  ;;  %v8318_v6 = vld [vmem:[#allocation2 + $0xea0] ss:$8 sps:$4 sm:$0xff]   ;;  %v8323_v7 = vld [vmem:[#allocation2 + $0x1b4] ss:$8 sps:$4 sm:$0xff]  }
  0x83   :  { %6337 = vmatprep.subr.bf16.mxu0 %v8243_v8  ;;  %v8326_v8 = vld [vmem:[#allocation2 + $0xeb4] ss:$8 sps:$4 sm:$0xff]  }
  0x85   :  { %5805 = vmatpush1.bf16.msra.mxu1 %v8245_v10  ;;  %v8324_v10 = vld [vmem:[#allocation2 + $0xeb0] ss:$8 sps:$4 sm:$0xff]  }
  0x86   :  { %6338 = vmatpush1.bf16.msra.mxu0 %v8246_v11  ;;  %5806 = vmatprep.subr.bf16.mxu1 %v8247_v12  ;;  %v8329_v11 = vld [vmem:[#allocation2 + $0x1c4] ss:$8 sps:$4 sm:$0xff]  }
  0x87   :  { %6339 = vmatprep.subr.bf16.mxu0 %v8249_v13  ;;  %v8332_v12 = vld [vmem:[#allocation2 + $0xec4] ss:$8 sps:$4 sm:$0xff]   ;;  %v8327_v13 = vld [vmem:[#allocation2 + $0x1c0] ss:$8 sps:$4 sm:$0xff]  }
  0x89   :  { %5807 = vmatpush1.bf16.msra.mxu1 %v8251_v16  ;;  %v8330_v16 = vld [vmem:[#allocation2 + $0xec0] ss:$8 sps:$4 sm:$0xff]  }
  0x8a   :  { %6340 = vmatpush1.bf16.msra.mxu0 %v8252_v17  ;;  %5817 = vmatprep.subr.bf16.mxu1 %v8256_v18  ;;  %v8335_v17 = vld [vmem:[#allocation2 + $0x1d4] ss:$8 sps:$4 sm:$0xff]  }
  0x8b   :  { %6350 = vmatprep.subr.bf16.mxu0 %v8260_v19  ;;  %v8338_v18 = vld [vmem:[#allocation2 + $0xed4] ss:$8 sps:$4 sm:$0xff]   ;;  %v8333_v19 = vld [vmem:[#allocation2 + $0x1d0] ss:$8 sps:$4 sm:$0xff]  }
  0x8c   :  { %5809 = vmatmul.mubr.bf16.vlgmr.msra.gmra.mrb[0].mxu1 %v9750_v21 }
  0x8d   :  { %6342 = vmatmul.mubr.bf16.vlgmr.msra.gmra.mrb[0].mxu0 %v1171_v22  ;;  %5818 = vmatpush1.bf16.msra.mxu1 %v8254_v23  ;;  %v8341_v22 = vld [vmem:[#allocation2 + $0x1e4] ss:$8 sps:$4 sm:$0xff]  }
  0x8e   :  { %6351 = vmatpush1.bf16.msra.mxu0 %v8258_v24  ;;  %5819 = vmatprep.subr.bf16.mxu1 %v8263_v25  ;;  %v8344_v23 = vld [vmem:[#allocation2 + $0xee4] ss:$8 sps:$4 sm:$0xff]   ;;  %v979_v24 = vcombine.high %v9724_v52, %v9724_v52  ;;  %v8339_v25 = vld [vmem:[#allocation2 + $0x1e0] ss:$8 sps:$4 sm:$0xff]  }
  0x8f   :  { %6352 = vmatprep.subr.bf16.mxu0 %v8266_v26  ;;  %5849 = vmatprep.mubr.bf16.mxu1 %v1026_v27  ;;  %v8342_v26 = vld [vmem:[#allocation2 + $0xee0] ss:$8 sps:$4 sm:$0xff]   ;;  %v8347_v27 = vld [vmem:[#allocation2 + $0x1f4] ss:$8 sps:$4 sm:$0xff]  }
  0x90   :  { %6382 = vmatprep.mubr.bf16.mxu0 %v9757_v28 }
  0x91   :  { %5820 = vmatpush1.bf16.msra.mxu1 %v8261_v29  ;;  %v8350_v29 = vld [vmem:[#allocation2 + $0xef4] ss:$8 sps:$4 sm:$0xff]  }
  0x92   :  { %6353 = vmatpush1.bf16.msra.mxu0 %v8264_v30  ;;  %5821 = vmatprep.subr.bf16.mxu1 %v8269_v31  ;;  %v9764_v30 = vrot.slane %v979_v24, %v9719_v51  ;;  %v8345_v31 = vld [vmem:[#allocation2 + $0x1f0] ss:$8 sps:$4 sm:$0xff]  }
  0x93   :  { %6354 = vmatprep.subr.bf16.mxu0 %v8272_v32  ;;  %v8348_v32 = vld [vmem:[#allocation2 + $0xef0] ss:$8 sps:$4 sm:$0xff]  }
  0x94   :  { %v995_v52 = vcombine.high %v9764_v30, %v9764_v30  ;;  %v8420_v24 = vld [vmem:[#allocation2 + $0xfb0] ss:$8 sps:$4 sm:$0xff]  }
  0x95   :  { %5822 = vmatpush1.bf16.msra.mxu1 %v8267_v33  ;;  %v8353_v33 = vld [vmem:[#allocation2 + $0x204] ss:$8 sps:$4 sm:$0xff]  }
  0x96   :  { %6355 = vmatpush1.bf16.msra.mxu0 %v8270_v34  ;;  %5823 = vmatprep.subr.bf16.mxu1 %v8275_v35  ;;  %v8356_v34 = vld [vmem:[#allocation2 + $0xf04] ss:$8 sps:$4 sm:$0xff]   ;;  %v1024_v35 = vcombine.high %v9750_v21, %v9750_v21  ;;  %v8360_v21 = vld [vmem:[#allocation2 + $0xf10] ss:$8 sps:$4 sm:$0xff]  }
  0x97   :  { %6356 = vmatprep.subr.bf16.mxu0 %v8278_v36  ;;  %v9772_v36 = vrot.slane %v9742_v14, %v9719_v51  ;;  %v8357_v14 = vld [vmem:[#allocation2 + $0x210] ss:$8 sps:$4 sm:$0xff]  }
  0x99   :  { %5824 = vmatpush1.bf16.msra.mxu1 %v8273_v37  ;;  %v8351_v37 = vld [vmem:[#allocation2 + $0x200] ss:$8 sps:$4 sm:$0xff]  }
  0x9a   :  { %6357 = vmatpush1.bf16.msra.mxu0 %v8276_v38  ;;  %5825 = vmatprep.subr.bf16.mxu1 %v8281_v39  ;;  %v8354_v38 = vld [vmem:[#allocation2 + $0xf00] ss:$8 sps:$4 sm:$0xff]   ;;  %v8359_v39 = vld [vmem:[#allocation2 + $0x214] ss:$8 sps:$4 sm:$0xff]  }
  0x9b   :  { %6358 = vmatprep.subr.bf16.mxu0 %v8284_v40  ;;  %v8362_v40 = vld [vmem:[#allocation2 + $0xf14] ss:$8 sps:$4 sm:$0xff]  }
  0x9d   :  { %5826 = vmatpush1.bf16.msra.mxu1 %v8279_v41  ;;  %v9775_v41 = vrot.slane %v995_v52, %v9719_v51  ;;  %v8437_v52 = vld [vmem:[#allocation2 + $0x2e4] ss:$8 sps:$4 sm:$0xff]  }
  0x9e   :  { %6359 = vmatpush1.bf16.msra.mxu0 %v8282_v42  ;;  %5827 = vmatprep.subr.bf16.mxu1 %v8287_v43  ;;  %v1174_v42 = vcombine.high %v9757_v28, %v9757_v28  ;;  %v8365_v43 = vld [vmem:[#allocation2 + $0x224] ss:$8 sps:$4 sm:$0xff]   ;;  %v8371_v28 = vld [vmem:[#allocation2 + $0x234] ss:$8 sps:$4 sm:$0xff]  }
  0x9f   :  { %6360 = vmatprep.subr.bf16.mxu0 %v8290_v44  ;;  %v8368_v44 = vld [vmem:[#allocation2 + $0xf24] ss:$8 sps:$4 sm:$0xff]  }
  0xa1   :  { %5828 = vmatpush1.bf16.msra.mxu1 %v8285_v46  ;;  %v8363_v46 = vld [vmem:[#allocation2 + $0x220] ss:$8 sps:$4 sm:$0xff]  }
  0xa2   :  { %6361 = vmatpush1.bf16.msra.mxu0 %v8288_v47  ;;  %5829 = vmatprep.subr.bf16.mxu1 %v8293_v48  ;;  %v8366_v47 = vld [vmem:[#allocation2 + $0xf20] ss:$8 sps:$4 sm:$0xff]   ;;  %v8374_v48 = vld [vmem:[#allocation2 + $0xf34] ss:$8 sps:$4 sm:$0xff]  }
  0xa3   :  { %6362 = vmatprep.subr.bf16.mxu0 %v8296_v49  ;;  %v8369_v49 = vld [vmem:[#allocation2 + $0x230] ss:$8 sps:$4 sm:$0xff]  }
  0xa5   :  { %5830 = vmatpush1.bf16.msra.mxu1 %v8291_v50  ;;  %v8372_v50 = vld [vmem:[#allocation2 + $0xf30] ss:$8 sps:$4 sm:$0xff]  }
  0xa6   :  { %6363 = vmatpush1.bf16.msra.mxu0 %v8294_v53  ;;  %5831 = vmatprep.subr.bf16.mxu1 %v8299_v54  ;;  %v8377_v53 = vld [vmem:[#allocation2 + $0x244] ss:$8 sps:$4 sm:$0xff]  }
  0xa7   :  { %6364 = vmatprep.subr.bf16.mxu0 %v8302_v55  ;;  %v8380_v54 = vld [vmem:[#allocation2 + $0xf44] ss:$8 sps:$4 sm:$0xff]   ;;  %v8375_v55 = vld [vmem:[#allocation2 + $0x240] ss:$8 sps:$4 sm:$0xff]  }
  0xa9   :  { %5832 = vmatpush1.bf16.msra.mxu1 %v8297_v56  ;;  %v8378_v56 = vld [vmem:[#allocation2 + $0xf40] ss:$8 sps:$4 sm:$0xff]  }
  0xaa   :  { %6365 = vmatpush1.bf16.msra.mxu0 %v8300_v57  ;;  %5833 = vmatprep.subr.bf16.mxu1 %v8305_v58  ;;  %v8383_v57 = vld [vmem:[#allocation2 + $0x254] ss:$8 sps:$4 sm:$0xff]  }
  0xab   :  { %6366 = vmatprep.subr.bf16.mxu0 %v8308_v59  ;;  %v8386_v58 = vld [vmem:[#allocation2 + $0xf54] ss:$8 sps:$4 sm:$0xff]   ;;  %v8381_v59 = vld [vmem:[#allocation2 + $0x250] ss:$8 sps:$4 sm:$0xff]  }
  0xad   :  { %5834 = vmatpush1.bf16.msra.mxu1 %v8303_v60  ;;  %v8384_v60 = vld [vmem:[#allocation2 + $0xf50] ss:$8 sps:$4 sm:$0xff]  }
  0xae   :  { %6367 = vmatpush1.bf16.msra.mxu0 %v8306_v61  ;;  %5835 = vmatprep.subr.bf16.mxu1 %v8311_v62  ;;  %v8389_v61 = vld [vmem:[#allocation2 + $0x264] ss:$8 sps:$4 sm:$0xff]  }
  0xaf   :  { %6368 = vmatprep.subr.bf16.mxu0 %v8314_v63  ;;  %v8392_v62 = vld [vmem:[#allocation2 + $0xf64] ss:$8 sps:$4 sm:$0xff]   ;;  %v8387_v63 = vld [vmem:[#allocation2 + $0x260] ss:$8 sps:$4 sm:$0xff]  }
  0xb1   :  { %5836 = vmatpush1.bf16.msra.mxu1 %v8309_v0  ;;  %v8390_v0 = vld [vmem:[#allocation2 + $0xf60] ss:$8 sps:$4 sm:$0xff]  }
  0xb2   :  { %6369 = vmatpush1.bf16.msra.mxu0 %v8312_v1  ;;  %5837 = vmatprep.subr.bf16.mxu1 %v8317_v2  ;;  %v8395_v1 = vld [vmem:[#allocation2 + $0x274] ss:$8 sps:$4 sm:$0xff]  }
  0xb3   :  { %6370 = vmatprep.subr.bf16.mxu0 %v8320_v4  ;;  %v8398_v2 = vld [vmem:[#allocation2 + $0xf74] ss:$8 sps:$4 sm:$0xff]   ;;  %v8393_v4 = vld [vmem:[#allocation2 + $0x270] ss:$8 sps:$4 sm:$0xff]  }
  0xb5   :  { %5838 = vmatpush1.bf16.msra.mxu1 %v8315_v5  ;;  %v8396_v5 = vld [vmem:[#allocation2 + $0xf70] ss:$8 sps:$4 sm:$0xff]  }
  0xb6   :  { %6371 = vmatpush1.bf16.msra.mxu0 %v8318_v6  ;;  %5839 = vmatprep.subr.bf16.mxu1 %v8323_v7  ;;  %v8401_v6 = vld [vmem:[#allocation2 + $0x284] ss:$8 sps:$4 sm:$0xff]  }
  0xb7   :  { %6372 = vmatprep.subr.bf16.mxu0 %v8326_v8  ;;  %v8404_v7 = vld [vmem:[#allocation2 + $0xf84] ss:$8 sps:$4 sm:$0xff]   ;;  %v8399_v8 = vld [vmem:[#allocation2 + $0x280] ss:$8 sps:$4 sm:$0xff]  }
  0xb9   :  { %5840 = vmatpush1.bf16.msra.mxu1 %v8321_v9  ;;  %v8402_v9 = vld [vmem:[#allocation2 + $0xf80] ss:$8 sps:$4 sm:$0xff]  }
  0xba   :  { %6373 = vmatpush1.bf16.msra.mxu0 %v8324_v10  ;;  %5841 = vmatprep.subr.bf16.mxu1 %v8329_v11  ;;  %v8407_v10 = vld [vmem:[#allocation2 + $0x294] ss:$8 sps:$4 sm:$0xff]  }
  0xbb   :  { %6374 = vmatprep.subr.bf16.mxu0 %v8332_v12  ;;  %v8410_v11 = vld [vmem:[#allocation2 + $0xf94] ss:$8 sps:$4 sm:$0xff]   ;;  %v8405_v12 = vld [vmem:[#allocation2 + $0x290] ss:$8 sps:$4 sm:$0xff]  }
  0xbd   :  { %5842 = vmatpush1.bf16.msra.mxu1 %v8327_v13  ;;  %v8408_v13 = vld [vmem:[#allocation2 + $0xf90] ss:$8 sps:$4 sm:$0xff]  }
  0xbe   :  { %6375 = vmatpush1.bf16.msra.mxu0 %v8330_v16  ;;  %5843 = vmatprep.subr.bf16.mxu1 %v8335_v17  ;;  %v8413_v16 = vld [vmem:[#allocation2 + $0x2a4] ss:$8 sps:$4 sm:$0xff]  }
  0xbf   :  { %6376 = vmatprep.subr.bf16.mxu0 %v8338_v18  ;;  %v8416_v17 = vld [vmem:[#allocation2 + $0xfa4] ss:$8 sps:$4 sm:$0xff]   ;;  %v8411_v18 = vld [vmem:[#allocation2 + $0x2a0] ss:$8 sps:$4 sm:$0xff]  }
  0xc1   :  { %5844 = vmatpush1.bf16.msra.mxu1 %v8333_v19  ;;  %v8414_v19 = vld [vmem:[#allocation2 + $0xfa0] ss:$8 sps:$4 sm:$0xff]  }
  0xc2   :  { %6377 = vmatpush1.bf16.msra.mxu0 %v8336_v20  ;;  %5845 = vmatprep.subr.bf16.mxu1 %v8341_v22  ;;  %v8419_v20 = vld [vmem:[#allocation2 + $0x2b4] ss:$8 sps:$4 sm:$0xff]  }
  0xc3   :  { %6378 = vmatprep.subr.bf16.mxu0 %v8344_v23  ;;  %v8422_v22 = vld [vmem:[#allocation2 + $0xfb4] ss:$8 sps:$4 sm:$0xff]   ;;  %v8417_v23 = vld [vmem:[#allocation2 + $0x2b0] ss:$8 sps:$4 sm:$0xff]  }
  0xc5   :  { %5846 = vmatpush1.bf16.msra.mxu1 %v8339_v25  ;;  %v8425_v25 = vld [vmem:[#allocation2 + $0x2c4] ss:$8 sps:$4 sm:$0xff]  }
  0xc6   :  { %6379 = vmatpush1.bf16.msra.mxu0 %v8342_v26  ;;  %5847 = vmatprep.subr.bf16.mxu1 %v8347_v27  ;;  %v8428_v26 = vld [vmem:[#allocation2 + $0xfc4] ss:$8 sps:$4 sm:$0xff]   ;;  %v8423_v27 = vld [vmem:[#allocation2 + $0x2c0] ss:$8 sps:$4 sm:$0xff]  }
  0xc7   :  { %6380 = vmatprep.subr.bf16.mxu0 %v8350_v29  ;;  %v8426_v29 = vld [vmem:[#allocation2 + $0xfc0] ss:$8 sps:$4 sm:$0xff]  }
  0xc9   :  { %5848 = vmatpush1.bf16.msra.mxu1 %v8345_v31  ;;  %v8431_v31 = vld [vmem:[#allocation2 + $0x2d4] ss:$8 sps:$4 sm:$0xff]  }
  0xca   :  { %6381 = vmatpush1.bf16.msra.mxu0 %v8348_v32  ;;  %5858 = vmatprep.subr.bf16.mxu1 %v8353_v33  ;;  %v8434_v32 = vld [vmem:[#allocation2 + $0xfd4] ss:$8 sps:$4 sm:$0xff]   ;;  %v8429_v33 = vld [vmem:[#allocation2 + $0x2d0] ss:$8 sps:$4 sm:$0xff]  }
  0xcb   :  { %6391 = vmatprep.subr.bf16.mxu0 %v8356_v34  ;;  %v8432_v34 = vld [vmem:[#allocation2 + $0xfd0] ss:$8 sps:$4 sm:$0xff]  }
  0xcc   :  { %5850 = vmatmul.mubr.bf16.vlgmr.msra.gmra.mrb[0].mxu1 %v1024_v35  ;;  %v8440_v35 = vld [vmem:[#allocation2 + $0xfe4] ss:$8 sps:$4 sm:$0xff]  }
  0xcd   :  { %6383 = vmatmul.mubr.bf16.vlgmr.msra.gmra.mrb[0].mxu0 %v9772_v36  ;;  %5859 = vmatpush1.bf16.msra.mxu1 %v8351_v37  ;;  %v8435_v37 = vld [vmem:[#allocation2 + $0x2e0] ss:$8 sps:$4 sm:$0xff]  }
  0xce   :  { %6392 = vmatpush1.bf16.msra.mxu0 %v8354_v38  ;;  %5860 = vmatprep.subr.bf16.mxu1 %v8359_v39  ;;  %v9784_v38 = vld [vmem:[%s10015_s0 + $0x20] sm:$0xff] }
  0xcf   :  { %6393 = vmatprep.subr.bf16.mxu0 %v8362_v40  ;;  %5890 = vmatprep.mubr.bf16.mxu1 %v9775_v41  ;;  %v8438_v39 = vld [vmem:[#allocation2 + $0xfe0] ss:$8 sps:$4 sm:$0xff]   ;;  %v8443_v40 = vld [vmem:[#allocation2 + $0x2f4] ss:$8 sps:$4 sm:$0xff]  }
  0xd0   :  { %6423 = vmatprep.mubr.bf16.mxu0 %v1174_v42  ;;  %v8446_v42 = vld [vmem:[#allocation2 + $0xff4] ss:$8 sps:$4 sm:$0xff]  }
  0xd1   :  { %5861 = vmatpush1.bf16.msra.mxu1 %v8357_v14  ;;  %v9788_v14 = vrot.slane %v9784_v38, %v9719_v51 }
  0xd2   :  { %6394 = vmatpush1.bf16.msra.mxu0 %v8360_v21  ;;  %5862 = vmatprep.subr.bf16.mxu1 %v8365_v43  ;;  %v8441_v21 = vld [vmem:[#allocation2 + $0x2f0] ss:$8 sps:$4 sm:$0xff]  }
  0xd3   :  { %6395 = vmatprep.subr.bf16.mxu0 %v8368_v44  ;;  %v8444_v43 = vld [vmem:[#allocation2 + $0xff0] ss:$8 sps:$4 sm:$0xff]   ;;  %v8449_v44 = vld [vmem:[#allocation2 + $0x304] ss:$8 sps:$4 sm:$0xff]  }
  0xd5   :  { %5863 = vmatpush1.bf16.msra.mxu1 %v8363_v46  ;;  %v8452_v46 = vld [vmem:[#allocation2 + $0x1004] ss:$8 sps:$4 sm:$0xff]  }
  0xd6   :  { %6396 = vmatpush1.bf16.msra.mxu0 %v8366_v47  ;;  %5864 = vmatprep.subr.bf16.mxu1 %v8371_v28  ;;  %v1190_v47 = vcombine.high %v9788_v14, %v9788_v14  ;;  %v8447_v28 = vld [vmem:[#allocation2 + $0x300] ss:$8 sps:$4 sm:$0xff]  }
  0xd7   :  { %6397 = vmatprep.subr.bf16.mxu0 %v8374_v48  ;;  %v9794_v48 = vrot.slane %v9764_v30, %v9719_v51  ;;  %v8453_v30 = vld [vmem:[#allocation2 + $0x310] ss:$8 sps:$4 sm:$0xff]  }
  0xd9   :  { %5865 = vmatpush1.bf16.msra.mxu1 %v8369_v49  ;;  %v1172_v49 = vcombine.high %v9772_v36, %v9772_v36  ;;  %v8456_v36 = vld [vmem:[#allocation2 + $0x1010] ss:$8 sps:$4 sm:$0xff]  }
  0xda   :  { %6398 = vmatpush1.bf16.msra.mxu0 %v8372_v50  ;;  %5866 = vmatprep.subr.bf16.mxu1 %v8377_v53  ;;  %v8450_v50 = vld [vmem:[#allocation2 + $0x1000] ss:$8 sps:$4 sm:$0xff]   ;;  %v8455_v53 = vld [vmem:[#allocation2 + $0x314] ss:$8 sps:$4 sm:$0xff]  }
  0xdb   :  { %6399 = vmatprep.subr.bf16.mxu0 %v8380_v54  ;;  %v8458_v54 = vld [vmem:[#allocation2 + $0x1014] ss:$8 sps:$4 sm:$0xff]  }
  0xdd   :  { %5867 = vmatpush1.bf16.msra.mxu1 %v8375_v55  ;;  %v1027_v55 = vcombine.high %v9775_v41, %v9775_v41  ;;  %v8462_v41 = vld [vmem:[#allocation2 + $0x1020] ss:$8 sps:$4 sm:$0xff]  }
  0xde   :  { %6400 = vmatpush1.bf16.msra.mxu0 %v8378_v56  ;;  %5868 = vmatprep.subr.bf16.mxu1 %v8383_v57  ;;  %v9801_v56 = vrot.slane %v1190_v47, %v9719_v51  ;;  %v8461_v57 = vld [vmem:[#allocation2 + $0x324] ss:$8 sps:$4 sm:$0xff]   ;;  %v8528_v47 = vld [vmem:[#allocation2 + $0x10d0] ss:$8 sps:$4 sm:$0xff]  }
  0xdf   :  { %6401 = vmatprep.subr.bf16.mxu0 %v8386_v58  ;;  %v8464_v58 = vld [vmem:[#allocation2 + $0x1024] ss:$8 sps:$4 sm:$0xff]  }
  0xe1   :  { %5869 = vmatpush1.bf16.msra.mxu1 %v8381_v59  ;;  %v8459_v59 = vld [vmem:[#allocation2 + $0x320] ss:$8 sps:$4 sm:$0xff]  }
  0xe2   :  { %6402 = vmatpush1.bf16.msra.mxu0 %v8384_v60  ;;  %5870 = vmatprep.subr.bf16.mxu1 %v8389_v61  ;;  %v8467_v60 = vld [vmem:[#allocation2 + $0x334] ss:$8 sps:$4 sm:$0xff]  }
  0xe3   :  { %6403 = vmatprep.subr.bf16.mxu0 %v8392_v62  ;;  %v8470_v61 = vld [vmem:[#allocation2 + $0x1034] ss:$8 sps:$4 sm:$0xff]   ;;  %v8465_v62 = vld [vmem:[#allocation2 + $0x330] ss:$8 sps:$4 sm:$0xff]  }
  0xe5   :  { %5871 = vmatpush1.bf16.msra.mxu1 %v8387_v63  ;;  %v8468_v63 = vld [vmem:[#allocation2 + $0x1030] ss:$8 sps:$4 sm:$0xff]  }
  0xe6   :  { %6404 = vmatpush1.bf16.msra.mxu0 %v8390_v0  ;;  %5872 = vmatprep.subr.bf16.mxu1 %v8395_v1  ;;  %v8473_v0 = vld [vmem:[#allocation2 + $0x344] ss:$8 sps:$4 sm:$0xff]  }
  0xe7   :  { %6405 = vmatprep.subr.bf16.mxu0 %v8398_v2  ;;  %v8476_v1 = vld [vmem:[#allocation2 + $0x1044] ss:$8 sps:$4 sm:$0xff]   ;;  %v8471_v2 = vld [vmem:[#allocation2 + $0x340] ss:$8 sps:$4 sm:$0xff]  }
  0xe9   :  { %5873 = vmatpush1.bf16.msra.mxu1 %v8393_v4  ;;  %v8474_v4 = vld [vmem:[#allocation2 + $0x1040] ss:$8 sps:$4 sm:$0xff]  }
  0xea   :  { %6406 = vmatpush1.bf16.msra.mxu0 %v8396_v5  ;;  %5874 = vmatprep.subr.bf16.mxu1 %v8401_v6  ;;  %v8479_v5 = vld [vmem:[#allocation2 + $0x354] ss:$8 sps:$4 sm:$0xff]  }
  0xeb   :  { %6407 = vmatprep.subr.bf16.mxu0 %v8404_v7  ;;  %v8482_v6 = vld [vmem:[#allocation2 + $0x1054] ss:$8 sps:$4 sm:$0xff]   ;;  %v8477_v7 = vld [vmem:[#allocation2 + $0x350] ss:$8 sps:$4 sm:$0xff]  }
  0xed   :  { %5875 = vmatpush1.bf16.msra.mxu1 %v8399_v8  ;;  %v8480_v8 = vld [vmem:[#allocation2 + $0x1050] ss:$8 sps:$4 sm:$0xff]  }
  0xee   :  { %6408 = vmatpush1.bf16.msra.mxu0 %v8402_v9  ;;  %5876 = vmatprep.subr.bf16.mxu1 %v8407_v10  ;;  %v8485_v9 = vld [vmem:[#allocation2 + $0x364] ss:$8 sps:$4 sm:$0xff]  }
  0xef   :  { %6409 = vmatprep.subr.bf16.mxu0 %v8410_v11  ;;  %v8488_v10 = vld [vmem:[#allocation2 + $0x1064] ss:$8 sps:$4 sm:$0xff]   ;;  %v8483_v11 = vld [vmem:[#allocation2 + $0x360] ss:$8 sps:$4 sm:$0xff]  }
  0xf1   :  { %5877 = vmatpush1.bf16.msra.mxu1 %v8405_v12  ;;  %v8486_v12 = vld [vmem:[#allocation2 + $0x1060] ss:$8 sps:$4 sm:$0xff]  }
  0xf2   :  { %6410 = vmatpush1.bf16.msra.mxu0 %v8408_v13  ;;  %5878 = vmatprep.subr.bf16.mxu1 %v8413_v16  ;;  %v8491_v13 = vld [vmem:[#allocation2 + $0x374] ss:$8 sps:$4 sm:$0xff]  }
  0xf3   :  { %6411 = vmatprep.subr.bf16.mxu0 %v8416_v17  ;;  %v8494_v16 = vld [vmem:[#allocation2 + $0x1074] ss:$8 sps:$4 sm:$0xff]   ;;  %v8489_v17 = vld [vmem:[#allocation2 + $0x370] ss:$8 sps:$4 sm:$0xff]  }
  0xf5   :  { %5879 = vmatpush1.bf16.msra.mxu1 %v8411_v18  ;;  %v8492_v18 = vld [vmem:[#allocation2 + $0x1070] ss:$8 sps:$4 sm:$0xff]  }
  0xf6   :  { %6412 = vmatpush1.bf16.msra.mxu0 %v8414_v19  ;;  %5880 = vmatprep.subr.bf16.mxu1 %v8419_v20  ;;  %v8497_v19 = vld [vmem:[#allocation2 + $0x384] ss:$8 sps:$4 sm:$0xff]  }
  0xf7   :  { %6413 = vmatprep.subr.bf16.mxu0 %v8422_v22  ;;  %v8500_v20 = vld [vmem:[#allocation2 + $0x1084] ss:$8 sps:$4 sm:$0xff]   ;;  %v8495_v22 = vld [vmem:[#allocation2 + $0x380] ss:$8 sps:$4 sm:$0xff]  }
  0xf9   :  { %5881 = vmatpush1.bf16.msra.mxu1 %v8417_v23  ;;  %v8498_v23 = vld [vmem:[#allocation2 + $0x1080] ss:$8 sps:$4 sm:$0xff]  }
  0xfa   :  { %6414 = vmatpush1.bf16.msra.mxu0 %v8420_v24  ;;  %5882 = vmatprep.subr.bf16.mxu1 %v8425_v25  ;;  %v8503_v24 = vld [vmem:[#allocation2 + $0x394] ss:$8 sps:$4 sm:$0xff]  }
  0xfb   :  { %6415 = vmatprep.subr.bf16.mxu0 %v8428_v26  ;;  %v8506_v25 = vld [vmem:[#allocation2 + $0x1094] ss:$8 sps:$4 sm:$0xff]   ;;  %v8501_v26 = vld [vmem:[#allocation2 + $0x390] ss:$8 sps:$4 sm:$0xff]  }
  0xfd   :  { %5883 = vmatpush1.bf16.msra.mxu1 %v8423_v27  ;;  %v8504_v27 = vld [vmem:[#allocation2 + $0x1090] ss:$8 sps:$4 sm:$0xff]  }
  0xfe   :  { %6416 = vmatpush1.bf16.msra.mxu0 %v8426_v29  ;;  %5884 = vmatprep.subr.bf16.mxu1 %v8431_v31  ;;  %v8509_v29 = vld [vmem:[#allocation2 + $0x3a4] ss:$8 sps:$4 sm:$0xff]  }
  0xff   :  { %6417 = vmatprep.subr.bf16.mxu0 %v8434_v32  ;;  %v8512_v31 = vld [vmem:[#allocation2 + $0x10a4] ss:$8 sps:$4 sm:$0xff]   ;;  %v8507_v32 = vld [vmem:[#allocation2 + $0x3a0] ss:$8 sps:$4 sm:$0xff]  }
 0x101   :  { %5885 = vmatpush1.bf16.msra.mxu1 %v8429_v33  ;;  %v8510_v33 = vld [vmem:[#allocation2 + $0x10a0] ss:$8 sps:$4 sm:$0xff]  }
 0x102   :  { %6418 = vmatpush1.bf16.msra.mxu0 %v8432_v34  ;;  %5886 = vmatprep.subr.bf16.mxu1 %v8437_v52  ;;  %v8515_v34 = vld [vmem:[#allocation2 + $0x3b4] ss:$8 sps:$4 sm:$0xff]  }
 0x103   :  { %6419 = vmatprep.subr.bf16.mxu0 %v8440_v35  ;;  %v8518_v52 = vld [vmem:[#allocation2 + $0x10b4] ss:$8 sps:$4 sm:$0xff]   ;;  %v8513_v35 = vld [vmem:[#allocation2 + $0x3b0] ss:$8 sps:$4 sm:$0xff]  }
 0x105   :  { %5887 = vmatpush1.bf16.msra.mxu1 %v8435_v37  ;;  %v8516_v37 = vld [vmem:[#allocation2 + $0x10b0] ss:$8 sps:$4 sm:$0xff]  }
 0x106   :  { %6420 = vmatpush1.bf16.msra.mxu0 %v8438_v39  ;;  %5888 = vmatprep.subr.bf16.mxu1 %v8443_v40  ;;  %v8521_v39 = vld [vmem:[#allocation2 + $0x3c4] ss:$8 sps:$4 sm:$0xff]  }
 0x107   :  { %6421 = vmatprep.subr.bf16.mxu0 %v8446_v42  ;;  %v8524_v40 = vld [vmem:[#allocation2 + $0x10c4] ss:$8 sps:$4 sm:$0xff]   ;;  %v8519_v42 = vld [vmem:[#allocation2 + $0x3c0] ss:$8 sps:$4 sm:$0xff]  }
 0x109   :  { %5889 = vmatpush1.bf16.msra.mxu1 %v8441_v21  ;;  %v8522_v21 = vld [vmem:[#allocation2 + $0x10c0] ss:$8 sps:$4 sm:$0xff]  }
 0x10a   :  { %6422 = vmatpush1.bf16.msra.mxu0 %v8444_v43  ;;  %5899 = vmatprep.subr.bf16.mxu1 %v8449_v44  ;;  %v8527_v43 = vld [vmem:[#allocation2 + $0x3d4] ss:$8 sps:$4 sm:$0xff]  }
 0x10b   :  { %6432 = vmatprep.subr.bf16.mxu0 %v8452_v46  ;;  %v8530_v44 = vld [vmem:[#allocation2 + $0x10d4] ss:$8 sps:$4 sm:$0xff]   ;;  %v8525_v46 = vld [vmem:[#allocation2 + $0x3d0] ss:$8 sps:$4 sm:$0xff]  }
 0x10c   :  { %5891 = vmatmul.mubr.bf16.vlgmr.msra.gmra.mrb[0].mxu1 %v9794_v48 }
 0x10d   :  { %6424 = vmatmul.mubr.bf16.vlgmr.msra.gmra.mrb[0].mxu0 %v1172_v49  ;;  %5900 = vmatpush1.bf16.msra.mxu1 %v8447_v28  ;;  %v8533_v28 = vld [vmem:[#allocation2 + $0x3e4] ss:$8 sps:$4 sm:$0xff]  }
 0x10e   :  { %6433 = vmatpush1.bf16.msra.mxu0 %v8450_v50  ;;  %5901 = vmatprep.subr.bf16.mxu1 %v8455_v53  ;;  %v8536_v49 = vld [vmem:[#allocation2 + $0x10e4] ss:$8 sps:$4 sm:$0xff]   ;;  %v8531_v50 = vld [vmem:[#allocation2 + $0x3e0] ss:$8 sps:$4 sm:$0xff]  }
 0x10f   :  { %6434 = vmatprep.subr.bf16.mxu0 %v8458_v54  ;;  %5931 = vmatprep.mubr.bf16.mxu1 %v1027_v55  ;;  %v8534_v53 = vld [vmem:[#allocation2 + $0x10e0] ss:$8 sps:$4 sm:$0xff]   ;;  %v8539_v55 = vld [vmem:[#allocation2 + $0x3f4] ss:$8 sps:$4 sm:$0xff]  }
 0x110   :  { %6464 = vmatprep.mubr.bf16.mxu0 %v9801_v56  ;;  %v9808_v54 = vld.sshfl [vmem:[%s10015_s0 + $0x8] sm:$0xff pattern:$0x75316420] }
 0x111   :  { %5902 = vmatpush1.bf16.msra.mxu1 %v8453_v30  ;;  %v8542_v30 = vld [vmem:[#allocation2 + $0x10f4] ss:$8 sps:$4 sm:$0xff]  }
 0x112   :  { %6435 = vmatpush1.bf16.msra.mxu0 %v8456_v36  ;;  %5903 = vmatprep.subr.bf16.mxu1 %v8461_v57  ;;  %v8537_v36 = vld [vmem:[#allocation2 + $0x3f0] ss:$8 sps:$4 sm:$0xff]  }
 0x113   :  { %6436 = vmatprep.subr.bf16.mxu0 %v8464_v58  ;;  %v8540_v57 = vld [vmem:[#allocation2 + $0x10f0] ss:$8 sps:$4 sm:$0xff]   ;;  %v8545_v58 = vld [vmem:[#allocation2 + $0x404] ss:$8 sps:$4 sm:$0xff]  }
 0x115   :  { %5904 = vmatpush1.bf16.msra.mxu1 %v8459_v59  ;;  %v8548_v59 = vld [vmem:[#allocation2 + $0x1104] ss:$8 sps:$4 sm:$0xff]  }
 0x116   :  { %6437 = vmatpush1.bf16.msra.mxu0 %v8462_v41  ;;  %5905 = vmatprep.subr.bf16.mxu1 %v8467_v60  ;;  %v1043_v41 = vcombine.high %v9808_v54, %v9808_v54  ;;  %v8543_v60 = vld [vmem:[#allocation2 + $0x400] ss:$8 sps:$4 sm:$0xff]  }
 0x117   :  { %6438 = vmatprep.subr.bf16.mxu0 %v8470_v61  ;;  %v8546_v61 = vld [vmem:[#allocation2 + $0x1100] ss:$8 sps:$4 sm:$0xff]  }
 0x119   :  { %5906 = vmatpush1.bf16.msra.mxu1 %v8465_v62  ;;  %v1025_v62 = vcombine.high %v9794_v48, %v9794_v48  ;;  %v8549_v48 = vld [vmem:[#allocation2 + $0x410] ss:$8 sps:$4 sm:$0xff]  }
 0x11a   :  { %6439 = vmatpush1.bf16.msra.mxu0 %v8468_v63  ;;  %5907 = vmatprep.subr.bf16.mxu1 %v8473_v0  ;;  %v9816_v63 = vrot.slane %v9788_v14, %v9719_v51  ;;  %v8551_v0 = vld [vmem:[#allocation2 + $0x414] ss:$8 sps:$4 sm:$0xff]   ;;  %v8557_v14 = vld [vmem:[#allocation2 + $0x424] ss:$8 sps:$4 sm:$0xff]  }
 0x11b   :  { %6440 = vmatprep.subr.bf16.mxu0 %v8476_v1  ;;  %v8554_v1 = vld [vmem:[#allocation2 + $0x1114] ss:$8 sps:$4 sm:$0xff]  }
 0x11d   :  { %5908 = vmatpush1.bf16.msra.mxu1 %v8471_v2  ;;  %v9819_v2 = vrot.slane %v1043_v41, %v9719_v51  ;;  %v8624_v41 = vld [vmem:[#allocation2 + $0x11d0] ss:$8 sps:$4 sm:$0xff]  }
 0x11e   :  { %6441 = vmatpush1.bf16.msra.mxu0 %v8474_v4  ;;  %5909 = vmatprep.subr.bf16.mxu1 %v8479_v5  ;;  %v1222_v4 = vcombine.high %v9801_v56, %v9801_v56  ;;  %v8552_v5 = vld [vmem:[#allocation2 + $0x1110] ss:$8 sps:$4 sm:$0xff]   ;;  %v8563_v56 = vld [vmem:[#allocation2 + $0x434] ss:$8 sps:$4 sm:$0xff]  }
 0x11f   :  { %6442 = vmatprep.subr.bf16.mxu0 %v8482_v6  ;;  %v8560_v6 = vld [vmem:[#allocation2 + $0x1124] ss:$8 sps:$4 sm:$0xff]  }
 0x121   :  { %5910 = vmatpush1.bf16.msra.mxu1 %v8477_v7  ;;  %v8555_v7 = vld [vmem:[#allocation2 + $0x420] ss:$8 sps:$4 sm:$0xff]  }
 0x122   :  { %6443 = vmatpush1.bf16.msra.mxu0 %v8480_v8  ;;  %5911 = vmatprep.subr.bf16.mxu1 %v8485_v9  ;;  %v8558_v8 = vld [vmem:[#allocation2 + $0x1120] ss:$8 sps:$4 sm:$0xff]   ;;  %v8566_v9 = vld [vmem:[#allocation2 + $0x1134] ss:$8 sps:$4 sm:$0xff]  }
 0x123   :  { %6444 = vmatprep.subr.bf16.mxu0 %v8488_v10  ;;  %v8561_v10 = vld [vmem:[#allocation2 + $0x430] ss:$8 sps:$4 sm:$0xff]  }
 0x125   :  { %5912 = vmatpush1.bf16.msra.mxu1 %v8483_v11  ;;  %v8564_v11 = vld [vmem:[#allocation2 + $0x1130] ss:$8 sps:$4 sm:$0xff]  }
 0x126   :  { %6445 = vmatpush1.bf16.msra.mxu0 %v8486_v12  ;;  %5913 = vmatprep.subr.bf16.mxu1 %v8491_v13  ;;  %v8569_v12 = vld [vmem:[#allocation2 + $0x444] ss:$8 sps:$4 sm:$0xff]  }
 0x127   :  { %6446 = vmatprep.subr.bf16.mxu0 %v8494_v16  ;;  %v8572_v13 = vld [vmem:[#allocation2 + $0x1144] ss:$8 sps:$4 sm:$0xff]   ;;  %v8567_v16 = vld [vmem:[#allocation2 + $0x440] ss:$8 sps:$4 sm:$0xff]  }
 0x129   :  { %5914 = vmatpush1.bf16.msra.mxu1 %v8489_v17  ;;  %v8570_v17 = vld [vmem:[#allocation2 + $0x1140] ss:$8 sps:$4 sm:$0xff]  }
 0x12a   :  { %6447 = vmatpush1.bf16.msra.mxu0 %v8492_v18  ;;  %5915 = vmatprep.subr.bf16.mxu1 %v8497_v19  ;;  %v8575_v18 = vld [vmem:[#allocation2 + $0x454] ss:$8 sps:$4 sm:$0xff]  }
 0x12b   :  { %6448 = vmatprep.subr.bf16.mxu0 %v8500_v20  ;;  %v8578_v19 = vld [vmem:[#allocation2 + $0x1154] ss:$8 sps:$4 sm:$0xff]   ;;  %v8573_v20 = vld [vmem:[#allocation2 + $0x450] ss:$8 sps:$4 sm:$0xff]  }
 0x12d   :  { %5916 = vmatpush1.bf16.msra.mxu1 %v8495_v22  ;;  %v8576_v22 = vld [vmem:[#allocation2 + $0x1150] ss:$8 sps:$4 sm:$0xff]  }
 0x12e   :  { %6449 = vmatpush1.bf16.msra.mxu0 %v8498_v23  ;;  %5917 = vmatprep.subr.bf16.mxu1 %v8503_v24  ;;  %v8581_v23 = vld [vmem:[#allocation2 + $0x464] ss:$8 sps:$4 sm:$0xff]  }
 0x12f   :  { %6450 = vmatprep.subr.bf16.mxu0 %v8506_v25  ;;  %v8584_v24 = vld [vmem:[#allocation2 + $0x1164] ss:$8 sps:$4 sm:$0xff]   ;;  %v8579_v25 = vld [vmem:[#allocation2 + $0x460] ss:$8 sps:$4 sm:$0xff]  }
 0x131   :  { %5918 = vmatpush1.bf16.msra.mxu1 %v8501_v26  ;;  %v8582_v26 = vld [vmem:[#allocation2 + $0x1160] ss:$8 sps:$4 sm:$0xff]  }
 0x132   :  { %6451 = vmatpush1.bf16.msra.mxu0 %v8504_v27  ;;  %5919 = vmatprep.subr.bf16.mxu1 %v8509_v29  ;;  %v8587_v27 = vld [vmem:[#allocation2 + $0x474] ss:$8 sps:$4 sm:$0xff]  }
 0x133   :  { %6452 = vmatprep.subr.bf16.mxu0 %v8512_v31  ;;  %v8590_v29 = vld [vmem:[#allocation2 + $0x1174] ss:$8 sps:$4 sm:$0xff]   ;;  %v8585_v31 = vld [vmem:[#allocation2 + $0x470] ss:$8 sps:$4 sm:$0xff]  }
 0x135   :  { %5920 = vmatpush1.bf16.msra.mxu1 %v8507_v32  ;;  %v8588_v32 = vld [vmem:[#allocation2 + $0x1170] ss:$8 sps:$4 sm:$0xff]  }
 0x136   :  { %6453 = vmatpush1.bf16.msra.mxu0 %v8510_v33  ;;  %5921 = vmatprep.subr.bf16.mxu1 %v8515_v34  ;;  %v8593_v33 = vld [vmem:[#allocation2 + $0x484] ss:$8 sps:$4 sm:$0xff]  }
 0x137   :  { %6454 = vmatprep.subr.bf16.mxu0 %v8518_v52  ;;  %v8596_v34 = vld [vmem:[#allocation2 + $0x1184] ss:$8 sps:$4 sm:$0xff]   ;;  %v8591_v52 = vld [vmem:[#allocation2 + $0x480] ss:$8 sps:$4 sm:$0xff]  }
 0x139   :  { %5922 = vmatpush1.bf16.msra.mxu1 %v8513_v35  ;;  %v8594_v35 = vld [vmem:[#allocation2 + $0x1180] ss:$8 sps:$4 sm:$0xff]  }
 0x13a   :  { %6455 = vmatpush1.bf16.msra.mxu0 %v8516_v37  ;;  %5923 = vmatprep.subr.bf16.mxu1 %v8521_v39  ;;  %v8599_v37 = vld [vmem:[#allocation2 + $0x494] ss:$8 sps:$4 sm:$0xff]  }
 0x13b   :  { %6456 = vmatprep.subr.bf16.mxu0 %v8524_v40  ;;  %v8602_v39 = vld [vmem:[#allocation2 + $0x1194] ss:$8 sps:$4 sm:$0xff]   ;;  %v8597_v40 = vld [vmem:[#allocation2 + $0x490] ss:$8 sps:$4 sm:$0xff]  }
 0x13d   :  { %5924 = vmatpush1.bf16.msra.mxu1 %v8519_v42  ;;  %v8600_v42 = vld [vmem:[#allocation2 + $0x1190] ss:$8 sps:$4 sm:$0xff]  }
 0x13e   :  { %6457 = vmatpush1.bf16.msra.mxu0 %v8522_v21  ;;  %5925 = vmatprep.subr.bf16.mxu1 %v8527_v43  ;;  %v8605_v21 = vld [vmem:[#allocation2 + $0x4a4] ss:$8 sps:$4 sm:$0xff]  }
 0x13f   :  { %6458 = vmatprep.subr.bf16.mxu0 %v8530_v44  ;;  %v8608_v43 = vld [vmem:[#allocation2 + $0x11a4] ss:$8 sps:$4 sm:$0xff]   ;;  %v8603_v44 = vld [vmem:[#allocation2 + $0x4a0] ss:$8 sps:$4 sm:$0xff]  }
 0x141   :  { %5926 = vmatpush1.bf16.msra.mxu1 %v8525_v46  ;;  %v8606_v46 = vld [vmem:[#allocation2 + $0x11a0] ss:$8 sps:$4 sm:$0xff]  }
 0x142   :  { %6459 = vmatpush1.bf16.msra.mxu0 %v8528_v47  ;;  %5927 = vmatprep.subr.bf16.mxu1 %v8533_v28  ;;  %v8611_v47 = vld [vmem:[#allocation2 + $0x4b4] ss:$8 sps:$4 sm:$0xff]  }
 0x143   :  { %6460 = vmatprep.subr.bf16.mxu0 %v8536_v49  ;;  %v8614_v28 = vld [vmem:[#allocation2 + $0x11b4] ss:$8 sps:$4 sm:$0xff]   ;;  %v8609_v49 = vld [vmem:[#allocation2 + $0x4b0] ss:$8 sps:$4 sm:$0xff]  }
 0x145   :  { %5928 = vmatpush1.bf16.msra.mxu1 %v8531_v50  ;;  %v8612_v50 = vld [vmem:[#allocation2 + $0x11b0] ss:$8 sps:$4 sm:$0xff]  }
 0x146   :  { %6461 = vmatpush1.bf16.msra.mxu0 %v8534_v53  ;;  %5929 = vmatprep.subr.bf16.mxu1 %v8539_v55  ;;  %v8617_v53 = vld [vmem:[#allocation2 + $0x4c4] ss:$8 sps:$4 sm:$0xff]  }
 0x147   :  { %6462 = vmatprep.subr.bf16.mxu0 %v8542_v30  ;;  %v8620_v55 = vld [vmem:[#allocation2 + $0x11c4] ss:$8 sps:$4 sm:$0xff]   ;;  %v8615_v30 = vld [vmem:[#allocation2 + $0x4c0] ss:$8 sps:$4 sm:$0xff]  }
 0x149   :  { %5930 = vmatpush1.bf16.msra.mxu1 %v8537_v36  ;;  %v8618_v36 = vld [vmem:[#allocation2 + $0x11c0] ss:$8 sps:$4 sm:$0xff]  }
 0x14a   :  { %6463 = vmatpush1.bf16.msra.mxu0 %v8540_v57  ;;  %5940 = vmatprep.subr.bf16.mxu1 %v8545_v58  ;;  %v8623_v57 = vld [vmem:[#allocation2 + $0x4d4] ss:$8 sps:$4 sm:$0xff]  }
 0x14b   :  { %6473 = vmatprep.subr.bf16.mxu0 %v8548_v59  ;;  %v8626_v58 = vld [vmem:[#allocation2 + $0x11d4] ss:$8 sps:$4 sm:$0xff]   ;;  %v8621_v59 = vld [vmem:[#allocation2 + $0x4d0] ss:$8 sps:$4 sm:$0xff]  }
 0x14c   :  { %5932 = vmatmul.mubr.bf16.vlgmr.msra.gmra.mrb[0].mxu1 %v1025_v62  ;;  %v1175_v62 = vcombine.high %v9784_v38, %v9784_v38 }
 0x14d   :  { %6465 = vmatmul.mubr.bf16.vlgmr.msra.gmra.mrb[0].mxu0 %v9816_v63  ;;  %5941 = vmatpush1.bf16.msra.mxu1 %v8543_v60  ;;  %v8629_v60 = vld [vmem:[#allocation2 + $0x4e4] ss:$8 sps:$4 sm:$0xff]  }
 0x14e   :  { %6474 = vmatpush1.bf16.msra.mxu0 %v8546_v61  ;;  %5942 = vmatprep.subr.bf16.mxu1 %v8551_v0  ;;  %v8632_v61 = vld [vmem:[#allocation2 + $0x11e4] ss:$8 sps:$4 sm:$0xff]   ;;  %v8627_v0 = vld [vmem:[#allocation2 + $0x4e0] ss:$8 sps:$4 sm:$0xff]  }
 0x14f   :  { %6475 = vmatprep.subr.bf16.mxu0 %v8554_v1  ;;  %5972 = vmatprep.mubr.bf16.mxu1 %v9819_v2  ;;  %v8630_v1 = vld [vmem:[#allocation2 + $0x11e0] ss:$8 sps:$4 sm:$0xff]  }
 0x150   :  { %6505 = vmatprep.mubr.bf16.mxu0 %v1222_v4  ;;  %v8635_v4 = vld [vmem:[#allocation2 + $0x4f4] ss:$8 sps:$4 sm:$0xff]  }
 0x151   :  { %5943 = vmatpush1.bf16.msra.mxu1 %v8549_v48  ;;  %v8638_v48 = vld [vmem:[#allocation2 + $0x11f4] ss:$8 sps:$4 sm:$0xff]  }
 0x152   :  { %6476 = vmatpush1.bf16.msra.mxu0 %v8552_v5  ;;  %5944 = vmatprep.subr.bf16.mxu1 %v8557_v14  ;;  %v9828_v5 = vrot.slane %v1175_v62, %v9719_v51  ;;  %v8633_v14 = vld [vmem:[#allocation2 + $0x4f0] ss:$8 sps:$4 sm:$0xff]  }
 0x153   :  { %6477 = vmatprep.subr.bf16.mxu0 %v8560_v6  ;;  %v8636_v6 = vld [vmem:[#allocation2 + $0x11f0] ss:$8 sps:$4 sm:$0xff]  }
 0x154   :  { %v1191_v38 = vcombine.high %v9828_v5, %v9828_v5  ;;  %v8708_v62 = vld [vmem:[#allocation2 + $0x12b0] ss:$8 sps:$4 sm:$0xff]  }
 0x155   :  { %5945 = vmatpush1.bf16.msra.mxu1 %v8555_v7  ;;  %v8641_v7 = vld [vmem:[#allocation2 + $0x504] ss:$8 sps:$4 sm:$0xff]  }
 0x156   :  { %6478 = vmatpush1.bf16.msra.mxu0 %v8558_v8  ;;  %5946 = vmatprep.subr.bf16.mxu1 %v8563_v56  ;;  %v8644_v8 = vld [vmem:[#allocation2 + $0x1204] ss:$8 sps:$4 sm:$0xff]   ;;  %v9834_v56 = vrot.slane %v9808_v54, %v9719_v51  ;;  %v8645_v54 = vld [vmem:[#allocation2 + $0x510] ss:$8 sps:$4 sm:$0xff]  }
 0x157   :  { %6479 = vmatprep.subr.bf16.mxu0 %v8566_v9  ;;  %v1220_v9 = vcombine.high %v9816_v63, %v9816_v63  ;;  %v8648_v63 = vld [vmem:[#allocation2 + $0x1210] ss:$8 sps:$4 sm:$0xff]  }
 0x159   :  { %5947 = vmatpush1.bf16.msra.mxu1 %v8561_v10  ;;  %v8639_v10 = vld [vmem:[#allocation2 + $0x500] ss:$8 sps:$4 sm:$0xff]  }
 0x15a   :  { %6480 = vmatpush1.bf16.msra.mxu0 %v8564_v11  ;;  %5948 = vmatprep.subr.bf16.mxu1 %v8569_v12  ;;  %v8642_v11 = vld [vmem:[#allocation2 + $0x1200] ss:$8 sps:$4 sm:$0xff]   ;;  %v8647_v12 = vld [vmem:[#allocation2 + $0x514] ss:$8 sps:$4 sm:$0xff]  }
 0x15b   :  { %6481 = vmatprep.subr.bf16.mxu0 %v8572_v13  ;;  %v8650_v13 = vld [vmem:[#allocation2 + $0x1214] ss:$8 sps:$4 sm:$0xff]  }
 0x15d   :  { %5949 = vmatpush1.bf16.msra.mxu1 %v8567_v16  ;;  %v1075_v16 = vcombine.high %v9819_v2, %v9819_v2  ;;  %v8651_v2 = vld [vmem:[#allocation2 + $0x520] ss:$8 sps:$4 sm:$0xff]  }
 0x15e   :  { %6482 = vmatpush1.bf16.msra.mxu0 %v8570_v17  ;;  %5950 = vmatprep.subr.bf16.mxu1 %v8575_v18  ;;  %v9841_v17 = vrot.slane %v1191_v38, %v9719_v51  ;;  %v8653_v18 = vld [vmem:[#allocation2 + $0x524] ss:$8 sps:$4 sm:$0xff]  }
 0x15f   :  { %6483 = vmatprep.subr.bf16.mxu0 %v8578_v19  ;;  %v8656_v19 = vld [vmem:[#allocation2 + $0x1224] ss:$8 sps:$4 sm:$0xff]  }
 0x160   :  { %v8725_v38 = vld [vmem:[#allocation2 + $0x5e4] ss:$8 sps:$4 sm:$0xff]  }
 0x161   :  { %5951 = vmatpush1.bf16.msra.mxu1 %v8573_v20  ;;  %v8654_v20 = vld [vmem:[#allocation2 + $0x1220] ss:$8 sps:$4 sm:$0xff]  }
 0x162   :  { %6484 = vmatpush1.bf16.msra.mxu0 %v8576_v22  ;;  %5952 = vmatprep.subr.bf16.mxu1 %v8581_v23  ;;  %v8659_v22 = vld [vmem:[#allocation2 + $0x534] ss:$8 sps:$4 sm:$0xff]  }
 0x163   :  { %6485 = vmatprep.subr.bf16.mxu0 %v8584_v24  ;;  %v8662_v23 = vld [vmem:[#allocation2 + $0x1234] ss:$8 sps:$4 sm:$0xff]   ;;  %v8657_v24 = vld [vmem:[#allocation2 + $0x530] ss:$8 sps:$4 sm:$0xff]  }
 0x165   :  { %5953 = vmatpush1.bf16.msra.mxu1 %v8579_v25  ;;  %v8660_v25 = vld [vmem:[#allocation2 + $0x1230] ss:$8 sps:$4 sm:$0xff]  }
 0x166   :  { %6486 = vmatpush1.bf16.msra.mxu0 %v8582_v26  ;;  %5954 = vmatprep.subr.bf16.mxu1 %v8587_v27  ;;  %v8665_v26 = vld [vmem:[#allocation2 + $0x544] ss:$8 sps:$4 sm:$0xff]  }
 0x167   :  { %6487 = vmatprep.subr.bf16.mxu0 %v8590_v29  ;;  %v8668_v27 = vld [vmem:[#allocation2 + $0x1244] ss:$8 sps:$4 sm:$0xff]   ;;  %v8663_v29 = vld [vmem:[#allocation2 + $0x540] ss:$8 sps:$4 sm:$0xff]  }
 0x169   :  { %5955 = vmatpush1.bf16.msra.mxu1 %v8585_v31  ;;  %v8666_v31 = vld [vmem:[#allocation2 + $0x1240] ss:$8 sps:$4 sm:$0xff]  }
 0x16a   :  { %6488 = vmatpush1.bf16.msra.mxu0 %v8588_v32  ;;  %5956 = vmatprep.subr.bf16.mxu1 %v8593_v33  ;;  %v8671_v32 = vld [vmem:[#allocation2 + $0x554] ss:$8 sps:$4 sm:$0xff]  }
 0x16b   :  { %6489 = vmatprep.subr.bf16.mxu0 %v8596_v34  ;;  %v8674_v33 = vld [vmem:[#allocation2 + $0x1254] ss:$8 sps:$4 sm:$0xff]   ;;  %v8669_v34 = vld [vmem:[#allocation2 + $0x550] ss:$8 sps:$4 sm:$0xff]  }
 0x16d   :  { %5957 = vmatpush1.bf16.msra.mxu1 %v8591_v52  ;;  %v8672_v52 = vld [vmem:[#allocation2 + $0x1250] ss:$8 sps:$4 sm:$0xff]  }
 0x16e   :  { %6490 = vmatpush1.bf16.msra.mxu0 %v8594_v35  ;;  %5958 = vmatprep.subr.bf16.mxu1 %v8599_v37  ;;  %v8677_v35 = vld [vmem:[#allocation2 + $0x564] ss:$8 sps:$4 sm:$0xff]  }
 0x16f   :  { %6491 = vmatprep.subr.bf16.mxu0 %v8602_v39  ;;  %v8680_v37 = vld [vmem:[#allocation2 + $0x1264] ss:$8 sps:$4 sm:$0xff]   ;;  %v8675_v39 = vld [vmem:[#allocation2 + $0x560] ss:$8 sps:$4 sm:$0xff]  }
 0x171   :  { %5959 = vmatpush1.bf16.msra.mxu1 %v8597_v40  ;;  %v8678_v40 = vld [vmem:[#allocation2 + $0x1260] ss:$8 sps:$4 sm:$0xff]  }
 0x172   :  { %6492 = vmatpush1.bf16.msra.mxu0 %v8600_v42  ;;  %5960 = vmatprep.subr.bf16.mxu1 %v8605_v21  ;;  %v8683_v42 = vld [vmem:[#allocation2 + $0x574] ss:$8 sps:$4 sm:$0xff]  }
 0x173   :  { %6493 = vmatprep.subr.bf16.mxu0 %v8608_v43  ;;  %v8686_v21 = vld [vmem:[#allocation2 + $0x1274] ss:$8 sps:$4 sm:$0xff]   ;;  %v8681_v43 = vld [vmem:[#allocation2 + $0x570] ss:$8 sps:$4 sm:$0xff]  }
 0x175   :  { %5961 = vmatpush1.bf16.msra.mxu1 %v8603_v44  ;;  %v8684_v44 = vld [vmem:[#allocation2 + $0x1270] ss:$8 sps:$4 sm:$0xff]  }
 0x176   :  { %6494 = vmatpush1.bf16.msra.mxu0 %v8606_v46  ;;  %5962 = vmatprep.subr.bf16.mxu1 %v8611_v47  ;;  %v8689_v46 = vld [vmem:[#allocation2 + $0x584] ss:$8 sps:$4 sm:$0xff]  }
 0x177   :  { %6495 = vmatprep.subr.bf16.mxu0 %v8614_v28  ;;  %v8692_v47 = vld [vmem:[#allocation2 + $0x1284] ss:$8 sps:$4 sm:$0xff]   ;;  %v8687_v28 = vld [vmem:[#allocation2 + $0x580] ss:$8 sps:$4 sm:$0xff]  }
 0x179   :  { %5963 = vmatpush1.bf16.msra.mxu1 %v8609_v49  ;;  %v8690_v49 = vld [vmem:[#allocation2 + $0x1280] ss:$8 sps:$4 sm:$0xff]  }
 0x17a   :  { %6496 = vmatpush1.bf16.msra.mxu0 %v8612_v50  ;;  %5964 = vmatprep.subr.bf16.mxu1 %v8617_v53  ;;  %v8695_v50 = vld [vmem:[#allocation2 + $0x594] ss:$8 sps:$4 sm:$0xff]  }
 0x17b   :  { %6497 = vmatprep.subr.bf16.mxu0 %v8620_v55  ;;  %v8698_v53 = vld [vmem:[#allocation2 + $0x1294] ss:$8 sps:$4 sm:$0xff]   ;;  %v8693_v55 = vld [vmem:[#allocation2 + $0x590] ss:$8 sps:$4 sm:$0xff]  }
 0x17d   :  { %5965 = vmatpush1.bf16.msra.mxu1 %v8615_v30  ;;  %v8696_v30 = vld [vmem:[#allocation2 + $0x1290] ss:$8 sps:$4 sm:$0xff]  }
 0x17e   :  { %6498 = vmatpush1.bf16.msra.mxu0 %v8618_v36  ;;  %5966 = vmatprep.subr.bf16.mxu1 %v8623_v57  ;;  %v8701_v36 = vld [vmem:[#allocation2 + $0x5a4] ss:$8 sps:$4 sm:$0xff]  }
 0x17f   :  { %6499 = vmatprep.subr.bf16.mxu0 %v8626_v58  ;;  %v8704_v57 = vld [vmem:[#allocation2 + $0x12a4] ss:$8 sps:$4 sm:$0xff]   ;;  %v8699_v58 = vld [vmem:[#allocation2 + $0x5a0] ss:$8 sps:$4 sm:$0xff]  }
 0x181   :  { %5967 = vmatpush1.bf16.msra.mxu1 %v8621_v59  ;;  %v8702_v59 = vld [vmem:[#allocation2 + $0x12a0] ss:$8 sps:$4 sm:$0xff]  }
 0x182   :  { %6500 = vmatpush1.bf16.msra.mxu0 %v8624_v41  ;;  %5968 = vmatprep.subr.bf16.mxu1 %v8629_v60  ;;  %v8707_v41 = vld [vmem:[#allocation2 + $0x5b4] ss:$8 sps:$4 sm:$0xff]  }
 0x183   :  { %6501 = vmatprep.subr.bf16.mxu0 %v8632_v61  ;;  %v8710_v60 = vld [vmem:[#allocation2 + $0x12b4] ss:$8 sps:$4 sm:$0xff]   ;;  %v8705_v61 = vld [vmem:[#allocation2 + $0x5b0] ss:$8 sps:$4 sm:$0xff]  }
 0x185   :  { %5969 = vmatpush1.bf16.msra.mxu1 %v8627_v0  ;;  %v8713_v0 = vld [vmem:[#allocation2 + $0x5c4] ss:$8 sps:$4 sm:$0xff]  }
 0x186   :  { %6502 = vmatpush1.bf16.msra.mxu0 %v8630_v1  ;;  %5970 = vmatprep.subr.bf16.mxu1 %v8635_v4  ;;  %v8716_v1 = vld [vmem:[#allocation2 + $0x12c4] ss:$8 sps:$4 sm:$0xff]   ;;  %v8711_v4 = vld [vmem:[#allocation2 + $0x5c0] ss:$8 sps:$4 sm:$0xff]  }
 0x187   :  { %6503 = vmatprep.subr.bf16.mxu0 %v8638_v48  ;;  %v8714_v48 = vld [vmem:[#allocation2 + $0x12c0] ss:$8 sps:$4 sm:$0xff]  }
 0x189   :  { %5971 = vmatpush1.bf16.msra.mxu1 %v8633_v14  ;;  %v8719_v14 = vld [vmem:[#allocation2 + $0x5d4] ss:$8 sps:$4 sm:$0xff]  }
 0x18a   :  { %6504 = vmatpush1.bf16.msra.mxu0 %v8636_v6  ;;  %5981 = vmatprep.subr.bf16.mxu1 %v8641_v7  ;;  %v8722_v6 = vld [vmem:[#allocation2 + $0x12d4] ss:$8 sps:$4 sm:$0xff]   ;;  %v8717_v7 = vld [vmem:[#allocation2 + $0x5d0] ss:$8 sps:$4 sm:$0xff]  }
 0x18b   :  { %6514 = vmatprep.subr.bf16.mxu0 %v8644_v8  ;;  %v8720_v8 = vld [vmem:[#allocation2 + $0x12d0] ss:$8 sps:$4 sm:$0xff]  }
 0x18c   :  { %5973 = vmatmul.mubr.bf16.vlgmr.msra.gmra.mrb[0].mxu1 %v9834_v56 }
 0x18d   :  { %6506 = vmatmul.mubr.bf16.vlgmr.msra.gmra.mrb[0].mxu0 %v1220_v9  ;;  %5982 = vmatpush1.bf16.msra.mxu1 %v8639_v10  ;;  %v8728_v9 = vld [vmem:[#allocation2 + $0x12e4] ss:$8 sps:$4 sm:$0xff]  }
 0x18e   :  { %6515 = vmatpush1.bf16.msra.mxu0 %v8642_v11  ;;  %5983 = vmatprep.subr.bf16.mxu1 %v8647_v12  ;;  %v9500_v10 = vld [vmem:[%s10015_s0 + $0x8] sm:$0xff] }
 0x18f   :  { %6516 = vmatprep.subr.bf16.mxu0 %v8650_v13  ;;  %6013 = vmatprep.mubr.bf16.mxu1 %v1075_v16  ;;  %v1028_v11 = vcombine.high %v9500_v10, %v9500_v10  ;;  %v8723_v12 = vld [vmem:[#allocation2 + $0x5e0] ss:$8 sps:$4 sm:$0xff]   ;;  %v8731_v16 = vld [vmem:[#allocation2 + $0x5f4] ss:$8 sps:$4 sm:$0xff]   ;;  %v8802_v10 = vld [vmem:[#allocation2 + $0x6b0] ss:$8 sps:$4 sm:$0xff]  }
 0x190   :  { %6546 = vmatprep.mubr.bf16.mxu0 %v9841_v17  ;;  %v8726_v13 = vld [vmem:[#allocation2 + $0x12e0] ss:$8 sps:$4 sm:$0xff]  }
 0x191   :  { %5984 = vmatpush1.bf16.msra.mxu1 %v8645_v54  ;;  %v8734_v54 = vld [vmem:[#allocation2 + $0x12f4] ss:$8 sps:$4 sm:$0xff]  }
 0x192   :  { %6517 = vmatpush1.bf16.msra.mxu0 %v8648_v63  ;;  %5985 = vmatprep.subr.bf16.mxu1 %v8653_v18  ;;  %v9849_v63 = vrot.slane %v1028_v11, %v9719_v51  ;;  %v8729_v18 = vld [vmem:[#allocation2 + $0x5f0] ss:$8 sps:$4 sm:$0xff]  }
 0x193   :  { %6518 = vmatprep.subr.bf16.mxu0 %v8656_v19  ;;  %v8732_v19 = vld [vmem:[#allocation2 + $0x12f0] ss:$8 sps:$4 sm:$0xff]  }
 0x194   :  { %v8805_v11 = vld [vmem:[#allocation2 + $0x13b0] ss:$8 sps:$4 sm:$0xff]  }
 0x195   :  { %5986 = vmatpush1.bf16.msra.mxu1 %v8651_v2  ;;  %v8737_v2 = vld [vmem:[#allocation2 + $0x604] ss:$8 sps:$4 sm:$0xff]  }
 0x196   :  { %6519 = vmatpush1.bf16.msra.mxu0 %v8654_v20  ;;  %5987 = vmatprep.subr.bf16.mxu1 %v8659_v22  ;;  %v8741_v20 = vld [vmem:[#allocation2 + $0x1304] ss:$8 sps:$4 sm:$0xff]   ;;  %v1044_v22 = vcombine.high %v9849_v63, %v9849_v63 }
 0x197   :  { %6520 = vmatprep.subr.bf16.mxu0 %v8662_v23  ;;  %v1073_v23 = vcombine.high %v9834_v56, %v9834_v56  ;;  %v8745_v56 = vld [vmem:[#allocation2 + $0x1310] ss:$8 sps:$4 sm:$0xff]  }
 0x199   :  { %5988 = vmatpush1.bf16.msra.mxu1 %v8657_v24  ;;  %v9857_v24 = vrot.slane %v9828_v5, %v9719_v51  ;;  %v8742_v5 = vld [vmem:[#allocation2 + $0x610] ss:$8 sps:$4 sm:$0xff]  }
 0x19a   :  { %6521 = vmatpush1.bf16.msra.mxu0 %v8660_v25  ;;  %5989 = vmatprep.subr.bf16.mxu1 %v8665_v26  ;;  %v8735_v25 = vld [vmem:[#allocation2 + $0x600] ss:$8 sps:$4 sm:$0xff]  }
 0x19b   :  { %6522 = vmatprep.subr.bf16.mxu0 %v8668_v27  ;;  %v8739_v26 = vld [vmem:[#allocation2 + $0x1300] ss:$8 sps:$4 sm:$0xff]   ;;  %v8744_v27 = vld [vmem:[#allocation2 + $0x614] ss:$8 sps:$4 sm:$0xff]  }
 0x19d   :  { %5990 = vmatpush1.bf16.msra.mxu1 %v8663_v29  ;;  %v8747_v29 = vld [vmem:[#allocation2 + $0x1314] ss:$8 sps:$4 sm:$0xff]  }
 0x19e   :  { %6523 = vmatpush1.bf16.msra.mxu0 %v8666_v31  ;;  %5991 = vmatprep.subr.bf16.mxu1 %v8671_v32  ;;  %v9860_v31 = vrot.slane %v1044_v22, %v9719_v51  ;;  %v1223_v32 = vcombine.high %v9841_v17, %v9841_v17  ;;  %v8756_v17 = vld [vmem:[#allocation2 + $0x634] ss:$8 sps:$4 sm:$0xff]   ;;  %v8822_v22 = vld [vmem:[#allocation2 + $0x6e4] ss:$8 sps:$4 sm:$0xff]  }
 0x19f   :  { %6524 = vmatprep.subr.bf16.mxu0 %v8674_v33  ;;  %v8750_v33 = vld [vmem:[#allocation2 + $0x624] ss:$8 sps:$4 sm:$0xff]  }
 0x1a1   :  { %5992 = vmatpush1.bf16.msra.mxu1 %v8669_v34  ;;  %v8753_v34 = vld [vmem:[#allocation2 + $0x1324] ss:$8 sps:$4 sm:$0xff]  }
 0x1a2   :  { %6525 = vmatpush1.bf16.msra.mxu0 %v8672_v52  ;;  %5993 = vmatprep.subr.bf16.mxu1 %v8677_v35  ;;  %v8748_v52 = vld [vmem:[#allocation2 + $0x620] ss:$8 sps:$4 sm:$0xff]  }
 0x1a3   :  { %6526 = vmatprep.subr.bf16.mxu0 %v8680_v37  ;;  %v8751_v35 = vld [vmem:[#allocation2 + $0x1320] ss:$8 sps:$4 sm:$0xff]   ;;  %v8759_v37 = vld [vmem:[#allocation2 + $0x1334] ss:$8 sps:$4 sm:$0xff]  }
 0x1a5   :  { %5994 = vmatpush1.bf16.msra.mxu1 %v8675_v39  ;;  %v8754_v39 = vld [vmem:[#allocation2 + $0x630] ss:$8 sps:$4 sm:$0xff]  }
 0x1a6   :  { %6527 = vmatpush1.bf16.msra.mxu0 %v8678_v40  ;;  %5995 = vmatprep.subr.bf16.mxu1 %v8683_v42  ;;  %v8757_v40 = vld [vmem:[#allocation2 + $0x1330] ss:$8 sps:$4 sm:$0xff]   ;;  %v8762_v42 = vld [vmem:[#allocation2 + $0x644] ss:$8 sps:$4 sm:$0xff]  }
 0x1a7   :  { %6528 = vmatprep.subr.bf16.mxu0 %v8686_v21  ;;  %v8765_v21 = vld [vmem:[#allocation2 + $0x1344] ss:$8 sps:$4 sm:$0xff]  }
 0x1a9   :  { %5996 = vmatpush1.bf16.msra.mxu1 %v8681_v43  ;;  %v8760_v43 = vld [vmem:[#allocation2 + $0x640] ss:$8 sps:$4 sm:$0xff]  }
 0x1aa   :  { %6529 = vmatpush1.bf16.msra.mxu0 %v8684_v44  ;;  %5997 = vmatprep.subr.bf16.mxu1 %v8689_v46  ;;  %v8763_v44 = vld [vmem:[#allocation2 + $0x1340] ss:$8 sps:$4 sm:$0xff]   ;;  %v8768_v46 = vld [vmem:[#allocation2 + $0x654] ss:$8 sps:$4 sm:$0xff]  }
 0x1ab   :  { %6530 = vmatprep.subr.bf16.mxu0 %v8692_v47  ;;  %v8771_v47 = vld [vmem:[#allocation2 + $0x1354] ss:$8 sps:$4 sm:$0xff]  }
 0x1ad   :  { %5998 = vmatpush1.bf16.msra.mxu1 %v8687_v28  ;;  %v8766_v28 = vld [vmem:[#allocation2 + $0x650] ss:$8 sps:$4 sm:$0xff]  }
 0x1ae   :  { %6531 = vmatpush1.bf16.msra.mxu0 %v8690_v49  ;;  %5999 = vmatprep.subr.bf16.mxu1 %v8695_v50  ;;  %v8769_v49 = vld [vmem:[#allocation2 + $0x1350] ss:$8 sps:$4 sm:$0xff]   ;;  %v8774_v50 = vld [vmem:[#allocation2 + $0x664] ss:$8 sps:$4 sm:$0xff]  }
 0x1af   :  { %6532 = vmatprep.subr.bf16.mxu0 %v8698_v53  ;;  %v8777_v53 = vld [vmem:[#allocation2 + $0x1364] ss:$8 sps:$4 sm:$0xff]  }
 0x1b1   :  { %6000 = vmatpush1.bf16.msra.mxu1 %v8693_v55  ;;  %v8772_v55 = vld [vmem:[#allocation2 + $0x660] ss:$8 sps:$4 sm:$0xff]  }
 0x1b2   :  { %6533 = vmatpush1.bf16.msra.mxu0 %v8696_v30  ;;  %6001 = vmatprep.subr.bf16.mxu1 %v8701_v36  ;;  %v8775_v30 = vld [vmem:[#allocation2 + $0x1360] ss:$8 sps:$4 sm:$0xff]   ;;  %v8780_v36 = vld [vmem:[#allocation2 + $0x674] ss:$8 sps:$4 sm:$0xff]  }
 0x1b3   :  { %6534 = vmatprep.subr.bf16.mxu0 %v8704_v57  ;;  %v8783_v57 = vld [vmem:[#allocation2 + $0x1374] ss:$8 sps:$4 sm:$0xff]  }
 0x1b5   :  { %6002 = vmatpush1.bf16.msra.mxu1 %v8699_v58  ;;  %v8778_v58 = vld [vmem:[#allocation2 + $0x670] ss:$8 sps:$4 sm:$0xff]  }
 0x1b6   :  { %6535 = vmatpush1.bf16.msra.mxu0 %v8702_v59  ;;  %6003 = vmatprep.subr.bf16.mxu1 %v8707_v41  ;;  %v8781_v59 = vld [vmem:[#allocation2 + $0x1370] ss:$8 sps:$4 sm:$0xff]   ;;  %v8786_v41 = vld [vmem:[#allocation2 + $0x684] ss:$8 sps:$4 sm:$0xff]  }
 0x1b7   :  { %6536 = vmatprep.subr.bf16.mxu0 %v8710_v60  ;;  %v8789_v60 = vld [vmem:[#allocation2 + $0x1384] ss:$8 sps:$4 sm:$0xff]  }
 0x1b9   :  { %6004 = vmatpush1.bf16.msra.mxu1 %v8705_v61  ;;  %v8784_v61 = vld [vmem:[#allocation2 + $0x680] ss:$8 sps:$4 sm:$0xff]  }
 0x1ba   :  { %6537 = vmatpush1.bf16.msra.mxu0 %v8708_v62  ;;  %6005 = vmatprep.subr.bf16.mxu1 %v8713_v0  ;;  %v8787_v62 = vld [vmem:[#allocation2 + $0x1380] ss:$8 sps:$4 sm:$0xff]   ;;  %v8792_v0 = vld [vmem:[#allocation2 + $0x694] ss:$8 sps:$4 sm:$0xff]  }
 0x1bb   :  { %6538 = vmatprep.subr.bf16.mxu0 %v8716_v1  ;;  %v8795_v1 = vld [vmem:[#allocation2 + $0x1394] ss:$8 sps:$4 sm:$0xff]  }
 0x1bd   :  { %6006 = vmatpush1.bf16.msra.mxu1 %v8711_v4  ;;  %v8790_v4 = vld [vmem:[#allocation2 + $0x690] ss:$8 sps:$4 sm:$0xff]  }
 0x1be   :  { %6539 = vmatpush1.bf16.msra.mxu0 %v8714_v48  ;;  %6007 = vmatprep.subr.bf16.mxu1 %v8719_v14  ;;  %v8793_v48 = vld [vmem:[#allocation2 + $0x1390] ss:$8 sps:$4 sm:$0xff]   ;;  %v8798_v14 = vld [vmem:[#allocation2 + $0x6a4] ss:$8 sps:$4 sm:$0xff]  }
 0x1bf   :  { %6540 = vmatprep.subr.bf16.mxu0 %v8722_v6  ;;  %v8801_v6 = vld [vmem:[#allocation2 + $0x13a4] ss:$8 sps:$4 sm:$0xff]  }
 0x1c1   :  { %6008 = vmatpush1.bf16.msra.mxu1 %v8717_v7  ;;  %v8796_v7 = vld [vmem:[#allocation2 + $0x6a0] ss:$8 sps:$4 sm:$0xff]  }
 0x1c2   :  { %6541 = vmatpush1.bf16.msra.mxu0 %v8720_v8  ;;  %6009 = vmatprep.subr.bf16.mxu1 %v8725_v38  ;;  %v8799_v8 = vld [vmem:[#allocation2 + $0x13a0] ss:$8 sps:$4 sm:$0xff]   ;;  %v8804_v38 = vld [vmem:[#allocation2 + $0x6b4] ss:$8 sps:$4 sm:$0xff]  }
 0x1c3   :  { %6542 = vmatprep.subr.bf16.mxu0 %v8728_v9  ;;  %v8807_v9 = vld [vmem:[#allocation2 + $0x13b4] ss:$8 sps:$4 sm:$0xff]  }
 0x1c5   :  { %6010 = vmatpush1.bf16.msra.mxu1 %v8723_v12  ;;  %v8810_v12 = vld [vmem:[#allocation2 + $0x6c4] ss:$8 sps:$4 sm:$0xff]  }
 0x1c6   :  { %6543 = vmatpush1.bf16.msra.mxu0 %v8726_v13  ;;  %6011 = vmatprep.subr.bf16.mxu1 %v8731_v16  ;;  %v8813_v13 = vld [vmem:[#allocation2 + $0x13c4] ss:$8 sps:$4 sm:$0xff]   ;;  %v8808_v16 = vld [vmem:[#allocation2 + $0x6c0] ss:$8 sps:$4 sm:$0xff]  }
 0x1c7   :  { %6544 = vmatprep.subr.bf16.mxu0 %v8734_v54  ;;  %v8811_v54 = vld [vmem:[#allocation2 + $0x13c0] ss:$8 sps:$4 sm:$0xff]  }
 0x1c9   :  { %6012 = vmatpush1.bf16.msra.mxu1 %v8729_v18  ;;  %v8816_v18 = vld [vmem:[#allocation2 + $0x6d4] ss:$8 sps:$4 sm:$0xff]  }
 0x1ca   :  { %6545 = vmatpush1.bf16.msra.mxu0 %v8732_v19  ;;  %6022 = vmatprep.subr.bf16.mxu1 %v8737_v2  ;;  %v8819_v19 = vld [vmem:[#allocation2 + $0x13d4] ss:$8 sps:$4 sm:$0xff]   ;;  %v8814_v2 = vld [vmem:[#allocation2 + $0x6d0] ss:$8 sps:$4 sm:$0xff]  }
 0x1cb   :  { %6555 = vmatprep.subr.bf16.mxu0 %v8741_v20  ;;  %v8817_v20 = vld [vmem:[#allocation2 + $0x13d0] ss:$8 sps:$4 sm:$0xff]  }
 0x1cc   :  { %6014 = vmatmul.mubr.bf16.vlgmr.msra.gmra.mrb[0].mxu1 %v1073_v23  ;;  %v8825_v23 = vld [vmem:[#allocation2 + $0x13e4] ss:$8 sps:$4 sm:$0xff]  }
 0x1cd   :  { %6547 = vmatmul.mubr.bf16.vlgmr.msra.gmra.mrb[0].mxu0 %v9857_v24  ;;  %6023 = vmatpush1.bf16.msra.mxu1 %v8735_v25  ;;  %v9869_v25 = vld [vmem:[%s10015_s0 + $0x28] sm:$0xff] }
 0x1ce   :  { %6556 = vmatpush1.bf16.msra.mxu0 %v8739_v26  ;;  %6024 = vmatprep.subr.bf16.mxu1 %v8744_v27  ;;  %v8820_v26 = vld [vmem:[#allocation2 + $0x6e0] ss:$8 sps:$4 sm:$0xff]  }
 0x1cf   :  { %6557 = vmatprep.subr.bf16.mxu0 %v8747_v29  ;;  %6054 = vmatprep.mubr.bf16.mxu1 %v9860_v31  ;;  %v8823_v27 = vld [vmem:[#allocation2 + $0x13e0] ss:$8 sps:$4 sm:$0xff]   ;;  %v8828_v29 = vld [vmem:[#allocation2 + $0x6f4] ss:$8 sps:$4 sm:$0xff]  }
 0x1d0   :  { %6587 = vmatprep.mubr.bf16.mxu0 %v1223_v32  ;;  %v8831_v32 = vld [vmem:[#allocation2 + $0x13f4] ss:$8 sps:$4 sm:$0xff]  }
 0x1d1   :  { %6025 = vmatpush1.bf16.msra.mxu1 %v8742_v5  ;;  %v9873_v5 = vrot.slane %v9869_v25, %v9719_v51 }
 0x1d2   :  { %6558 = vmatpush1.bf16.msra.mxu0 %v8745_v56  ;;  %6026 = vmatprep.subr.bf16.mxu1 %v8750_v33  ;;  %v8826_v56 = vld [vmem:[#allocation2 + $0x6f0] ss:$8 sps:$4 sm:$0xff]  }
 0x1d3   :  { %6559 = vmatprep.subr.bf16.mxu0 %v8753_v34  ;;  %v8829_v33 = vld [vmem:[#allocation2 + $0x13f0] ss:$8 sps:$4 sm:$0xff]   ;;  %v8835_v34 = vld [vmem:[#allocation2 + $0x704] ss:$8 sps:$4 sm:$0xff]  }
 0x1d5   :  { %6027 = vmatpush1.bf16.msra.mxu1 %v8748_v52  ;;  %v8838_v52 = vld [vmem:[#allocation2 + $0x1404] ss:$8 sps:$4 sm:$0xff]  }
 0x1d6   :  { %6560 = vmatpush1.bf16.msra.mxu0 %v8751_v35  ;;  %6028 = vmatprep.subr.bf16.mxu1 %v8756_v17  ;;  %v1239_v35 = vcombine.high %v9873_v5, %v9873_v5  ;;  %v9879_v17 = vrot.slane %v9849_v63, %v9719_v51  ;;  %v8839_v63 = vld [vmem:[#allocation2 + $0x710] ss:$8 sps:$4 sm:$0xff]  }
 0x1d7   :  { %6561 = vmatprep.subr.bf16.mxu0 %v8759_v37  ;;  %v1221_v37 = vcombine.high %v9857_v24, %v9857_v24  ;;  %v8842_v24 = vld [vmem:[#allocation2 + $0x1410] ss:$8 sps:$4 sm:$0xff]  }
 0x1d9   :  { %6029 = vmatpush1.bf16.msra.mxu1 %v8754_v39  ;;  %v8833_v39 = vld [vmem:[#allocation2 + $0x700] ss:$8 sps:$4 sm:$0xff]  }
 0x1da   :  { %6562 = vmatpush1.bf16.msra.mxu0 %v8757_v40  ;;  %6030 = vmatprep.subr.bf16.mxu1 %v8762_v42  ;;  %v8836_v40 = vld [vmem:[#allocation2 + $0x1400] ss:$8 sps:$4 sm:$0xff]   ;;  %v8841_v42 = vld [vmem:[#allocation2 + $0x714] ss:$8 sps:$4 sm:$0xff]  }
 0x1db   :  { %6563 = vmatprep.subr.bf16.mxu0 %v8765_v21  ;;  %v8844_v21 = vld [vmem:[#allocation2 + $0x1414] ss:$8 sps:$4 sm:$0xff]  }
 0x1dd   :  { %6031 = vmatpush1.bf16.msra.mxu1 %v8760_v43  ;;  %v1076_v43 = vcombine.high %v9860_v31, %v9860_v31  ;;  %v8845_v31 = vld [vmem:[#allocation2 + $0x720] ss:$8 sps:$4 sm:$0xff]  }
 0x1de   :  { %6564 = vmatpush1.bf16.msra.mxu0 %v8763_v44  ;;  %6032 = vmatprep.subr.bf16.mxu1 %v8768_v46  ;;  %v9886_v44 = vrot.slane %v1239_v35, %v9719_v51  ;;  %v8847_v46 = vld [vmem:[#allocation2 + $0x724] ss:$8 sps:$4 sm:$0xff]   ;;  %v8914_v35 = vld [vmem:[#allocation2 + $0x14d0] ss:$8 sps:$4 sm:$0xff]  }
 0x1df   :  { %6565 = vmatprep.subr.bf16.mxu0 %v8771_v47  ;;  %v8850_v47 = vld [vmem:[#allocation2 + $0x1424] ss:$8 sps:$4 sm:$0xff]  }
 0x1e1   :  { %6033 = vmatpush1.bf16.msra.mxu1 %v8766_v28  ;;  %v8848_v28 = vld [vmem:[#allocation2 + $0x1420] ss:$8 sps:$4 sm:$0xff]  }
 0x1e2   :  { %6566 = vmatpush1.bf16.msra.mxu0 %v8769_v49  ;;  %6034 = vmatprep.subr.bf16.mxu1 %v8774_v50  ;;  %v8853_v49 = vld [vmem:[#allocation2 + $0x734] ss:$8 sps:$4 sm:$0xff]  }
 0x1e3   :  { %6567 = vmatprep.subr.bf16.mxu0 %v8777_v53  ;;  %v8856_v50 = vld [vmem:[#allocation2 + $0x1434] ss:$8 sps:$4 sm:$0xff]   ;;  %v8851_v53 = vld [vmem:[#allocation2 + $0x730] ss:$8 sps:$4 sm:$0xff]  }
 0x1e5   :  { %6035 = vmatpush1.bf16.msra.mxu1 %v8772_v55  ;;  %v8854_v55 = vld [vmem:[#allocation2 + $0x1430] ss:$8 sps:$4 sm:$0xff]  }
 0x1e6   :  { %6568 = vmatpush1.bf16.msra.mxu0 %v8775_v30  ;;  %6036 = vmatprep.subr.bf16.mxu1 %v8780_v36  ;;  %v8859_v30 = vld [vmem:[#allocation2 + $0x744] ss:$8 sps:$4 sm:$0xff]  }
 0x1e7   :  { %6569 = vmatprep.subr.bf16.mxu0 %v8783_v57  ;;  %v8862_v36 = vld [vmem:[#allocation2 + $0x1444] ss:$8 sps:$4 sm:$0xff]   ;;  %v8857_v57 = vld [vmem:[#allocation2 + $0x740] ss:$8 sps:$4 sm:$0xff]  }
 0x1e9   :  { %6037 = vmatpush1.bf16.msra.mxu1 %v8778_v58  ;;  %v8860_v58 = vld [vmem:[#allocation2 + $0x1440] ss:$8 sps:$4 sm:$0xff]  }
 0x1ea   :  { %6570 = vmatpush1.bf16.msra.mxu0 %v8781_v59  ;;  %6038 = vmatprep.subr.bf16.mxu1 %v8786_v41  ;;  %v8865_v59 = vld [vmem:[#allocation2 + $0x754] ss:$8 sps:$4 sm:$0xff]  }
 0x1eb   :  { %6571 = vmatprep.subr.bf16.mxu0 %v8789_v60  ;;  %v8868_v41 = vld [vmem:[#allocation2 + $0x1454] ss:$8 sps:$4 sm:$0xff]   ;;  %v8863_v60 = vld [vmem:[#allocation2 + $0x750] ss:$8 sps:$4 sm:$0xff]  }
 0x1ed   :  { %6039 = vmatpush1.bf16.msra.mxu1 %v8784_v61  ;;  %v8866_v61 = vld [vmem:[#allocation2 + $0x1450] ss:$8 sps:$4 sm:$0xff]  }
 0x1ee   :  { %6572 = vmatpush1.bf16.msra.mxu0 %v8787_v62  ;;  %6040 = vmatprep.subr.bf16.mxu1 %v8792_v0  ;;  %v8871_v62 = vld [vmem:[#allocation2 + $0x764] ss:$8 sps:$4 sm:$0xff]  }
 0x1ef   :  { %6573 = vmatprep.subr.bf16.mxu0 %v8795_v1  ;;  %v8874_v0 = vld [vmem:[#allocation2 + $0x1464] ss:$8 sps:$4 sm:$0xff]   ;;  %v8869_v1 = vld [vmem:[#allocation2 + $0x760] ss:$8 sps:$4 sm:$0xff]  }
 0x1f1   :  { %6041 = vmatpush1.bf16.msra.mxu1 %v8790_v4  ;;  %v8872_v4 = vld [vmem:[#allocation2 + $0x1460] ss:$8 sps:$4 sm:$0xff]  }
 0x1f2   :  { %6574 = vmatpush1.bf16.msra.mxu0 %v8793_v48  ;;  %6042 = vmatprep.subr.bf16.mxu1 %v8798_v14  ;;  %v8877_v48 = vld [vmem:[#allocation2 + $0x774] ss:$8 sps:$4 sm:$0xff]  }
 0x1f3   :  { %6575 = vmatprep.subr.bf16.mxu0 %v8801_v6  ;;  %v8880_v14 = vld [vmem:[#allocation2 + $0x1474] ss:$8 sps:$4 sm:$0xff]   ;;  %v8875_v6 = vld [vmem:[#allocation2 + $0x770] ss:$8 sps:$4 sm:$0xff]  }
 0x1f5   :  { %6043 = vmatpush1.bf16.msra.mxu1 %v8796_v7  ;;  %v8878_v7 = vld [vmem:[#allocation2 + $0x1470] ss:$8 sps:$4 sm:$0xff]  }
 0x1f6   :  { %6576 = vmatpush1.bf16.msra.mxu0 %v8799_v8  ;;  %6044 = vmatprep.subr.bf16.mxu1 %v8804_v38  ;;  %v8883_v8 = vld [vmem:[#allocation2 + $0x784] ss:$8 sps:$4 sm:$0xff]  }
 0x1f7   :  { %6577 = vmatprep.subr.bf16.mxu0 %v8807_v9  ;;  %v8886_v38 = vld [vmem:[#allocation2 + $0x1484] ss:$8 sps:$4 sm:$0xff]   ;;  %v8881_v9 = vld [vmem:[#allocation2 + $0x780] ss:$8 sps:$4 sm:$0xff]  }
 0x1f9   :  { %6045 = vmatpush1.bf16.msra.mxu1 %v8802_v10  ;;  %v8884_v10 = vld [vmem:[#allocation2 + $0x1480] ss:$8 sps:$4 sm:$0xff]  }
 0x1fa   :  { %6578 = vmatpush1.bf16.msra.mxu0 %v8805_v11  ;;  %6046 = vmatprep.subr.bf16.mxu1 %v8810_v12  ;;  %v8889_v11 = vld [vmem:[#allocation2 + $0x794] ss:$8 sps:$4 sm:$0xff]  }
 0x1fb   :  { %6579 = vmatprep.subr.bf16.mxu0 %v8813_v13  ;;  %v8892_v12 = vld [vmem:[#allocation2 + $0x1494] ss:$8 sps:$4 sm:$0xff]   ;;  %v8887_v13 = vld [vmem:[#allocation2 + $0x790] ss:$8 sps:$4 sm:$0xff]  }
 0x1fd   :  { %6047 = vmatpush1.bf16.msra.mxu1 %v8808_v16  ;;  %v8890_v16 = vld [vmem:[#allocation2 + $0x1490] ss:$8 sps:$4 sm:$0xff]  }
 0x1fe   :  { %6580 = vmatpush1.bf16.msra.mxu0 %v8811_v54  ;;  %6048 = vmatprep.subr.bf16.mxu1 %v8816_v18  ;;  %v8895_v54 = vld [vmem:[#allocation2 + $0x7a4] ss:$8 sps:$4 sm:$0xff]  }
 0x1ff   :  { %6581 = vmatprep.subr.bf16.mxu0 %v8819_v19  ;;  %v8898_v18 = vld [vmem:[#allocation2 + $0x14a4] ss:$8 sps:$4 sm:$0xff]   ;;  %v8893_v19 = vld [vmem:[#allocation2 + $0x7a0] ss:$8 sps:$4 sm:$0xff]  }
 0x201   :  { %6049 = vmatpush1.bf16.msra.mxu1 %v8814_v2  ;;  %v8896_v2 = vld [vmem:[#allocation2 + $0x14a0] ss:$8 sps:$4 sm:$0xff]  }
 0x202   :  { %6582 = vmatpush1.bf16.msra.mxu0 %v8817_v20  ;;  %6050 = vmatprep.subr.bf16.mxu1 %v8822_v22  ;;  %v8901_v20 = vld [vmem:[#allocation2 + $0x7b4] ss:$8 sps:$4 sm:$0xff]  }
 0x203   :  { %6583 = vmatprep.subr.bf16.mxu0 %v8825_v23  ;;  %v8904_v22 = vld [vmem:[#allocation2 + $0x14b4] ss:$8 sps:$4 sm:$0xff]   ;;  %v8899_v23 = vld [vmem:[#allocation2 + $0x7b0] ss:$8 sps:$4 sm:$0xff]  }
 0x205   :  { %6051 = vmatpush1.bf16.msra.mxu1 %v8820_v26  ;;  %v8902_v26 = vld [vmem:[#allocation2 + $0x14b0] ss:$8 sps:$4 sm:$0xff]  }
 0x206   :  { %6584 = vmatpush1.bf16.msra.mxu0 %v8823_v27  ;;  %6052 = vmatprep.subr.bf16.mxu1 %v8828_v29  ;;  %v8907_v27 = vld [vmem:[#allocation2 + $0x7c4] ss:$8 sps:$4 sm:$0xff]  }
 0x207   :  { %6585 = vmatprep.subr.bf16.mxu0 %v8831_v32  ;;  %v8910_v29 = vld [vmem:[#allocation2 + $0x14c4] ss:$8 sps:$4 sm:$0xff]   ;;  %v8905_v32 = vld [vmem:[#allocation2 + $0x7c0] ss:$8 sps:$4 sm:$0xff]  }
 0x209   :  { %6053 = vmatpush1.bf16.msra.mxu1 %v8826_v56  ;;  %v8908_v56 = vld [vmem:[#allocation2 + $0x14c0] ss:$8 sps:$4 sm:$0xff]  }
 0x20a   :  { %6586 = vmatpush1.bf16.msra.mxu0 %v8829_v33  ;;  %6063 = vmatprep.subr.bf16.mxu1 %v8835_v34  ;;  %v8913_v33 = vld [vmem:[#allocation2 + $0x7d4] ss:$8 sps:$4 sm:$0xff]  }
 0x20b   :  { %6596 = vmatprep.subr.bf16.mxu0 %v8838_v52  ;;  %v8916_v34 = vld [vmem:[#allocation2 + $0x14d4] ss:$8 sps:$4 sm:$0xff]   ;;  %v8911_v52 = vld [vmem:[#allocation2 + $0x7d0] ss:$8 sps:$4 sm:$0xff]  }
 0x20c   :  { %6055 = vmatmul.mubr.bf16.vlgmr.msra.gmra.mrb[0].mxu1 %v9879_v17 }
 0x20d   :  { %6588 = vmatmul.mubr.bf16.vlgmr.msra.gmra.mrb[0].mxu0 %v1221_v37  ;;  %6064 = vmatpush1.bf16.msra.mxu1 %v8833_v39  ;;  %v8919_v37 = vld [vmem:[#allocation2 + $0x7e4] ss:$8 sps:$4 sm:$0xff]  }
 0x20e   :  { %6597 = vmatpush1.bf16.msra.mxu0 %v8836_v40  ;;  %6065 = vmatprep.subr.bf16.mxu1 %v8841_v42  ;;  %v8922_v39 = vld [vmem:[#allocation2 + $0x14e4] ss:$8 sps:$4 sm:$0xff]   ;;  %v9893_v40 = vld [vmem:[%s10015_s0 + $0x10] sm:$0xff]  ;;  %v8917_v42 = vld [vmem:[#allocation2 + $0x7e0] ss:$8 sps:$4 sm:$0xff]  }
 0x20f   :  { %6598 = vmatprep.subr.bf16.mxu0 %v8844_v21  ;;  %6095 = vmatprep.mubr.bf16.mxu1 %v1076_v43  ;;  %v8920_v21 = vld [vmem:[#allocation2 + $0x14e0] ss:$8 sps:$4 sm:$0xff]   ;;  %v8925_v43 = vld [vmem:[#allocation2 + $0x7f4] ss:$8 sps:$4 sm:$0xff]  }
 0x210   :  { %6628 = vmatprep.mubr.bf16.mxu0 %v9886_v44 }
 0x211   :  { %6066 = vmatpush1.bf16.msra.mxu1 %v8839_v63  ;;  %v8928_v63 = vld [vmem:[#allocation2 + $0x14f4] ss:$8 sps:$4 sm:$0xff]  }
 0x212   :  { %6599 = vmatpush1.bf16.msra.mxu0 %v8842_v24  ;;  %6067 = vmatprep.subr.bf16.mxu1 %v8847_v46  ;;  %v9897_v24 = vrot.slane %v9893_v40, %v9719_v51  ;;  %v8923_v46 = vld [vmem:[#allocation2 + $0x7f0] ss:$8 sps:$4 sm:$0xff]  }
 0x213   :  { %6600 = vmatprep.subr.bf16.mxu0 %v8850_v47  ;;  %v8926_v47 = vld [vmem:[#allocation2 + $0x14f0] ss:$8 sps:$4 sm:$0xff]  }
 0x215   :  { %6068 = vmatpush1.bf16.msra.mxu1 %v8845_v31  ;;  %v8931_v31 = vld [vmem:[#allocation2 + $0x804] ss:$8 sps:$4 sm:$0xff]  }
 0x216   :  { %6601 = vmatpush1.bf16.msra.mxu0 %v8848_v28  ;;  %6069 = vmatprep.subr.bf16.mxu1 %v8853_v49  ;;  %v8934_v28 = vld [vmem:[#allocation2 + $0x1504] ss:$8 sps:$4 sm:$0xff]   ;;  %v1092_v49 = vcombine.high %v9897_v24, %v9897_v24 }
 0x217   :  { %6602 = vmatprep.subr.bf16.mxu0 %v8856_v50  ;;  %v1074_v50 = vcombine.high %v9879_v17, %v9879_v17  ;;  %v8938_v17 = vld [vmem:[#allocation2 + $0x1510] ss:$8 sps:$4 sm:$0xff]  }
 0x219   :  { %6070 = vmatpush1.bf16.msra.mxu1 %v8851_v53  ;;  %v9905_v53 = vrot.slane %v9873_v5, %v9719_v51  ;;  %v8935_v5 = vld [vmem:[#allocation2 + $0x810] ss:$8 sps:$4 sm:$0xff]  }
 0x21a   :  { %6603 = vmatpush1.bf16.msra.mxu0 %v8854_v55  ;;  %6071 = vmatprep.subr.bf16.mxu1 %v8859_v30  ;;  %v8929_v55 = vld [vmem:[#allocation2 + $0x800] ss:$8 sps:$4 sm:$0xff]  }
 0x21b   :  { %6604 = vmatprep.subr.bf16.mxu0 %v8862_v36  ;;  %v8932_v30 = vld [vmem:[#allocation2 + $0x1500] ss:$8 sps:$4 sm:$0xff]   ;;  %v8937_v36 = vld [vmem:[#allocation2 + $0x814] ss:$8 sps:$4 sm:$0xff]  }
 0x21d   :  { %6072 = vmatpush1.bf16.msra.mxu1 %v8857_v57  ;;  %v8940_v57 = vld [vmem:[#allocation2 + $0x1514] ss:$8 sps:$4 sm:$0xff]  }
 0x21e   :  { %6605 = vmatpush1.bf16.msra.mxu0 %v8860_v58  ;;  %6073 = vmatprep.subr.bf16.mxu1 %v8865_v59  ;;  %v9908_v58 = vrot.slane %v1092_v49, %v9719_v51  ;;  %v1271_v59 = vcombine.high %v9886_v44, %v9886_v44  ;;  %v8949_v44 = vld [vmem:[#allocation2 + $0x834] ss:$8 sps:$4 sm:$0xff]   ;;  %v9007_v49 = vld [vmem:[#allocation2 + $0x8d0] ss:$8 sps:$4 sm:$0xff]  }
 0x21f   :  { %6606 = vmatprep.subr.bf16.mxu0 %v8868_v41  ;;  %v8943_v41 = vld [vmem:[#allocation2 + $0x824] ss:$8 sps:$4 sm:$0xff]  }
 0x221   :  { %6074 = vmatpush1.bf16.msra.mxu1 %v8863_v60  ;;  %v8946_v60 = vld [vmem:[#allocation2 + $0x1524] ss:$8 sps:$4 sm:$0xff]  }
 0x222   :  { %6607 = vmatpush1.bf16.msra.mxu0 %v8866_v61  ;;  %6075 = vmatprep.subr.bf16.mxu1 %v8871_v62  ;;  %v8941_v61 = vld [vmem:[#allocation2 + $0x820] ss:$8 sps:$4 sm:$0xff]  }
 0x223   :  { %6608 = vmatprep.subr.bf16.mxu0 %v8874_v0  ;;  %v8944_v62 = vld [vmem:[#allocation2 + $0x1520] ss:$8 sps:$4 sm:$0xff]   ;;  %v8952_v0 = vld [vmem:[#allocation2 + $0x1534] ss:$8 sps:$4 sm:$0xff]  }
 0x225   :  { %6076 = vmatpush1.bf16.msra.mxu1 %v8869_v1  ;;  %v8947_v1 = vld [vmem:[#allocation2 + $0x830] ss:$8 sps:$4 sm:$0xff]  }
 0x226   :  { %6609 = vmatpush1.bf16.msra.mxu0 %v8872_v4  ;;  %6077 = vmatprep.subr.bf16.mxu1 %v8877_v48  ;;  %v8950_v4 = vld [vmem:[#allocation2 + $0x1530] ss:$8 sps:$4 sm:$0xff]   ;;  %v8955_v48 = vld [vmem:[#allocation2 + $0x844] ss:$8 sps:$4 sm:$0xff]  }
 0x227   :  { %6610 = vmatprep.subr.bf16.mxu0 %v8880_v14  ;;  %v8958_v14 = vld [vmem:[#allocation2 + $0x1544] ss:$8 sps:$4 sm:$0xff]  }
 0x229   :  { %6078 = vmatpush1.bf16.msra.mxu1 %v8875_v6  ;;  %v8953_v6 = vld [vmem:[#allocation2 + $0x840] ss:$8 sps:$4 sm:$0xff]  }
 0x22a   :  { %6611 = vmatpush1.bf16.msra.mxu0 %v8878_v7  ;;  %6079 = vmatprep.subr.bf16.mxu1 %v8883_v8  ;;  %v8956_v7 = vld [vmem:[#allocation2 + $0x1540] ss:$8 sps:$4 sm:$0xff]   ;;  %v8961_v8 = vld [vmem:[#allocation2 + $0x854] ss:$8 sps:$4 sm:$0xff]  }
 0x22b   :  { %6612 = vmatprep.subr.bf16.mxu0 %v8886_v38  ;;  %v8964_v38 = vld [vmem:[#allocation2 + $0x1554] ss:$8 sps:$4 sm:$0xff]  }
 0x22d   :  { %6080 = vmatpush1.bf16.msra.mxu1 %v8881_v9  ;;  %v8959_v9 = vld [vmem:[#allocation2 + $0x850] ss:$8 sps:$4 sm:$0xff]  }
 0x22e   :  { %6613 = vmatpush1.bf16.msra.mxu0 %v8884_v10  ;;  %6081 = vmatprep.subr.bf16.mxu1 %v8889_v11  ;;  %v8962_v10 = vld [vmem:[#allocation2 + $0x1550] ss:$8 sps:$4 sm:$0xff]   ;;  %v8967_v11 = vld [vmem:[#allocation2 + $0x864] ss:$8 sps:$4 sm:$0xff]  }
 0x22f   :  { %6614 = vmatprep.subr.bf16.mxu0 %v8892_v12  ;;  %v8970_v12 = vld [vmem:[#allocation2 + $0x1564] ss:$8 sps:$4 sm:$0xff]  }
 0x231   :  { %6082 = vmatpush1.bf16.msra.mxu1 %v8887_v13  ;;  %v8965_v13 = vld [vmem:[#allocation2 + $0x860] ss:$8 sps:$4 sm:$0xff]  }
 0x232   :  { %6615 = vmatpush1.bf16.msra.mxu0 %v8890_v16  ;;  %6083 = vmatprep.subr.bf16.mxu1 %v8895_v54  ;;  %v8968_v16 = vld [vmem:[#allocation2 + $0x1560] ss:$8 sps:$4 sm:$0xff]   ;;  %v8973_v54 = vld [vmem:[#allocation2 + $0x874] ss:$8 sps:$4 sm:$0xff]  }
 0x233   :  { %6616 = vmatprep.subr.bf16.mxu0 %v8898_v18  ;;  %v8976_v18 = vld [vmem:[#allocation2 + $0x1574] ss:$8 sps:$4 sm:$0xff]  }
 0x235   :  { %6084 = vmatpush1.bf16.msra.mxu1 %v8893_v19  ;;  %v8971_v19 = vld [vmem:[#allocation2 + $0x870] ss:$8 sps:$4 sm:$0xff]  }
 0x236   :  { %6617 = vmatpush1.bf16.msra.mxu0 %v8896_v2  ;;  %6085 = vmatprep.subr.bf16.mxu1 %v8901_v20  ;;  %v8974_v2 = vld [vmem:[#allocation2 + $0x1570] ss:$8 sps:$4 sm:$0xff]   ;;  %v8979_v20 = vld [vmem:[#allocation2 + $0x884] ss:$8 sps:$4 sm:$0xff]  }
 0x237   :  { %6618 = vmatprep.subr.bf16.mxu0 %v8904_v22  ;;  %v8982_v22 = vld [vmem:[#allocation2 + $0x1584] ss:$8 sps:$4 sm:$0xff]  }
 0x239   :  { %6086 = vmatpush1.bf16.msra.mxu1 %v8899_v23  ;;  %v8977_v23 = vld [vmem:[#allocation2 + $0x880] ss:$8 sps:$4 sm:$0xff]  }
 0x23a   :  { %6619 = vmatpush1.bf16.msra.mxu0 %v8902_v26  ;;  %6087 = vmatprep.subr.bf16.mxu1 %v8907_v27  ;;  %v8980_v26 = vld [vmem:[#allocation2 + $0x1580] ss:$8 sps:$4 sm:$0xff]   ;;  %v8985_v27 = vld [vmem:[#allocation2 + $0x894] ss:$8 sps:$4 sm:$0xff]  }
 0x23b   :  { %6620 = vmatprep.subr.bf16.mxu0 %v8910_v29  ;;  %v8988_v29 = vld [vmem:[#allocation2 + $0x1594] ss:$8 sps:$4 sm:$0xff]  }
 0x23d   :  { %6088 = vmatpush1.bf16.msra.mxu1 %v8905_v32  ;;  %v8983_v32 = vld [vmem:[#allocation2 + $0x890] ss:$8 sps:$4 sm:$0xff]  }
 0x23e   :  { %6621 = vmatpush1.bf16.msra.mxu0 %v8908_v56  ;;  %6089 = vmatprep.subr.bf16.mxu1 %v8913_v33  ;;  %v8986_v56 = vld [vmem:[#allocation2 + $0x1590] ss:$8 sps:$4 sm:$0xff]   ;;  %v8991_v33 = vld [vmem:[#allocation2 + $0x8a4] ss:$8 sps:$4 sm:$0xff]  }
 0x23f   :  { %6622 = vmatprep.subr.bf16.mxu0 %v8916_v34  ;;  %v8994_v34 = vld [vmem:[#allocation2 + $0x15a4] ss:$8 sps:$4 sm:$0xff]  }
 0x241   :  { %6090 = vmatpush1.bf16.msra.mxu1 %v8911_v52  ;;  %v8989_v52 = vld [vmem:[#allocation2 + $0x8a0] ss:$8 sps:$4 sm:$0xff]  }
 0x242   :  { %6623 = vmatpush1.bf16.msra.mxu0 %v8914_v35  ;;  %6091 = vmatprep.subr.bf16.mxu1 %v8919_v37  ;;  %v8992_v35 = vld [vmem:[#allocation2 + $0x15a0] ss:$8 sps:$4 sm:$0xff]   ;;  %v8997_v37 = vld [vmem:[#allocation2 + $0x8b4] ss:$8 sps:$4 sm:$0xff]  }
 0x243   :  { %6624 = vmatprep.subr.bf16.mxu0 %v8922_v39  ;;  %v9000_v39 = vld [vmem:[#allocation2 + $0x15b4] ss:$8 sps:$4 sm:$0xff]  }
 0x245   :  { %6092 = vmatpush1.bf16.msra.mxu1 %v8917_v42  ;;  %v8995_v42 = vld [vmem:[#allocation2 + $0x8b0] ss:$8 sps:$4 sm:$0xff]  }
 0x246   :  { %6625 = vmatpush1.bf16.msra.mxu0 %v8920_v21  ;;  %6093 = vmatprep.subr.bf16.mxu1 %v8925_v43  ;;  %v8998_v21 = vld [vmem:[#allocation2 + $0x15b0] ss:$8 sps:$4 sm:$0xff]   ;;  %v9003_v43 = vld [vmem:[#allocation2 + $0x8c4] ss:$8 sps:$4 sm:$0xff]  }
 0x247   :  { %6626 = vmatprep.subr.bf16.mxu0 %v8928_v63  ;;  %v9006_v63 = vld [vmem:[#allocation2 + $0x15c4] ss:$8 sps:$4 sm:$0xff]  }
 0x249   :  { %6094 = vmatpush1.bf16.msra.mxu1 %v8923_v46  ;;  %v9001_v46 = vld [vmem:[#allocation2 + $0x8c0] ss:$8 sps:$4 sm:$0xff]  }
 0x24a   :  { %6627 = vmatpush1.bf16.msra.mxu0 %v8926_v47  ;;  %6104 = vmatprep.subr.bf16.mxu1 %v8931_v31  ;;  %v9004_v47 = vld [vmem:[#allocation2 + $0x15c0] ss:$8 sps:$4 sm:$0xff]   ;;  %v9009_v31 = vld [vmem:[#allocation2 + $0x8d4] ss:$8 sps:$4 sm:$0xff]  }
 0x24b   :  { %6637 = vmatprep.subr.bf16.mxu0 %v8934_v28  ;;  %v9012_v28 = vld [vmem:[#allocation2 + $0x15d4] ss:$8 sps:$4 sm:$0xff]  }
 0x24c   :  { %6096 = vmatmul.mubr.bf16.vlgmr.msra.gmra.mrb[0].mxu1 %v1074_v50  ;;  %v9010_v50 = vld [vmem:[#allocation2 + $0x15d0] ss:$8 sps:$4 sm:$0xff]  }
 0x24d   :  { %6629 = vmatmul.mubr.bf16.vlgmr.msra.gmra.mrb[0].mxu0 %v9905_v53  ;;  %6105 = vmatpush1.bf16.msra.mxu1 %v8929_v55  ;;  %v9015_v55 = vld [vmem:[#allocation2 + $0x8e4] ss:$8 sps:$4 sm:$0xff]  }
 0x24e   :  { %6638 = vmatpush1.bf16.msra.mxu0 %v8932_v30  ;;  %6106 = vmatprep.subr.bf16.mxu1 %v8937_v36  ;;  %v9018_v30 = vld [vmem:[#allocation2 + $0x15e4] ss:$8 sps:$4 sm:$0xff]   ;;  %v1224_v36 = vcombine.high %v9869_v25, %v9869_v25 }
 0x24f   :  { %6639 = vmatprep.subr.bf16.mxu0 %v8940_v57  ;;  %6136 = vmatprep.mubr.bf16.mxu1 %v9908_v58  ;;  %v9013_v57 = vld [vmem:[#allocation2 + $0x8e0] ss:$8 sps:$4 sm:$0xff]  }
 0x250   :  { %6669 = vmatprep.mubr.bf16.mxu0 %v1271_v59  ;;  %v9016_v59 = vld [vmem:[#allocation2 + $0x15e0] ss:$8 sps:$4 sm:$0xff]  }
 0x251   :  { %6107 = vmatpush1.bf16.msra.mxu1 %v8935_v5  ;;  %v9021_v5 = vld [vmem:[#allocation2 + $0x8f4] ss:$8 sps:$4 sm:$0xff]  }
 0x252   :  { %6640 = vmatpush1.bf16.msra.mxu0 %v8938_v17  ;;  %6108 = vmatprep.subr.bf16.mxu1 %v8943_v41  ;;  %v9024_v17 = vld [vmem:[#allocation2 + $0x15f4] ss:$8 sps:$4 sm:$0xff]   ;;  %v9917_v41 = vrot.slane %v1224_v36, %v9719_v51  ;;  %v9091_v36 = vld [vmem:[#allocation2 + $0x9b0] ss:$8 sps:$4 sm:$0xff]  }
 0x253   :  { %6641 = vmatprep.subr.bf16.mxu0 %v8946_v60  ;;  %v9019_v60 = vld [vmem:[#allocation2 + $0x8f0] ss:$8 sps:$4 sm:$0xff]  }
 0x254   :  { %v1240_v25 = vcombine.high %v9917_v41, %v9917_v41 }
 0x255   :  { %6109 = vmatpush1.bf16.msra.mxu1 %v8941_v61  ;;  %v9022_v61 = vld [vmem:[#allocation2 + $0x15f0] ss:$8 sps:$4 sm:$0xff]  }
 0x256   :  { %6642 = vmatpush1.bf16.msra.mxu0 %v8944_v62  ;;  %6110 = vmatprep.subr.bf16.mxu1 %v8949_v44  ;;  %v9027_v62 = vld [vmem:[#allocation2 + $0x904] ss:$8 sps:$4 sm:$0xff]  }
 0x257   :  { %6643 = vmatprep.subr.bf16.mxu0 %v8952_v0  ;;  %v9030_v44 = vld [vmem:[#allocation2 + $0x1604] ss:$8 sps:$4 sm:$0xff]   ;;  %v9923_v0 = vrot.slane %v9897_v24, %v9719_v51  ;;  %v9031_v24 = vld [vmem:[#allocation2 + $0x910] ss:$8 sps:$4 sm:$0xff]  }
 0x259   :  { %6111 = vmatpush1.bf16.msra.mxu1 %v8947_v1  ;;  %v1269_v1 = vcombine.high %v9905_v53, %v9905_v53  ;;  %v9034_v53 = vld [vmem:[#allocation2 + $0x1610] ss:$8 sps:$4 sm:$0xff]  }
 0x25a   :  { %6644 = vmatpush1.bf16.msra.mxu0 %v8950_v4  ;;  %6112 = vmatprep.subr.bf16.mxu1 %v8955_v48  ;;  %v9025_v4 = vld [vmem:[#allocation2 + $0x900] ss:$8 sps:$4 sm:$0xff]  }
 0x25b   :  { %6645 = vmatprep.subr.bf16.mxu0 %v8958_v14  ;;  %v9028_v48 = vld [vmem:[#allocation2 + $0x1600] ss:$8 sps:$4 sm:$0xff]   ;;  %v9033_v14 = vld [vmem:[#allocation2 + $0x914] ss:$8 sps:$4 sm:$0xff]  }
 0x25d   :  { %6113 = vmatpush1.bf16.msra.mxu1 %v8953_v6  ;;  %v9036_v6 = vld [vmem:[#allocation2 + $0x1614] ss:$8 sps:$4 sm:$0xff]  }
 0x25e   :  { %6646 = vmatpush1.bf16.msra.mxu0 %v8956_v7  ;;  %6114 = vmatprep.subr.bf16.mxu1 %v8961_v8  ;;  %v1124_v7 = vcombine.high %v9908_v58, %v9908_v58  ;;  %v9930_v8 = vrot.slane %v1240_v25, %v9719_v51  ;;  %v9037_v58 = vld [vmem:[#allocation2 + $0x920] ss:$8 sps:$4 sm:$0xff]   ;;  %v9106_v25 = vld [vmem:[#allocation2 + $0x16d0] ss:$8 sps:$4 sm:$0xff]  }
 0x25f   :  { %6647 = vmatprep.subr.bf16.mxu0 %v8964_v38  ;;  %v9039_v38 = vld [vmem:[#allocation2 + $0x924] ss:$8 sps:$4 sm:$0xff]  }
 0x261   :  { %6115 = vmatpush1.bf16.msra.mxu1 %v8959_v9  ;;  %v9042_v9 = vld [vmem:[#allocation2 + $0x1624] ss:$8 sps:$4 sm:$0xff]  }
 0x262   :  { %6648 = vmatpush1.bf16.msra.mxu0 %v8962_v10  ;;  %6116 = vmatprep.subr.bf16.mxu1 %v8967_v11  ;;  %v9040_v10 = vld [vmem:[#allocation2 + $0x1620] ss:$8 sps:$4 sm:$0xff]   ;;  %v9045_v11 = vld [vmem:[#allocation2 + $0x934] ss:$8 sps:$4 sm:$0xff]  }
 0x263   :  { %6649 = vmatprep.subr.bf16.mxu0 %v8970_v12  ;;  %v9048_v12 = vld [vmem:[#allocation2 + $0x1634] ss:$8 sps:$4 sm:$0xff]  }
 0x265   :  { %6117 = vmatpush1.bf16.msra.mxu1 %v8965_v13  ;;  %v9043_v13 = vld [vmem:[#allocation2 + $0x930] ss:$8 sps:$4 sm:$0xff]  }
 0x266   :  { %6650 = vmatpush1.bf16.msra.mxu0 %v8968_v16  ;;  %6118 = vmatprep.subr.bf16.mxu1 %v8973_v54  ;;  %v9046_v16 = vld [vmem:[#allocation2 + $0x1630] ss:$8 sps:$4 sm:$0xff]   ;;  %v9051_v54 = vld [vmem:[#allocation2 + $0x944] ss:$8 sps:$4 sm:$0xff]  }
 0x267   :  { %6651 = vmatprep.subr.bf16.mxu0 %v8976_v18  ;;  %v9054_v18 = vld [vmem:[#allocation2 + $0x1644] ss:$8 sps:$4 sm:$0xff]  }
 0x269   :  { %6119 = vmatpush1.bf16.msra.mxu1 %v8971_v19  ;;  %v9049_v19 = vld [vmem:[#allocation2 + $0x940] ss:$8 sps:$4 sm:$0xff]  }
 0x26a   :  { %6652 = vmatpush1.bf16.msra.mxu0 %v8974_v2  ;;  %6120 = vmatprep.subr.bf16.mxu1 %v8979_v20  ;;  %v9052_v2 = vld [vmem:[#allocation2 + $0x1640] ss:$8 sps:$4 sm:$0xff]   ;;  %v9057_v20 = vld [vmem:[#allocation2 + $0x954] ss:$8 sps:$4 sm:$0xff]  }
 0x26b   :  { %6653 = vmatprep.subr.bf16.mxu0 %v8982_v22  ;;  %v9060_v22 = vld [vmem:[#allocation2 + $0x1654] ss:$8 sps:$4 sm:$0xff]  }
 0x26d   :  { %6121 = vmatpush1.bf16.msra.mxu1 %v8977_v23  ;;  %v9055_v23 = vld [vmem:[#allocation2 + $0x950] ss:$8 sps:$4 sm:$0xff]  }
 0x26e   :  { %6654 = vmatpush1.bf16.msra.mxu0 %v8980_v26  ;;  %6122 = vmatprep.subr.bf16.mxu1 %v8985_v27  ;;  %v9058_v26 = vld [vmem:[#allocation2 + $0x1650] ss:$8 sps:$4 sm:$0xff]   ;;  %v9063_v27 = vld [vmem:[#allocation2 + $0x964] ss:$8 sps:$4 sm:$0xff]  }
 0x26f   :  { %6655 = vmatprep.subr.bf16.mxu0 %v8988_v29  ;;  %v9066_v29 = vld [vmem:[#allocation2 + $0x1664] ss:$8 sps:$4 sm:$0xff]  }
 0x271   :  { %6123 = vmatpush1.bf16.msra.mxu1 %v8983_v32  ;;  %v9061_v32 = vld [vmem:[#allocation2 + $0x960] ss:$8 sps:$4 sm:$0xff]  }
 0x272   :  { %6656 = vmatpush1.bf16.msra.mxu0 %v8986_v56  ;;  %6124 = vmatprep.subr.bf16.mxu1 %v8991_v33  ;;  %v9064_v56 = vld [vmem:[#allocation2 + $0x1660] ss:$8 sps:$4 sm:$0xff]   ;;  %v9069_v33 = vld [vmem:[#allocation2 + $0x974] ss:$8 sps:$4 sm:$0xff]  }
 0x273   :  { %6657 = vmatprep.subr.bf16.mxu0 %v8994_v34  ;;  %v9072_v34 = vld [vmem:[#allocation2 + $0x1674] ss:$8 sps:$4 sm:$0xff]  }
 0x275   :  { %6125 = vmatpush1.bf16.msra.mxu1 %v8989_v52  ;;  %v9067_v52 = vld [vmem:[#allocation2 + $0x970] ss:$8 sps:$4 sm:$0xff]  }
 0x276   :  { %6658 = vmatpush1.bf16.msra.mxu0 %v8992_v35  ;;  %6126 = vmatprep.subr.bf16.mxu1 %v8997_v37  ;;  %v9070_v35 = vld [vmem:[#allocation2 + $0x1670] ss:$8 sps:$4 sm:$0xff]   ;;  %v9075_v37 = vld [vmem:[#allocation2 + $0x984] ss:$8 sps:$4 sm:$0xff]  }
 0x277   :  { %6659 = vmatprep.subr.bf16.mxu0 %v9000_v39  ;;  %v9078_v39 = vld [vmem:[#allocation2 + $0x1684] ss:$8 sps:$4 sm:$0xff]  }
 0x279   :  { %6127 = vmatpush1.bf16.msra.mxu1 %v8995_v42  ;;  %v9073_v42 = vld [vmem:[#allocation2 + $0x980] ss:$8 sps:$4 sm:$0xff]  }
 0x27a   :  { %6660 = vmatpush1.bf16.msra.mxu0 %v8998_v21  ;;  %6128 = vmatprep.subr.bf16.mxu1 %v9003_v43  ;;  %v9076_v21 = vld [vmem:[#allocation2 + $0x1680] ss:$8 sps:$4 sm:$0xff]   ;;  %v9081_v43 = vld [vmem:[#allocation2 + $0x994] ss:$8 sps:$4 sm:$0xff]  }
 0x27b   :  { %6661 = vmatprep.subr.bf16.mxu0 %v9006_v63  ;;  %v9084_v63 = vld [vmem:[#allocation2 + $0x1694] ss:$8 sps:$4 sm:$0xff]  }
 0x27d   :  { %6129 = vmatpush1.bf16.msra.mxu1 %v9001_v46  ;;  %v9079_v46 = vld [vmem:[#allocation2 + $0x990] ss:$8 sps:$4 sm:$0xff]  }
 0x27e   :  { %6662 = vmatpush1.bf16.msra.mxu0 %v9004_v47  ;;  %6130 = vmatprep.subr.bf16.mxu1 %v9009_v31  ;;  %v9082_v47 = vld [vmem:[#allocation2 + $0x1690] ss:$8 sps:$4 sm:$0xff]   ;;  %v9087_v31 = vld [vmem:[#allocation2 + $0x9a4] ss:$8 sps:$4 sm:$0xff]  }
 0x27f   :  { %6663 = vmatprep.subr.bf16.mxu0 %v9012_v28  ;;  %v9090_v28 = vld [vmem:[#allocation2 + $0x16a4] ss:$8 sps:$4 sm:$0xff]  }
 0x281   :  { %6131 = vmatpush1.bf16.msra.mxu1 %v9007_v49  ;;  %v9085_v49 = vld [vmem:[#allocation2 + $0x9a0] ss:$8 sps:$4 sm:$0xff]  }
 0x282   :  { %6664 = vmatpush1.bf16.msra.mxu0 %v9010_v50  ;;  %6132 = vmatprep.subr.bf16.mxu1 %v9015_v55  ;;  %v9088_v50 = vld [vmem:[#allocation2 + $0x16a0] ss:$8 sps:$4 sm:$0xff]   ;;  %v9093_v55 = vld [vmem:[#allocation2 + $0x9b4] ss:$8 sps:$4 sm:$0xff]  }
 0x283   :  { %6665 = vmatprep.subr.bf16.mxu0 %v9018_v30  ;;  %v9096_v30 = vld [vmem:[#allocation2 + $0x16b4] ss:$8 sps:$4 sm:$0xff]  }
 0x285   :  { %6133 = vmatpush1.bf16.msra.mxu1 %v9013_v57  ;;  %v9094_v57 = vld [vmem:[#allocation2 + $0x16b0] ss:$8 sps:$4 sm:$0xff]  }
 0x286   :  { %6666 = vmatpush1.bf16.msra.mxu0 %v9016_v59  ;;  %6134 = vmatprep.subr.bf16.mxu1 %v9021_v5  ;;  %v9099_v59 = vld [vmem:[#allocation2 + $0x9c4] ss:$8 sps:$4 sm:$0xff]  }
 0x287   :  { %6667 = vmatprep.subr.bf16.mxu0 %v9024_v17  ;;  %v9102_v5 = vld [vmem:[#allocation2 + $0x16c4] ss:$8 sps:$4 sm:$0xff]   ;;  %v9097_v17 = vld [vmem:[#allocation2 + $0x9c0] ss:$8 sps:$4 sm:$0xff]  }
 0x289   :  { %6135 = vmatpush1.bf16.msra.mxu1 %v9019_v60  ;;  %v9100_v60 = vld [vmem:[#allocation2 + $0x16c0] ss:$8 sps:$4 sm:$0xff]  }
 0x28a   :  { %6668 = vmatpush1.bf16.msra.mxu0 %v9022_v61  ;;  %6145 = vmatprep.subr.bf16.mxu1 %v9027_v62  ;;  %v9105_v61 = vld [vmem:[#allocation2 + $0x9d4] ss:$8 sps:$4 sm:$0xff]  }
 0x28b   :  { %6678 = vmatprep.subr.bf16.mxu0 %v9030_v44  ;;  %v9108_v62 = vld [vmem:[#allocation2 + $0x16d4] ss:$8 sps:$4 sm:$0xff]   ;;  %v9103_v44 = vld [vmem:[#allocation2 + $0x9d0] ss:$8 sps:$4 sm:$0xff]  }
 0x28c   :  { %6137 = vmatmul.mubr.bf16.vlgmr.msra.gmra.mrb[0].mxu1 %v9923_v0 }
 0x28d   :  { %6670 = vmatmul.mubr.bf16.vlgmr.msra.gmra.mrb[0].mxu0 %v1269_v1  ;;  %6146 = vmatpush1.bf16.msra.mxu1 %v9025_v4  ;;  %v9111_v1 = vld [vmem:[#allocation2 + $0x9e4] ss:$8 sps:$4 sm:$0xff]  }
 0x28e   :  { %6679 = vmatpush1.bf16.msra.mxu0 %v9028_v48  ;;  %6147 = vmatprep.subr.bf16.mxu1 %v9033_v14  ;;  %v9114_v4 = vld [vmem:[#allocation2 + $0x16e4] ss:$8 sps:$4 sm:$0xff]   ;;  %v1077_v48 = vcombine.high %v9893_v40, %v9893_v40  ;;  %v9109_v14 = vld [vmem:[#allocation2 + $0x9e0] ss:$8 sps:$4 sm:$0xff]  }
 0x28f   :  { %6680 = vmatprep.subr.bf16.mxu0 %v9036_v6  ;;  %6177 = vmatprep.mubr.bf16.mxu1 %v1124_v7  ;;  %v9112_v6 = vld [vmem:[#allocation2 + $0x16e0] ss:$8 sps:$4 sm:$0xff]   ;;  %v9117_v7 = vld [vmem:[#allocation2 + $0x9f4] ss:$8 sps:$4 sm:$0xff]  }
 0x290   :  { %6710 = vmatprep.mubr.bf16.mxu0 %v9930_v8 }
 0x291   :  { %6148 = vmatpush1.bf16.msra.mxu1 %v9031_v24  ;;  %v9120_v24 = vld [vmem:[#allocation2 + $0x16f4] ss:$8 sps:$4 sm:$0xff]  }
 0x292   :  { %6681 = vmatpush1.bf16.msra.mxu0 %v9034_v53  ;;  %6149 = vmatprep.subr.bf16.mxu1 %v9039_v38  ;;  %v9937_v53 = vrot.slane %v1077_v48, %v9719_v51  ;;  %v9115_v38 = vld [vmem:[#allocation2 + $0x9f0] ss:$8 sps:$4 sm:$0xff]  }
 0x293   :  { %6682 = vmatprep.subr.bf16.mxu0 %v9042_v9  ;;  %v9118_v9 = vld [vmem:[#allocation2 + $0x16f0] ss:$8 sps:$4 sm:$0xff]  }
 0x294   :  { %v1093_v40 = vcombine.high %v9937_v53, %v9937_v53  ;;  %v9191_v48 = vld [vmem:[#allocation2 + $0x17b0] ss:$8 sps:$4 sm:$0xff]  }
 0x295   :  { %6150 = vmatpush1.bf16.msra.mxu1 %v9037_v58  ;;  %v9123_v58 = vld [vmem:[#allocation2 + $0xa04] ss:$8 sps:$4 sm:$0xff]  }
 0x296   :  { %6683 = vmatpush1.bf16.msra.mxu0 %v9040_v10  ;;  %6151 = vmatprep.subr.bf16.mxu1 %v9045_v11  ;;  %v9127_v10 = vld [vmem:[#allocation2 + $0x1704] ss:$8 sps:$4 sm:$0xff]   ;;  %v1122_v11 = vcombine.high %v9923_v0, %v9923_v0  ;;  %v9131_v0 = vld [vmem:[#allocation2 + $0x1710] ss:$8 sps:$4 sm:$0xff]  }
 0x297   :  { %6684 = vmatprep.subr.bf16.mxu0 %v9048_v12  ;;  %v9945_v12 = vrot.slane %v9917_v41, %v9719_v51  ;;  %v9128_v41 = vld [vmem:[#allocation2 + $0xa10] ss:$8 sps:$4 sm:$0xff]  }
 0x299   :  { %6152 = vmatpush1.bf16.msra.mxu1 %v9043_v13  ;;  %v9121_v13 = vld [vmem:[#allocation2 + $0xa00] ss:$8 sps:$4 sm:$0xff]  }
 0x29a   :  { %6685 = vmatpush1.bf16.msra.mxu0 %v9046_v16  ;;  %6153 = vmatprep.subr.bf16.mxu1 %v9051_v54  ;;  %v9125_v16 = vld [vmem:[#allocation2 + $0x1700] ss:$8 sps:$4 sm:$0xff]   ;;  %v9130_v54 = vld [vmem:[#allocation2 + $0xa14] ss:$8 sps:$4 sm:$0xff]  }
 0x29b   :  { %6686 = vmatprep.subr.bf16.mxu0 %v9054_v18  ;;  %v9133_v18 = vld [vmem:[#allocation2 + $0x1714] ss:$8 sps:$4 sm:$0xff]  }
 0x29d   :  { %6154 = vmatpush1.bf16.msra.mxu1 %v9049_v19  ;;  %v9948_v19 = vrot.slane %v1093_v40, %v9719_v51  ;;  %v9208_v40 = vld [vmem:[#allocation2 + $0xae4] ss:$8 sps:$4 sm:$0xff]  }
 0x29e   :  { %6687 = vmatpush1.bf16.msra.mxu0 %v9052_v2  ;;  %6155 = vmatprep.subr.bf16.mxu1 %v9057_v20  ;;  %v1272_v2 = vcombine.high %v9930_v8, %v9930_v8  ;;  %v9136_v20 = vld [vmem:[#allocation2 + $0xa24] ss:$8 sps:$4 sm:$0xff]   ;;  %v9142_v8 = vld [vmem:[#allocation2 + $0xa34] ss:$8 sps:$4 sm:$0xff]  }
 0x29f   :  { %6688 = vmatprep.subr.bf16.mxu0 %v9060_v22  ;;  %v9139_v22 = vld [vmem:[#allocation2 + $0x1724] ss:$8 sps:$4 sm:$0xff]  }
 0x2a1   :  { %6156 = vmatpush1.bf16.msra.mxu1 %v9055_v23  ;;  %v9134_v23 = vld [vmem:[#allocation2 + $0xa20] ss:$8 sps:$4 sm:$0xff]  }
 0x2a2   :  { %6689 = vmatpush1.bf16.msra.mxu0 %v9058_v26  ;;  %6157 = vmatprep.subr.bf16.mxu1 %v9063_v27  ;;  %v9137_v26 = vld [vmem:[#allocation2 + $0x1720] ss:$8 sps:$4 sm:$0xff]   ;;  %v9145_v27 = vld [vmem:[#allocation2 + $0x1734] ss:$8 sps:$4 sm:$0xff]  }
 0x2a3   :  { %6690 = vmatprep.subr.bf16.mxu0 %v9066_v29  ;;  %v9140_v29 = vld [vmem:[#allocation2 + $0xa30] ss:$8 sps:$4 sm:$0xff]  }
 0x2a5   :  { %6158 = vmatpush1.bf16.msra.mxu1 %v9061_v32  ;;  %v9143_v32 = vld [vmem:[#allocation2 + $0x1730] ss:$8 sps:$4 sm:$0xff]  }
 0x2a6   :  { %6691 = vmatpush1.bf16.msra.mxu0 %v9064_v56  ;;  %6159 = vmatprep.subr.bf16.mxu1 %v9069_v33  ;;  %v9148_v56 = vld [vmem:[#allocation2 + $0xa44] ss:$8 sps:$4 sm:$0xff]  }
 0x2a7   :  { %6692 = vmatprep.subr.bf16.mxu0 %v9072_v34  ;;  %v9151_v33 = vld [vmem:[#allocation2 + $0x1744] ss:$8 sps:$4 sm:$0xff]   ;;  %v9146_v34 = vld [vmem:[#allocation2 + $0xa40] ss:$8 sps:$4 sm:$0xff]  }
 0x2a9   :  { %6160 = vmatpush1.bf16.msra.mxu1 %v9067_v52  ;;  %v9149_v52 = vld [vmem:[#allocation2 + $0x1740] ss:$8 sps:$4 sm:$0xff]  }
 0x2aa   :  { %6693 = vmatpush1.bf16.msra.mxu0 %v9070_v35  ;;  %6161 = vmatprep.subr.bf16.mxu1 %v9075_v37  ;;  %v9154_v35 = vld [vmem:[#allocation2 + $0xa54] ss:$8 sps:$4 sm:$0xff]  }
 0x2ab   :  { %6694 = vmatprep.subr.bf16.mxu0 %v9078_v39  ;;  %v9157_v37 = vld [vmem:[#allocation2 + $0x1754] ss:$8 sps:$4 sm:$0xff]   ;;  %v9152_v39 = vld [vmem:[#allocation2 + $0xa50] ss:$8 sps:$4 sm:$0xff]  }
 0x2ad   :  { %6162 = vmatpush1.bf16.msra.mxu1 %v9073_v42  ;;  %v9155_v42 = vld [vmem:[#allocation2 + $0x1750] ss:$8 sps:$4 sm:$0xff]  }
 0x2ae   :  { %6695 = vmatpush1.bf16.msra.mxu0 %v9076_v21  ;;  %6163 = vmatprep.subr.bf16.mxu1 %v9081_v43  ;;  %v9160_v21 = vld [vmem:[#allocation2 + $0xa64] ss:$8 sps:$4 sm:$0xff]  }
 0x2af   :  { %6696 = vmatprep.subr.bf16.mxu0 %v9084_v63  ;;  %v9163_v43 = vld [vmem:[#allocation2 + $0x1764] ss:$8 sps:$4 sm:$0xff]   ;;  %v9158_v63 = vld [vmem:[#allocation2 + $0xa60] ss:$8 sps:$4 sm:$0xff]  }
 0x2b1   :  { %6164 = vmatpush1.bf16.msra.mxu1 %v9079_v46  ;;  %v9161_v46 = vld [vmem:[#allocation2 + $0x1760] ss:$8 sps:$4 sm:$0xff]  }
 0x2b2   :  { %6697 = vmatpush1.bf16.msra.mxu0 %v9082_v47  ;;  %6165 = vmatprep.subr.bf16.mxu1 %v9087_v31  ;;  %v9166_v47 = vld [vmem:[#allocation2 + $0xa74] ss:$8 sps:$4 sm:$0xff]  }
 0x2b3   :  { %6698 = vmatprep.subr.bf16.mxu0 %v9090_v28  ;;  %v9169_v31 = vld [vmem:[#allocation2 + $0x1774] ss:$8 sps:$4 sm:$0xff]   ;;  %v9164_v28 = vld [vmem:[#allocation2 + $0xa70] ss:$8 sps:$4 sm:$0xff]  }
 0x2b5   :  { %6166 = vmatpush1.bf16.msra.mxu1 %v9085_v49  ;;  %v9167_v49 = vld [vmem:[#allocation2 + $0x1770] ss:$8 sps:$4 sm:$0xff]  }
 0x2b6   :  { %6699 = vmatpush1.bf16.msra.mxu0 %v9088_v50  ;;  %6167 = vmatprep.subr.bf16.mxu1 %v9093_v55  ;;  %v9172_v50 = vld [vmem:[#allocation2 + $0xa84] ss:$8 sps:$4 sm:$0xff]  }
 0x2b7   :  { %6700 = vmatprep.subr.bf16.mxu0 %v9096_v30  ;;  %v9175_v55 = vld [vmem:[#allocation2 + $0x1784] ss:$8 sps:$4 sm:$0xff]   ;;  %v9170_v30 = vld [vmem:[#allocation2 + $0xa80] ss:$8 sps:$4 sm:$0xff]  }
 0x2b9   :  { %6168 = vmatpush1.bf16.msra.mxu1 %v9091_v36  ;;  %v9173_v36 = vld [vmem:[#allocation2 + $0x1780] ss:$8 sps:$4 sm:$0xff]  }
 0x2ba   :  { %6701 = vmatpush1.bf16.msra.mxu0 %v9094_v57  ;;  %6169 = vmatprep.subr.bf16.mxu1 %v9099_v59  ;;  %v9178_v57 = vld [vmem:[#allocation2 + $0xa94] ss:$8 sps:$4 sm:$0xff]  }
 0x2bb   :  { %6702 = vmatprep.subr.bf16.mxu0 %v9102_v5  ;;  %v9181_v59 = vld [vmem:[#allocation2 + $0x1794] ss:$8 sps:$4 sm:$0xff]   ;;  %v9176_v5 = vld [vmem:[#allocation2 + $0xa90] ss:$8 sps:$4 sm:$0xff]  }
 0x2bd   :  { %6170 = vmatpush1.bf16.msra.mxu1 %v9097_v17  ;;  %v9179_v17 = vld [vmem:[#allocation2 + $0x1790] ss:$8 sps:$4 sm:$0xff]  }
 0x2be   :  { %6703 = vmatpush1.bf16.msra.mxu0 %v9100_v60  ;;  %6171 = vmatprep.subr.bf16.mxu1 %v9105_v61  ;;  %v9184_v60 = vld [vmem:[#allocation2 + $0xaa4] ss:$8 sps:$4 sm:$0xff]  }
 0x2bf   :  { %6704 = vmatprep.subr.bf16.mxu0 %v9108_v62  ;;  %v9187_v61 = vld [vmem:[#allocation2 + $0x17a4] ss:$8 sps:$4 sm:$0xff]   ;;  %v9182_v62 = vld [vmem:[#allocation2 + $0xaa0] ss:$8 sps:$4 sm:$0xff]  }
 0x2c1   :  { %6172 = vmatpush1.bf16.msra.mxu1 %v9103_v44  ;;  %v9185_v44 = vld [vmem:[#allocation2 + $0x17a0] ss:$8 sps:$4 sm:$0xff]  }
 0x2c2   :  { %6705 = vmatpush1.bf16.msra.mxu0 %v9106_v25  ;;  %6173 = vmatprep.subr.bf16.mxu1 %v9111_v1  ;;  %v9190_v25 = vld [vmem:[#allocation2 + $0xab4] ss:$8 sps:$4 sm:$0xff]  }
 0x2c3   :  { %6706 = vmatprep.subr.bf16.mxu0 %v9114_v4  ;;  %v9193_v1 = vld [vmem:[#allocation2 + $0x17b4] ss:$8 sps:$4 sm:$0xff]   ;;  %v9188_v4 = vld [vmem:[#allocation2 + $0xab0] ss:$8 sps:$4 sm:$0xff]  }
 0x2c5   :  { %6174 = vmatpush1.bf16.msra.mxu1 %v9109_v14  ;;  %v9196_v14 = vld [vmem:[#allocation2 + $0xac4] ss:$8 sps:$4 sm:$0xff]  }
 0x2c6   :  { %6707 = vmatpush1.bf16.msra.mxu0 %v9112_v6  ;;  %6175 = vmatprep.subr.bf16.mxu1 %v9117_v7  ;;  %v9199_v6 = vld [vmem:[#allocation2 + $0x17c4] ss:$8 sps:$4 sm:$0xff]   ;;  %v9194_v7 = vld [vmem:[#allocation2 + $0xac0] ss:$8 sps:$4 sm:$0xff]  }
 0x2c7   :  { %6708 = vmatprep.subr.bf16.mxu0 %v9120_v24  ;;  %v9197_v24 = vld [vmem:[#allocation2 + $0x17c0] ss:$8 sps:$4 sm:$0xff]  }
 0x2c9   :  { %6176 = vmatpush1.bf16.msra.mxu1 %v9115_v38  ;;  %v9202_v38 = vld [vmem:[#allocation2 + $0xad4] ss:$8 sps:$4 sm:$0xff]  }
 0x2ca   :  { %6709 = vmatpush1.bf16.msra.mxu0 %v9118_v9  ;;  %6186 = vmatprep.subr.bf16.mxu1 %v9123_v58  ;;  %v9205_v9 = vld [vmem:[#allocation2 + $0x17d4] ss:$8 sps:$4 sm:$0xff]   ;;  %v9200_v58 = vld [vmem:[#allocation2 + $0xad0] ss:$8 sps:$4 sm:$0xff]  }
 0x2cb   :  { %6719 = vmatprep.subr.bf16.mxu0 %v9127_v10  ;;  %v9203_v10 = vld [vmem:[#allocation2 + $0x17d0] ss:$8 sps:$4 sm:$0xff]  }
 0x2cc   :  { %6178 = vmatmul.mubr.bf16.vlgmr.msra.gmra.mrb[0].mxu1 %v1122_v11  ;;  %v9211_v11 = vld [vmem:[#allocation2 + $0x17e4] ss:$8 sps:$4 sm:$0xff]  }
 0x2cd   :  { %6711 = vmatmul.mubr.bf16.vlgmr.msra.gmra.mrb[0].mxu0 %v9945_v12  ;;  %6187 = vmatpush1.bf16.msra.mxu1 %v9121_v13  ;;  %v9957_v13 = vld [vmem:[%s10015_s0 + $0x30] sm:$0x7f]  ;;  %s9630_s0 = smov [#allocation10]  }
 0x2ce   :  { %6720 = vmatpush1.bf16.msra.mxu0 %v9125_v16  ;;  %6188 = vmatprep.subr.bf16.mxu1 %v9130_v54  ;;  %v9206_v16 = vld [vmem:[#allocation2 + $0xae0] ss:$8 sps:$4 sm:$0xff]   ;;  %s7110_s6 = sshll.u32 %s9630_s0, 4  ;;  %s7111_s6 = int_to_ptr.vmem [resolvable:$true] %s7110_s6 }
 0x2cf   :  { %6721 = vmatprep.subr.bf16.mxu0 %v9133_v18  ;;  %6218 = vmatprep.mubr.bf16.mxu1 %v9948_v19  ;;  %v9209_v54 = vld [vmem:[#allocation2 + $0x17e0] ss:$8 sps:$4 sm:$0xff]   ;;  %v9214_v18 = vld [vmem:[#allocation2 + $0xaf4] ss:$8 sps:$4 sm:$0xff]   ;;  %s9590_s7 = scalar_lea.vmem %s7111_s6, 32  ;;  %p9595_p5 = scmp.lt.s32.totalorder %s7111_s6, %s7111_s6 }
 0x2d0   :  { %6751 = vmatprep.mubr.bf16.mxu0 %v1272_v2  ;;  %v9217_v2 = vld [vmem:[#allocation2 + $0x17f4] ss:$8 sps:$4 sm:$0xff]   ;;  %p9591_p4 = scmp.ne.s32.totalorder %s7111_s6, %s9590_s7  ;;  %p9596_p6 = scmp.lt.s32.totalorder %s9590_s7, %s9590_s7 }
 0x2d1   :  { %6189 = vmatpush1.bf16.msra.mxu1 %v9128_v41  ;;  %v9961_v41 = vrot.slane %v9957_v13, %v9719_v51 }
 0x2d2   :  { %6722 = vmatpush1.bf16.msra.mxu0 %v9131_v0  ;;  %6190 = vmatprep.subr.bf16.mxu1 %v9136_v20  ;;  %v9212_v0 = vld [vmem:[#allocation2 + $0xaf0] ss:$8 sps:$4 sm:$0xff]   ;;  %p9597_p7 = por %p9596_p6, %p9595_p5 }
 0x2d3   :  { %6723 = vmatprep.subr.bf16.mxu0 %v9139_v22  ;;  %v9215_v20 = vld [vmem:[#allocation2 + $0x17f0] ss:$8 sps:$4 sm:$0xff]   ;;  %v9221_v22 = vld [vmem:[#allocation2 + $0xb04] ss:$8 sps:$4 sm:$0xff]  }
 0x2d4   :  { %p9598_p8 = pnand %p9597_p7, %p9591_p4 }
 0x2d5   :  { %6191 = vmatpush1.bf16.msra.mxu1 %v9134_v23  ;;  %v9224_v23 = vld [vmem:[#allocation2 + $0x1804] ss:$8 sps:$4 sm:$0xff]  }
 0x2d6   :  { %6724 = vmatpush1.bf16.msra.mxu0 %v9137_v26  ;;  %6192 = vmatprep.subr.bf16.mxu1 %v9142_v8  ;;  %v1288_v26 = vcombine.high %v9961_v41, %v9961_v41  ;;  %v9967_v8 = vrot.slane %v9937_v53, %v9719_v51  ;;  %v9225_v53 = vld [vmem:[#allocation2 + $0xb10] ss:$8 sps:$4 sm:$0xff]  }
 0x2d7   :  { %6725 = vmatprep.subr.bf16.mxu0 %v9145_v27  ;;  %v1270_v27 = vcombine.high %v9945_v12, %v9945_v12  ;;  %v9228_v12 = vld [vmem:[#allocation2 + $0x1810] ss:$8 sps:$4 sm:$0xff]  }
 0x2d9   :  { %6193 = vmatpush1.bf16.msra.mxu1 %v9140_v29  ;;  %v9219_v29 = vld [vmem:[#allocation2 + $0xb00] ss:$8 sps:$4 sm:$0xff]  }
 0x2da   :  { %6726 = vmatpush1.bf16.msra.mxu0 %v9143_v32  ;;  %6194 = vmatprep.subr.bf16.mxu1 %v9148_v56  ;;  %v9222_v32 = vld [vmem:[#allocation2 + $0x1800] ss:$8 sps:$4 sm:$0xff]   ;;  %v9227_v56 = vld [vmem:[#allocation2 + $0xb14] ss:$8 sps:$4 sm:$0xff]  }
 0x2db   :  { %6727 = vmatprep.subr.bf16.mxu0 %v9151_v33  ;;  %v9230_v33 = vld [vmem:[#allocation2 + $0x1814] ss:$8 sps:$4 sm:$0xff]  }
 0x2dd   :  { %6195 = vmatpush1.bf16.msra.mxu1 %v9146_v34  ;;  %v1125_v34 = vcombine.high %v9948_v19, %v9948_v19  ;;  %v9231_v19 = vld [vmem:[#allocation2 + $0xb20] ss:$8 sps:$4 sm:$0xff]  }
 0x2de   :  { %6728 = vmatpush1.bf16.msra.mxu0 %v9149_v52  ;;  %6196 = vmatprep.subr.bf16.mxu1 %v9154_v35  ;;  %v9974_v52 = vrot.slane %v1288_v26, %v9719_v51  ;;  %v9233_v35 = vld [vmem:[#allocation2 + $0xb24] ss:$8 sps:$4 sm:$0xff]   ;;  %v9300_v26 = vld [vmem:[#allocation2 + $0x18d0] ss:$8 sps:$4 sm:$0xff]  }
 0x2df   :  { %6729 = vmatprep.subr.bf16.mxu0 %v9157_v37  ;;  %v9236_v37 = vld [vmem:[#allocation2 + $0x1824] ss:$8 sps:$4 sm:$0xff]  }
 0x2e1   :  { %6197 = vmatpush1.bf16.msra.mxu1 %v9152_v39  ;;  %v9234_v39 = vld [vmem:[#allocation2 + $0x1820] ss:$8 sps:$4 sm:$0xff]  }
 0x2e2   :  { %6730 = vmatpush1.bf16.msra.mxu0 %v9155_v42  ;;  %6198 = vmatprep.subr.bf16.mxu1 %v9160_v21  ;;  %v9239_v42 = vld [vmem:[#allocation2 + $0xb34] ss:$8 sps:$4 sm:$0xff]  }
 0x2e3   :  { %6731 = vmatprep.subr.bf16.mxu0 %v9163_v43  ;;  %v9242_v21 = vld [vmem:[#allocation2 + $0x1834] ss:$8 sps:$4 sm:$0xff]   ;;  %v9237_v43 = vld [vmem:[#allocation2 + $0xb30] ss:$8 sps:$4 sm:$0xff]  }
 0x2e5   :  { %6199 = vmatpush1.bf16.msra.mxu1 %v9158_v63  ;;  %v9240_v63 = vld [vmem:[#allocation2 + $0x1830] ss:$8 sps:$4 sm:$0xff]  }
 0x2e6   :  { %6732 = vmatpush1.bf16.msra.mxu0 %v9161_v46  ;;  %6200 = vmatprep.subr.bf16.mxu1 %v9166_v47  ;;  %v9245_v46 = vld [vmem:[#allocation2 + $0xb44] ss:$8 sps:$4 sm:$0xff]  }
 0x2e7   :  { %6733 = vmatprep.subr.bf16.mxu0 %v9169_v31  ;;  %v9248_v47 = vld [vmem:[#allocation2 + $0x1844] ss:$8 sps:$4 sm:$0xff]   ;;  %v9243_v31 = vld [vmem:[#allocation2 + $0xb40] ss:$8 sps:$4 sm:$0xff]  }
 0x2e9   :  { %6201 = vmatpush1.bf16.msra.mxu1 %v9164_v28  ;;  %v9246_v28 = vld [vmem:[#allocation2 + $0x1840] ss:$8 sps:$4 sm:$0xff]  }
 0x2ea   :  { %6734 = vmatpush1.bf16.msra.mxu0 %v9167_v49  ;;  %6202 = vmatprep.subr.bf16.mxu1 %v9172_v50  ;;  %v9251_v49 = vld [vmem:[#allocation2 + $0xb54] ss:$8 sps:$4 sm:$0xff]  }
 0x2eb   :  { %6735 = vmatprep.subr.bf16.mxu0 %v9175_v55  ;;  %v9254_v50 = vld [vmem:[#allocation2 + $0x1854] ss:$8 sps:$4 sm:$0xff]   ;;  %v9249_v55 = vld [vmem:[#allocation2 + $0xb50] ss:$8 sps:$4 sm:$0xff]  }
 0x2ed   :  { %6203 = vmatpush1.bf16.msra.mxu1 %v9170_v30  ;;  %v9252_v30 = vld [vmem:[#allocation2 + $0x1850] ss:$8 sps:$4 sm:$0xff]  }
 0x2ee   :  { %6736 = vmatpush1.bf16.msra.mxu0 %v9173_v36  ;;  %6204 = vmatprep.subr.bf16.mxu1 %v9178_v57  ;;  %v9257_v36 = vld [vmem:[#allocation2 + $0xb64] ss:$8 sps:$4 sm:$0xff]  }
 0x2ef   :  { %6737 = vmatprep.subr.bf16.mxu0 %v9181_v59  ;;  %v9260_v57 = vld [vmem:[#allocation2 + $0x1864] ss:$8 sps:$4 sm:$0xff]   ;;  %v9255_v59 = vld [vmem:[#allocation2 + $0xb60] ss:$8 sps:$4 sm:$0xff]  }
 0x2f1   :  { %6205 = vmatpush1.bf16.msra.mxu1 %v9176_v5  ;;  %v9258_v5 = vld [vmem:[#allocation2 + $0x1860] ss:$8 sps:$4 sm:$0xff]  }
 0x2f2   :  { %6738 = vmatpush1.bf16.msra.mxu0 %v9179_v17  ;;  %6206 = vmatprep.subr.bf16.mxu1 %v9184_v60  ;;  %v9263_v17 = vld [vmem:[#allocation2 + $0xb74] ss:$8 sps:$4 sm:$0xff]  }
 0x2f3   :  { %6739 = vmatprep.subr.bf16.mxu0 %v9187_v61  ;;  %v9266_v60 = vld [vmem:[#allocation2 + $0x1874] ss:$8 sps:$4 sm:$0xff]   ;;  %v9261_v61 = vld [vmem:[#allocation2 + $0xb70] ss:$8 sps:$4 sm:$0xff]  }
 0x2f5   :  { %6207 = vmatpush1.bf16.msra.mxu1 %v9182_v62  ;;  %v9264_v62 = vld [vmem:[#allocation2 + $0x1870] ss:$8 sps:$4 sm:$0xff]  }
 0x2f6   :  { %6740 = vmatpush1.bf16.msra.mxu0 %v9185_v44  ;;  %6208 = vmatprep.subr.bf16.mxu1 %v9190_v25  ;;  %v9269_v44 = vld [vmem:[#allocation2 + $0xb84] ss:$8 sps:$4 sm:$0xff]  }
 0x2f7   :  { %6741 = vmatprep.subr.bf16.mxu0 %v9193_v1  ;;  %v9272_v25 = vld [vmem:[#allocation2 + $0x1884] ss:$8 sps:$4 sm:$0xff]   ;;  %v9267_v1 = vld [vmem:[#allocation2 + $0xb80] ss:$8 sps:$4 sm:$0xff]  }
 0x2f9   :  { %6209 = vmatpush1.bf16.msra.mxu1 %v9188_v4  ;;  %v9270_v4 = vld [vmem:[#allocation2 + $0x1880] ss:$8 sps:$4 sm:$0xff]  }
 0x2fa   :  { %6742 = vmatpush1.bf16.msra.mxu0 %v9191_v48  ;;  %6210 = vmatprep.subr.bf16.mxu1 %v9196_v14  ;;  %v9275_v48 = vld [vmem:[#allocation2 + $0xb94] ss:$8 sps:$4 sm:$0xff]  }
 0x2fb   :  { %6743 = vmatprep.subr.bf16.mxu0 %v9199_v6  ;;  %v9278_v14 = vld [vmem:[#allocation2 + $0x1894] ss:$8 sps:$4 sm:$0xff]   ;;  %v9273_v6 = vld [vmem:[#allocation2 + $0xb90] ss:$8 sps:$4 sm:$0xff]  }
 0x2fd   :  { %6211 = vmatpush1.bf16.msra.mxu1 %v9194_v7  ;;  %v9276_v7 = vld [vmem:[#allocation2 + $0x1890] ss:$8 sps:$4 sm:$0xff]  }
 0x2fe   :  { %6744 = vmatpush1.bf16.msra.mxu0 %v9197_v24  ;;  %6212 = vmatprep.subr.bf16.mxu1 %v9202_v38  ;;  %v9281_v24 = vld [vmem:[#allocation2 + $0xba4] ss:$8 sps:$4 sm:$0xff]  }
 0x2ff   :  { %6745 = vmatprep.subr.bf16.mxu0 %v9205_v9  ;;  %v9284_v38 = vld [vmem:[#allocation2 + $0x18a4] ss:$8 sps:$4 sm:$0xff]   ;;  %v9279_v9 = vld [vmem:[#allocation2 + $0xba0] ss:$8 sps:$4 sm:$0xff]  }
 0x301   :  { %6213 = vmatpush1.bf16.msra.mxu1 %v9200_v58  ;;  %v9282_v58 = vld [vmem:[#allocation2 + $0x18a0] ss:$8 sps:$4 sm:$0xff]  }
 0x302   :  { %6746 = vmatpush1.bf16.msra.mxu0 %v9203_v10  ;;  %6214 = vmatprep.subr.bf16.mxu1 %v9208_v40  ;;  %v9287_v10 = vld [vmem:[#allocation2 + $0xbb4] ss:$8 sps:$4 sm:$0xff]  }
 0x303   :  { %6747 = vmatprep.subr.bf16.mxu0 %v9211_v11  ;;  %v9290_v40 = vld [vmem:[#allocation2 + $0x18b4] ss:$8 sps:$4 sm:$0xff]   ;;  %v9285_v11 = vld [vmem:[#allocation2 + $0xbb0] ss:$8 sps:$4 sm:$0xff]  }
 0x305   :  { %6215 = vmatpush1.bf16.msra.mxu1 %v9206_v16  ;;  %v9288_v16 = vld [vmem:[#allocation2 + $0x18b0] ss:$8 sps:$4 sm:$0xff]  }
 0x306   :  { %6748 = vmatpush1.bf16.msra.mxu0 %v9209_v54  ;;  %6216 = vmatprep.subr.bf16.mxu1 %v9214_v18  ;;  %v9293_v54 = vld [vmem:[#allocation2 + $0xbc4] ss:$8 sps:$4 sm:$0xff]  }
 0x307   :  { %6749 = vmatprep.subr.bf16.mxu0 %v9217_v2  ;;  %v9296_v18 = vld [vmem:[#allocation2 + $0x18c4] ss:$8 sps:$4 sm:$0xff]   ;;  %v9291_v2 = vld [vmem:[#allocation2 + $0xbc0] ss:$8 sps:$4 sm:$0xff]  }
 0x309   :  { %6217 = vmatpush1.bf16.msra.mxu1 %v9212_v0  ;;  %v9294_v0 = vld [vmem:[#allocation2 + $0x18c0] ss:$8 sps:$4 sm:$0xff]  }
 0x30a   :  { %6750 = vmatpush1.bf16.msra.mxu0 %v9215_v20  ;;  %6227 = vmatprep.subr.bf16.mxu1 %v9221_v22  ;;  %v9299_v20 = vld [vmem:[#allocation2 + $0xbd4] ss:$8 sps:$4 sm:$0xff]  }
 0x30b   :  { %6760 = vmatprep.subr.bf16.mxu0 %v9224_v23  ;;  %v9302_v22 = vld [vmem:[#allocation2 + $0x18d4] ss:$8 sps:$4 sm:$0xff]   ;;  %v9297_v23 = vld [vmem:[#allocation2 + $0xbd0] ss:$8 sps:$4 sm:$0xff]  }
 0x30c   :  { %6219 = vmatmul.mubr.bf16.vlgmr.msra.gmra.mrb[0].mxu1 %v9967_v8 }
 0x30d   :  { %6752 = vmatmul.mubr.bf16.vlgmr.msra.gmra.mrb[0].mxu0 %v1270_v27  ;;  %6228 = vmatpush1.bf16.msra.mxu1 %v9219_v29  ;;  %v9305_v27 = vld [vmem:[#allocation2 + $0xbe4] ss:$8 sps:$4 sm:$0xff]  }
 0x30e   :  { %6761 = vmatpush1.bf16.msra.mxu0 %v9222_v32  ;;  %6229 = vmatprep.subr.bf16.mxu1 %v9227_v56  ;;  %v9308_v29 = vld [vmem:[#allocation2 + $0x18e4] ss:$8 sps:$4 sm:$0xff]   ;;  %v9303_v32 = vld [vmem:[#allocation2 + $0xbe0] ss:$8 sps:$4 sm:$0xff]  }
 0x30f   :  { %6762 = vmatprep.subr.bf16.mxu0 %v9230_v33  ;;  %6259 = vmatprep.mubr.bf16.mxu1 %v1125_v34  ;;  %v9306_v56 = vld [vmem:[#allocation2 + $0x18e0] ss:$8 sps:$4 sm:$0xff]   ;;  %v9311_v33 = vld [vmem:[#allocation2 + $0xbf4] ss:$8 sps:$4 sm:$0xff]  }
 0x310   :  { %6792 = vmatprep.mubr.bf16.mxu0 %v9974_v52  ;;  %v9314_v34 = vld [vmem:[#allocation2 + $0x18f4] ss:$8 sps:$4 sm:$0xff]  }
 0x311   :  { %6230 = vmatpush1.bf16.msra.mxu1 %v9225_v53  ;;  %v9309_v53 = vld [vmem:[#allocation2 + $0xbf0] ss:$8 sps:$4 sm:$0xff]  }
 0x312   :  { %6763 = vmatpush1.bf16.msra.mxu0 %v9228_v12  ;;  %6231 = vmatprep.subr.bf16.mxu1 %v9233_v35  ;;  %v9312_v12 = vld [vmem:[#allocation2 + $0x18f0] ss:$8 sps:$4 sm:$0xff]   ;;  %v9317_v35 = vld [vmem:[#allocation2 + $0xc04] ss:$8 sps:$4 sm:$0xff]  }
 0x313   :  { %6764 = vmatprep.subr.bf16.mxu0 %v9236_v37  ;;  %v9320_v37 = vld [vmem:[#allocation2 + $0x1904] ss:$8 sps:$4 sm:$0xff]  }
 0x315   :  { %6232 = vmatpush1.bf16.msra.mxu1 %v9231_v19  ;;  %v1123_v19 = vcombine.high %v9967_v8, %v9967_v8  ;;  %v9321_v8 = vld [vmem:[#allocation2 + $0xc10] ss:$8 sps:$4 sm:$0xff]  }
 0x316   :  { %6765 = vmatpush1.bf16.msra.mxu0 %v9234_v39  ;;  %6233 = vmatprep.subr.bf16.mxu1 %v9239_v42  ;;  %v9982_v39 = vrot.slane %v9961_v41, %v9719_v51  ;;  %v9315_v42 = vld [vmem:[#allocation2 + $0xc00] ss:$8 sps:$4 sm:$0xff]   ;;  %v9329_v41 = vld [vmem:[#allocation2 + $0xc24] ss:$8 sps:$4 sm:$0xff]  }
 0x317   :  { %6766 = vmatprep.subr.bf16.mxu0 %v9242_v21  ;;  %v9318_v21 = vld [vmem:[#allocation2 + $0x1900] ss:$8 sps:$4 sm:$0xff]  }
 0x319   :  { %6234 = vmatpush1.bf16.msra.mxu1 %v9237_v43  ;;  %v9323_v43 = vld [vmem:[#allocation2 + $0xc14] ss:$8 sps:$4 sm:$0xff]  }
 0x31a   :  { %6767 = vmatpush1.bf16.msra.mxu0 %v9240_v63  ;;  %6235 = vmatprep.subr.bf16.mxu1 %v9245_v46  ;;  %v9326_v63 = vld [vmem:[#allocation2 + $0x1914] ss:$8 sps:$4 sm:$0xff]   ;;  %v1320_v46 = vcombine.high %v9974_v52, %v9974_v52 }
 0x31b   :  { %6768 = vmatprep.subr.bf16.mxu0 %v9248_v47  ;;  %v9324_v47 = vld [vmem:[#allocation2 + $0x1910] ss:$8 sps:$4 sm:$0xff]   ;;  %v9335_v52 = vld [vmem:[#allocation2 + $0xc34] ss:$8 sps:$4 sm:$0xff]  }
 0x31d   :  { %6236 = vmatpush1.bf16.msra.mxu1 %v9243_v31  ;;  %v9332_v31 = vld [vmem:[#allocation2 + $0x1924] ss:$8 sps:$4 sm:$0xff]  }
 0x31e   :  { %6769 = vmatpush1.bf16.msra.mxu0 %v9246_v28  ;;  %6237 = vmatprep.subr.bf16.mxu1 %v9251_v49  ;;  %v9327_v28 = vld [vmem:[#allocation2 + $0xc20] ss:$8 sps:$4 sm:$0xff]  }
 0x31f   :  { %6770 = vmatprep.subr.bf16.mxu0 %v9254_v50  ;;  %v9330_v49 = vld [vmem:[#allocation2 + $0x1920] ss:$8 sps:$4 sm:$0xff]   ;;  %v9338_v50 = vld [vmem:[#allocation2 + $0x1934] ss:$8 sps:$4 sm:$0xff]  }
 0x321   :  { %6238 = vmatpush1.bf16.msra.mxu1 %v9249_v55  ;;  %v9333_v55 = vld [vmem:[#allocation2 + $0xc30] ss:$8 sps:$4 sm:$0xff]  }
 0x322   :  { %6771 = vmatpush1.bf16.msra.mxu0 %v9252_v30  ;;  %6239 = vmatprep.subr.bf16.mxu1 %v9257_v36  ;;  %v9336_v30 = vld [vmem:[#allocation2 + $0x1930] ss:$8 sps:$4 sm:$0xff]   ;;  %v9341_v36 = vld [vmem:[#allocation2 + $0xc44] ss:$8 sps:$4 sm:$0xff]  }
 0x323   :  { %6772 = vmatprep.subr.bf16.mxu0 %v9260_v57  ;;  %v9344_v57 = vld [vmem:[#allocation2 + $0x1944] ss:$8 sps:$4 sm:$0xff]  }
 0x325   :  { %6240 = vmatpush1.bf16.msra.mxu1 %v9255_v59  ;;  %v9342_v59 = vld [vmem:[#allocation2 + $0x1940] ss:$8 sps:$4 sm:$0xff]  }
 0x326   :  { %6773 = vmatpush1.bf16.msra.mxu0 %v9258_v5  ;;  %6241 = vmatprep.subr.bf16.mxu1 %v9263_v17  ;;  %v9347_v5 = vld [vmem:[#allocation2 + $0xc54] ss:$8 sps:$4 sm:$0xff]  }
 0x327   :  { %6774 = vmatprep.subr.bf16.mxu0 %v9266_v60  ;;  %v9350_v17 = vld [vmem:[#allocation2 + $0x1954] ss:$8 sps:$4 sm:$0xff]   ;;  %v9345_v60 = vld [vmem:[#allocation2 + $0xc50] ss:$8 sps:$4 sm:$0xff]  }
 0x329   :  { %6242 = vmatpush1.bf16.msra.mxu1 %v9261_v61  ;;  %v9348_v61 = vld [vmem:[#allocation2 + $0x1950] ss:$8 sps:$4 sm:$0xff]  }
 0x32a   :  { %6775 = vmatpush1.bf16.msra.mxu0 %v9264_v62  ;;  %6243 = vmatprep.subr.bf16.mxu1 %v9269_v44  ;;  %v9353_v62 = vld [vmem:[#allocation2 + $0xc64] ss:$8 sps:$4 sm:$0xff]  }
 0x32b   :  { %6776 = vmatprep.subr.bf16.mxu0 %v9272_v25  ;;  %v9356_v44 = vld [vmem:[#allocation2 + $0x1964] ss:$8 sps:$4 sm:$0xff]   ;;  %v9351_v25 = vld [vmem:[#allocation2 + $0xc60] ss:$8 sps:$4 sm:$0xff]  }
 0x32d   :  { %6244 = vmatpush1.bf16.msra.mxu1 %v9267_v1  ;;  %v9354_v1 = vld [vmem:[#allocation2 + $0x1960] ss:$8 sps:$4 sm:$0xff]  }
 0x32e   :  { %6777 = vmatpush1.bf16.msra.mxu0 %v9270_v4  ;;  %6245 = vmatprep.subr.bf16.mxu1 %v9275_v48  ;;  %v9359_v4 = vld [vmem:[#allocation2 + $0xc74] ss:$8 sps:$4 sm:$0xff]  }
 0x32f   :  { %6778 = vmatprep.subr.bf16.mxu0 %v9278_v14  ;;  %v9362_v48 = vld [vmem:[#allocation2 + $0x1974] ss:$8 sps:$4 sm:$0xff]   ;;  %v9357_v14 = vld [vmem:[#allocation2 + $0xc70] ss:$8 sps:$4 sm:$0xff]  }
 0x331   :  { %6246 = vmatpush1.bf16.msra.mxu1 %v9273_v6  ;;  %v9360_v6 = vld [vmem:[#allocation2 + $0x1970] ss:$8 sps:$4 sm:$0xff]  }
 0x332   :  { %6779 = vmatpush1.bf16.msra.mxu0 %v9276_v7  ;;  %6247 = vmatprep.subr.bf16.mxu1 %v9281_v24  ;;  %v9365_v7 = vld [vmem:[#allocation2 + $0xc84] ss:$8 sps:$4 sm:$0xff]  }
 0x333   :  { %6780 = vmatprep.subr.bf16.mxu0 %v9284_v38  ;;  %v9368_v24 = vld [vmem:[#allocation2 + $0x1984] ss:$8 sps:$4 sm:$0xff]   ;;  %v9363_v38 = vld [vmem:[#allocation2 + $0xc80] ss:$8 sps:$4 sm:$0xff]  }
 0x335   :  { %6248 = vmatpush1.bf16.msra.mxu1 %v9279_v9  ;;  %v9366_v9 = vld [vmem:[#allocation2 + $0x1980] ss:$8 sps:$4 sm:$0xff]  }
 0x336   :  { %6781 = vmatpush1.bf16.msra.mxu0 %v9282_v58  ;;  %6249 = vmatprep.subr.bf16.mxu1 %v9287_v10  ;;  %v9371_v58 = vld [vmem:[#allocation2 + $0xc94] ss:$8 sps:$4 sm:$0xff]  }
 0x337   :  { %6782 = vmatprep.subr.bf16.mxu0 %v9290_v40  ;;  %v9374_v10 = vld [vmem:[#allocation2 + $0x1994] ss:$8 sps:$4 sm:$0xff]   ;;  %v9369_v40 = vld [vmem:[#allocation2 + $0xc90] ss:$8 sps:$4 sm:$0xff]  }
 0x339   :  { %6250 = vmatpush1.bf16.msra.mxu1 %v9285_v11  ;;  %v9372_v11 = vld [vmem:[#allocation2 + $0x1990] ss:$8 sps:$4 sm:$0xff]  }
 0x33a   :  { %6783 = vmatpush1.bf16.msra.mxu0 %v9288_v16  ;;  %6251 = vmatprep.subr.bf16.mxu1 %v9293_v54  ;;  %v9377_v16 = vld [vmem:[#allocation2 + $0xca4] ss:$8 sps:$4 sm:$0xff]  }
 0x33b   :  { %6784 = vmatprep.subr.bf16.mxu0 %v9296_v18  ;;  %v9380_v54 = vld [vmem:[#allocation2 + $0x19a4] ss:$8 sps:$4 sm:$0xff]   ;;  %v9375_v18 = vld [vmem:[#allocation2 + $0xca0] ss:$8 sps:$4 sm:$0xff]  }
 0x33d   :  { %6252 = vmatpush1.bf16.msra.mxu1 %v9291_v2  ;;  %v9378_v2 = vld [vmem:[#allocation2 + $0x19a0] ss:$8 sps:$4 sm:$0xff]  }
 0x33e   :  { %6785 = vmatpush1.bf16.msra.mxu0 %v9294_v0  ;;  %6253 = vmatprep.subr.bf16.mxu1 %v9299_v20  ;;  %v9383_v0 = vld [vmem:[#allocation2 + $0xcb4] ss:$8 sps:$4 sm:$0xff]  }
 0x33f   :  { %6786 = vmatprep.subr.bf16.mxu0 %v9302_v22  ;;  %v9386_v20 = vld [vmem:[#allocation2 + $0x19b4] ss:$8 sps:$4 sm:$0xff]   ;;  %v9381_v22 = vld [vmem:[#allocation2 + $0xcb0] ss:$8 sps:$4 sm:$0xff]  }
 0x341   :  { %6254 = vmatpush1.bf16.msra.mxu1 %v9297_v23  ;;  %v9384_v23 = vld [vmem:[#allocation2 + $0x19b0] ss:$8 sps:$4 sm:$0xff]  }
 0x342   :  { %6787 = vmatpush1.bf16.msra.mxu0 %v9300_v26  ;;  %6255 = vmatprep.subr.bf16.mxu1 %v9305_v27  ;;  %v9389_v26 = vld [vmem:[#allocation2 + $0xcc4] ss:$8 sps:$4 sm:$0xff]  }
 0x343   :  { %6788 = vmatprep.subr.bf16.mxu0 %v9308_v29  ;;  %v9392_v27 = vld [vmem:[#allocation2 + $0x19c4] ss:$8 sps:$4 sm:$0xff]   ;;  %v9387_v29 = vld [vmem:[#allocation2 + $0xcc0] ss:$8 sps:$4 sm:$0xff]  }
 0x345   :  { %6256 = vmatpush1.bf16.msra.mxu1 %v9303_v32  ;;  %v9390_v32 = vld [vmem:[#allocation2 + $0x19c0] ss:$8 sps:$4 sm:$0xff]  }
 0x346   :  { %6789 = vmatpush1.bf16.msra.mxu0 %v9306_v56  ;;  %6257 = vmatprep.subr.bf16.mxu1 %v9311_v33  ;;  %v9395_v56 = vld [vmem:[#allocation2 + $0xcd4] ss:$8 sps:$4 sm:$0xff]  }
 0x347   :  { %6790 = vmatprep.subr.bf16.mxu0 %v9314_v34  ;;  %v9398_v33 = vld [vmem:[#allocation2 + $0x19d4] ss:$8 sps:$4 sm:$0xff]   ;;  %v9393_v34 = vld [vmem:[#allocation2 + $0xcd0] ss:$8 sps:$4 sm:$0xff]  }
 0x349   :  { %6258 = vmatpush1.bf16.msra.mxu1 %v9309_v53  ;;  %v9396_v53 = vld [vmem:[#allocation2 + $0x19d0] ss:$8 sps:$4 sm:$0xff]  }
 0x34a   :  { %6791 = vmatpush1.bf16.msra.mxu0 %v9312_v12  ;;  %6268 = vmatprep.subr.bf16.mxu1 %v9317_v35  ;;  %v9401_v12 = vld [vmem:[#allocation2 + $0xce4] ss:$8 sps:$4 sm:$0xff]  }
 0x34b   :  { %6801 = vmatprep.subr.bf16.mxu0 %v9320_v37  ;;  %v9404_v35 = vld [vmem:[#allocation2 + $0x19e4] ss:$8 sps:$4 sm:$0xff]   ;;  %v1273_v37 = vcombine.high %v9957_v13, %v9957_v13 }
 0x34c   :  { %6260 = vmatmul.mubr.bf16.vlgmr.msra.gmra.mrb[0].mxu1 %v1123_v19  ;;  %v9399_v19 = vld [vmem:[#allocation2 + $0xce0] ss:$8 sps:$4 sm:$0xff]  }
 0x34d   :  { %6793 = vmatmul.mubr.bf16.vlgmr.msra.gmra.mrb[0].mxu0 %v9982_v39  ;;  %6269 = vmatpush1.bf16.msra.mxu1 %v9315_v42  ;;  %v9402_v42 = vld [vmem:[#allocation2 + $0x19e0] ss:$8 sps:$4 sm:$0xff]  }
 0x34e   :  { %6802 = vmatpush1.bf16.msra.mxu0 %v9318_v21  ;;  %6270 = vmatprep.subr.bf16.mxu1 %v9323_v43  ;;  %v9407_v21 = vld [vmem:[#allocation2 + $0xcf4] ss:$8 sps:$4 sm:$0xff]  }
 0x34f   :  { %6803 = vmatprep.subr.bf16.mxu0 %v9326_v63  ;;  %6300 = vmatprep.mubr.bf16.mxu1 %v9736_v3  ;;  %v9339_v3 = vld [vmem:[#allocation2 + $0xc40] ss:$8 sps:$4 sm:$0xff]   ;;  %v9410_v43 = vld [vmem:[#allocation2 + $0x19f4] ss:$8 sps:$4 sm:$0xff]   ;;  %v9991_v63 = vrot.slane %v1273_v37, %v9719_v51 }
 0x350   :  { %6833 = vmatprep.mubr.bf16.mxu0 %v1320_v46  ;;  %v9405_v46 = vld [vmem:[#allocation2 + $0xcf0] ss:$8 sps:$4 sm:$0xff]   ;;  %v9485_v37 = vld [vmem:[#allocation7] sm:$0xff]  }
 0x351   :  { %6271 = vmatpush1.bf16.msra.mxu1 %v9321_v8  ;;  %v9408_v8 = vld [vmem:[#allocation2 + $0x19f0] ss:$8 sps:$4 sm:$0xff]   ;;  %v1289_v13 = vcombine.high %v9991_v63, %v9991_v63 }
 0x352   :  { %6804 = vmatpush1.bf16.msra.mxu0 %v9324_v47  ;;  %6272 = vmatprep.subr.bf16.mxu1 %v9329_v41  ;;  %v9413_v47 = vld [vmem:[#allocation2 + $0x1a04] ss:$8 sps:$4 sm:$0xff]  }
 0x353   :  { %6805 = vmatprep.subr.bf16.mxu0 %v9332_v31  ;;  %v9437_v41 = vld [vmem:[#allocation2 + $0x1b04] ss:$8 sps:$4 sm:$0xff]   ;;  %v1318_v31 = vcombine.high %v9982_v39, %v9982_v39 }
 0x354   :  { %v9449_v39 = vld [vmem:[#allocation2 + $0x1b24] ss:$8 sps:$4 sm:$0xff]  }
 0x355   :  { %6273 = vmatpush1.bf16.msra.mxu1 %v9327_v28  ;;  %v9411_v28 = vld [vmem:[#allocation2 + $0x1a00] ss:$8 sps:$4 sm:$0xff]  }
 0x356   :  { %6806 = vmatpush1.bf16.msra.mxu0 %v9330_v49  ;;  %6274 = vmatprep.subr.bf16.mxu1 %v9335_v52  ;;  %v9435_v49 = vld [vmem:[#allocation2 + $0x1b00] ss:$8 sps:$4 sm:$0xff]   ;;  %v9416_v52 = vld [vmem:[#allocation2 + $0x1a14] ss:$8 sps:$4 sm:$0xff]  }
 0x357   :  { %6807 = vmatprep.subr.bf16.mxu0 %v9338_v50  ;;  %v9443_v50 = vld [vmem:[#allocation2 + $0x1b14] ss:$8 sps:$4 sm:$0xff]  }
 0x359   :  { %6275 = vmatpush1.bf16.msra.mxu1 %v9333_v55  ;;  %v1317_v55 = vrot.slane %v1289_v13, %v9719_v51  ;;  %v9495_v13 = vld [vmem:[#allocation7 + $0x28] sm:$0xff]  }
 0x35a   :  { %6808 = vmatpush1.bf16.msra.mxu0 %v9336_v30  ;;  %6276 = vmatprep.subr.bf16.mxu1 %v9341_v36  ;;  %v9414_v30 = vld [vmem:[#allocation2 + $0x1a10] ss:$8 sps:$4 sm:$0xff]  }
 0x35b   :  { %6809 = vmatprep.subr.bf16.mxu0 %v9344_v57  ;;  %v9441_v36 = vld [vmem:[#allocation2 + $0x1b10] ss:$8 sps:$4 sm:$0xff]   ;;  %v9419_v57 = vld [vmem:[#allocation2 + $0x1a24] ss:$8 sps:$4 sm:$0xff]  }
 0x35d   :  { %6277 = vmatpush1.bf16.msra.mxu1 %v9339_v3  ;;  %v9629_v3 = vmov 0  }
 0x35e   :  { %6810 = vmatpush1.bf16.msra.mxu0 %v9342_v59  ;;  %6278 = vmatprep.subr.bf16.mxu1 %v9347_v5  ;;  %v9417_v59 = vld [vmem:[#allocation2 + $0x1a20] ss:$8 sps:$4 sm:$0xff]  }
 0x35f   :  { %6811 = vmatprep.subr.bf16.mxu0 %v9350_v17  ;;  %v9447_v5 = vld [vmem:[#allocation2 + $0x1b20] ss:$8 sps:$4 sm:$0xff]   ;;  %v9422_v17 = vld [vmem:[#allocation2 + $0x1a34] ss:$8 sps:$4 sm:$0xff]  }
 0x361   :  { %6279 = vmatpush1.bf16.msra.mxu1 %v9345_v60  ;;  %v9420_v60 = vld [vmem:[#allocation2 + $0x1a30] ss:$8 sps:$4 sm:$0xff]  }
 0x362   :  { %6812 = vmatpush1.bf16.msra.mxu0 %v9348_v61  ;;  %6280 = vmatprep.subr.bf16.mxu1 %v9353_v62  ;;  %v9453_v61 = vld [vmem:[#allocation2 + $0x1b30] ss:$8 sps:$4 sm:$0xff]   ;;  %v9425_v62 = vld [vmem:[#allocation2 + $0x1a44] ss:$8 sps:$4 sm:$0xff]  }
 0x363   :  { %6813 = vmatprep.subr.bf16.mxu0 %v9356_v44  ;;  %v9461_v44 = vld [vmem:[#allocation2 + $0x1b44] ss:$8 sps:$4 sm:$0xff]  }
 0x365   :  { %6281 = vmatpush1.bf16.msra.mxu1 %v9351_v25  ;;  %v9423_v25 = vld [vmem:[#allocation2 + $0x1a40] ss:$8 sps:$4 sm:$0xff]  }
 0x366   :  { %6814 = vmatpush1.bf16.msra.mxu0 %v9354_v1  ;;  %6282 = vmatprep.subr.bf16.mxu1 %v9359_v4  ;;  %v9459_v1 = vld [vmem:[#allocation2 + $0x1b40] ss:$8 sps:$4 sm:$0xff]   ;;  %v9428_v4 = vld [vmem:[#allocation2 + $0x1a54] ss:$8 sps:$4 sm:$0xff]  }
 0x367   :  { %6815 = vmatprep.subr.bf16.mxu0 %v9362_v48  ;;  %v9467_v48 = vld [vmem:[#allocation2 + $0x1b54] ss:$8 sps:$4 sm:$0xff]  }
 0x369   :  { %6283 = vmatpush1.bf16.msra.mxu1 %v9357_v14  ;;  %v9426_v14 = vld [vmem:[#allocation2 + $0x1a50] ss:$8 sps:$4 sm:$0xff]  }
 0x36a   :  { %6816 = vmatpush1.bf16.msra.mxu0 %v9360_v6  ;;  %6284 = vmatprep.subr.bf16.mxu1 %v9365_v7  ;;  %v9465_v6 = vld [vmem:[#allocation2 + $0x1b50] ss:$8 sps:$4 sm:$0xff]   ;;  %v9431_v7 = vld [vmem:[#allocation2 + $0x1a64] ss:$8 sps:$4 sm:$0xff]  }
 0x36b   :  { %6817 = vmatprep.subr.bf16.mxu0 %v9368_v24  ;;  %v9473_v24 = vld [vmem:[#allocation2 + $0x1b64] ss:$8 sps:$4 sm:$0xff]  }
 0x36d   :  { %6285 = vmatpush1.bf16.msra.mxu1 %v9363_v38  ;;  %v9429_v38 = vld [vmem:[#allocation2 + $0x1a60] ss:$8 sps:$4 sm:$0xff]  }
 0x36e   :  { %6818 = vmatpush1.bf16.msra.mxu0 %v9366_v9  ;;  %6286 = vmatprep.subr.bf16.mxu1 %v9371_v58  ;;  %v9471_v9 = vld [vmem:[#allocation2 + $0x1b60] ss:$8 sps:$4 sm:$0xff]   ;;  %v9434_v58 = vld [vmem:[#allocation2 + $0x1a74] ss:$8 sps:$4 sm:$0xff]  }
 0x36f   :  { %6819 = vmatprep.subr.bf16.mxu0 %v9374_v10  ;;  %v9479_v10 = vld [vmem:[#allocation2 + $0x1b74] ss:$8 sps:$4 sm:$0xff]  }
 0x371   :  { %6287 = vmatpush1.bf16.msra.mxu1 %v9369_v40  ;;  %v1303_v40 = vrot.slane %v9991_v63, %v9719_v51  ;;  %v9450_v51 = vld [vmem:[#allocation2 + $0x1aa0] ss:$8 sps:$4 sm:$0xff]  }
 0x372   :  { %6820 = vmatpush1.bf16.msra.mxu0 %v9372_v11  ;;  %6288 = vmatprep.subr.bf16.mxu1 %v9377_v16  ;;  %v9432_v11 = vld [vmem:[#allocation2 + $0x1a70] ss:$8 sps:$4 sm:$0xff]  }
 0x373   :  { %6821 = vmatprep.subr.bf16.mxu0 %v9380_v54  ;;  %v9477_v16 = vld [vmem:[#allocation2 + $0x1b70] ss:$8 sps:$4 sm:$0xff]   ;;  %v9440_v54 = vld [vmem:[#allocation2 + $0x1a84] ss:$8 sps:$4 sm:$0xff]  }
 0x374   :  { %v9490_v63 = vld [vmem:[#allocation7 + $0x58] sm:$0xff]  }
 0x375   :  { %6289 = vmatpush1.bf16.msra.mxu1 %v9375_v18  ;;  %v1319_v18 = vcombine.high %v1303_v40, %v1303_v40 }
 0x376   :  { %6822 = vmatpush1.bf16.msra.mxu0 %v9378_v2  ;;  %6290 = vmatprep.subr.bf16.mxu1 %v9383_v0  ;;  %v9438_v2 = vld [vmem:[#allocation2 + $0x1a80] ss:$8 sps:$4 sm:$0xff]   ;;  %v9446_v0 = vld [vmem:[#allocation2 + $0x1a94] ss:$8 sps:$4 sm:$0xff]  }
 0x377   :  { %6823 = vmatprep.subr.bf16.mxu0 %v9386_v20  ;;  %v9444_v20 = vld [vmem:[#allocation2 + $0x1a90] ss:$8 sps:$4 sm:$0xff]  }
 0x379   :  { %6291 = vmatpush1.bf16.msra.mxu1 %v9381_v22  ;;  %v9452_v22 = vld [vmem:[#allocation2 + $0x1aa4] ss:$8 sps:$4 sm:$0xff]  }
 0x37a   :  { %6824 = vmatpush1.bf16.msra.mxu0 %v9384_v23  ;;  %6292 = vmatprep.subr.bf16.mxu1 %v9389_v26  ;;  %v9458_v23 = vld [vmem:[#allocation2 + $0x1ab4] ss:$8 sps:$4 sm:$0xff]   ;;  %v9456_v26 = vld [vmem:[#allocation2 + $0x1ab0] ss:$8 sps:$4 sm:$0xff]  }
 0x37b   :  { %6825 = vmatprep.subr.bf16.mxu0 %v9392_v27  ;;  %v9464_v27 = vld [vmem:[#allocation2 + $0x1ac4] ss:$8 sps:$4 sm:$0xff]  }
 0x37d   :  { %6293 = vmatpush1.bf16.msra.mxu1 %v9387_v29  ;;  %v9462_v29 = vld [vmem:[#allocation2 + $0x1ac0] ss:$8 sps:$4 sm:$0xff]  }
 0x37e   :  { %6826 = vmatpush1.bf16.msra.mxu0 %v9390_v32  ;;  %6294 = vmatprep.subr.bf16.mxu1 %v9395_v56  ;;  %v9470_v32 = vld [vmem:[#allocation2 + $0x1ad4] ss:$8 sps:$4 sm:$0xff]   ;;  %v9468_v56 = vld [vmem:[#allocation2 + $0x1ad0] ss:$8 sps:$4 sm:$0xff]  }
 0x37f   :  { %6827 = vmatprep.subr.bf16.mxu0 %v9398_v33  ;;  %v9476_v33 = vld [vmem:[#allocation2 + $0x1ae4] ss:$8 sps:$4 sm:$0xff]  }
 0x381   :  { %6295 = vmatpush1.bf16.msra.mxu1 %v9393_v34  ;;  %v9474_v34 = vld [vmem:[#allocation2 + $0x1ae0] ss:$8 sps:$4 sm:$0xff]  }
 0x382   :  { %6828 = vmatpush1.bf16.msra.mxu0 %v9396_v53  ;;  %6296 = vmatprep.subr.bf16.mxu1 %v9401_v12  ;;  %v9482_v53 = vld [vmem:[#allocation2 + $0x1af4] ss:$8 sps:$4 sm:$0xff]   ;;  %v9480_v12 = vld [vmem:[#allocation2 + $0x1af0] ss:$8 sps:$4 sm:$0xff]  }
 0x383   :  { %6829 = vmatprep.subr.bf16.mxu0 %v9404_v35  ;;  %v9484_v35 = vld [vmem:[#allocation7 + $0x40] sm:$0xff]  }
 0x385   :  { %6297 = vmatpush1.bf16.msra.mxu1 %v9399_v19  ;;  %v9486_v19 = vld [vmem:[#allocation7 + $0x48] sm:$0xff]  }
 0x386   :  { %6830 = vmatpush1.bf16.msra.mxu0 %v9402_v42  ;;  %6298 = vmatprep.subr.bf16.mxu1 %v9407_v21  ;;  %v9487_v42 = vld [vmem:[#allocation7 + $0x8] sm:$0xff]   ;;  %v9488_v21 = vld [vmem:[#allocation7 + $0x50] sm:$0xff]  }
 0x387   :  { %6831 = vmatprep.subr.bf16.mxu0 %v9410_v43  ;;  %v9489_v43 = vld [vmem:[#allocation7 + $0x10] sm:$0xff]  }
 0x389   :  { %6299 = vmatpush1.bf16.msra.mxu1 %v9405_v46  ;;  %v9491_v46 = vld [vmem:[#allocation7 + $0x18] sm:$0xff]  }
 0x38a   :  { %6832 = vmatpush1.bf16.msra.mxu0 %v9408_v8  ;;  %6883 = vmatprep.subr.bf16.mxu1 %v9437_v41  ;;  %v9492_v8 = vld [vmem:[#allocation7 + $0x60] sm:$0xff]   ;;  %v9494_v41 = vld [vmem:[#allocation7 + $0x68] sm:$0xff]  }
 0x38b   :  { %6842 = vmatprep.subr.bf16.mxu0 %v9413_v47  ;;  %v9493_v47 = vld [vmem:[#allocation7 + $0x20] sm:$0xff]  }
 0x38c   :  { %6301 = vmatmul.mubr.bf16.vlgmr.msra.gmra.mrb[0].mxu1 %v9745_v15  ;;  %v9455_v15 = vld [vmem:[#allocation2 + $0x1b34] ss:$8 sps:$4 sm:$0xff]  }
 0x38d   :  { %6834 = vmatmul.mubr.bf16.vlgmr.msra.gmra.mrb[0].mxu0 %v1318_v31  ;;  %6884 = vmatpush1.bf16.msra.mxu1 %v9435_v49  ;;  %v9496_v31 = vld [vmem:[#allocation7 + $0x70] sm:$0xff]   ;;  %v9498_v49 = vld [vmem:[#allocation7 + $0x78] sm:$0xff]  }
 0x38e   :  { %6843 = vmatpush1.bf16.msra.mxu0 %v9411_v28  ;;  %6885 = vmatprep.subr.bf16.mxu1 %v9443_v50  ;;  %v9497_v28 = vld [vmem:[#allocation7 + $0x30] sm:$0xff]  }
 0x38f   :  { %6844 = vmatprep.subr.bf16.mxu0 %v9416_v52  ;;  %6915 = vmatprep.mubr.bf16.mxu1 %v9629_v3  ;;  %v9499_v52 = vld [vmem:[#allocation7 + $0x38] sm:$0xff]  }
 0x390   :  { %6874 = vmatprep.mubr.bf16.mxu0 %v1317_v55 }
 0x391   :  { %6886 = vmatpush1.bf16.msra.mxu1 %v9441_v36 }
 0x392   :  { %6845 = vmatpush1.bf16.msra.mxu0 %v9414_v30  ;;  %6887 = vmatprep.subr.bf16.mxu1 %v9449_v39 }
 0x393   :  { %6846 = vmatprep.subr.bf16.mxu0 %v9419_v57 }
 0x395   :  { %6888 = vmatpush1.bf16.msra.mxu1 %v9447_v5  ;;  %v964_v5 = vsub.s32 0, %v9716_v45 }
 0x396   :  { %6847 = vmatpush1.bf16.msra.mxu0 %v9417_v59  ;;  %6889 = vmatprep.subr.bf16.mxu1 %v9455_v15  ;;  %v968_v15 = vsub.s32 1, %v9716_v45  ;;  %v8001_v45 = vld [vmem:[#allocation8] ss:$0 sm:$0xff] }
 0x397   :  { %6848 = vmatprep.subr.bf16.mxu0 %v9422_v17  ;;  %v960_v17 = vld [vmem:[#allocation5] sm:$0x3] }
 0x399   :  { %6890 = vmatpush1.bf16.msra.mxu1 %v9453_v61  ;;  %v969_v61 = vrot.slane %v960_v17, %v968_v15 }
 0x39a   :  { %6849 = vmatpush1.bf16.msra.mxu0 %v9420_v60  ;;  %6891 = vmatprep.subr.bf16.mxu1 %v9461_v44  ;;  %v965_v60 = vrot.slane %v960_v17, %v964_v5 }
 0x39b   :  { %6850 = vmatprep.subr.bf16.mxu0 %v9425_v62 }
 0x39d   :  { %6892 = vmatpush1.bf16.msra.mxu1 %v9459_v1 }
 0x39e   :  { %6851 = vmatpush1.bf16.msra.mxu0 %v9423_v25  ;;  %6893 = vmatprep.subr.bf16.mxu1 %v9467_v48 }
 0x39f   :  { %6852 = vmatprep.subr.bf16.mxu0 %v9428_v4 }
 0x3a1   :  { %6894 = vmatpush1.bf16.msra.mxu1 %v9465_v6 }
 0x3a2   :  { %6853 = vmatpush1.bf16.msra.mxu0 %v9426_v14  ;;  %6895 = vmatprep.subr.bf16.mxu1 %v9473_v24 }
 0x3a3   :  { %6854 = vmatprep.subr.bf16.mxu0 %v9431_v7 }
 0x3a5   :  { %6896 = vmatpush1.bf16.msra.mxu1 %v9471_v9 }
 0x3a6   :  { %6855 = vmatpush1.bf16.msra.mxu0 %v9429_v38  ;;  %6897 = vmatprep.subr.bf16.mxu1 %v9479_v10 }
 0x3a7   :  { %6856 = vmatprep.subr.bf16.mxu0 %v9434_v58 }
 0x3a9   :  { %6898 = vmatpush1.bf16.msra.mxu1 %v9477_v16 }
 0x3aa   :  { %6857 = vmatpush1.bf16.msra.mxu0 %v9432_v11  ;;  %8018 = vmatprep.subr.bf16.mxu1 %v9484_v35 }
 0x3ab   :  { %6858 = vmatprep.subr.bf16.mxu0 %v9440_v54 }
 0x3ac   :  { %6916 = vmatmul.mubr.bf16.vlgmr.msra.gmra.mrb[4].mxu1 %v1319_v18 }
 0x3ad   :  { %8019 = vmatpush3.bf16.msra.mxu1 %v9485_v37 }
 0x3ae   :  { %6859 = vmatpush1.bf16.msra.mxu0 %v9438_v2  ;;  %8020 = vmatprep.subr.bf16.mxu1 %v9486_v19 }
 0x3af   :  { %6860 = vmatprep.subr.bf16.mxu0 %v9446_v0 }
 0x3b1   :  { %8021 = vmatpush3.bf16.msra.mxu1 %v9487_v42 }
 0x3b2   :  { %6861 = vmatpush1.bf16.msra.mxu0 %v9444_v20  ;;  %8022 = vmatprep.subr.bf16.mxu1 %v9488_v21 }
 0x3b3   :  { %6862 = vmatprep.subr.bf16.mxu0 %v9452_v22 }
 0x3b5   :  { %8023 = vmatpush3.bf16.msra.mxu1 %v9489_v43 }
 0x3b6   :  { %6863 = vmatpush1.bf16.msra.mxu0 %v9450_v51  ;;  %8024 = vmatprep.subr.bf16.mxu1 %v9490_v63 }
 0x3b7   :  { %6864 = vmatprep.subr.bf16.mxu0 %v9458_v23 }
 0x3b9   :  { %8025 = vmatpush3.bf16.msra.mxu1 %v9491_v46 }
 0x3ba   :  { %6865 = vmatpush1.bf16.msra.mxu0 %v9456_v26  ;;  %8026 = vmatprep.subr.bf16.mxu1 %v9492_v8 }
 0x3bb   :  { %6866 = vmatprep.subr.bf16.mxu0 %v9464_v27 }
 0x3bd   :  { %8027 = vmatpush3.bf16.msra.mxu1 %v9493_v47 }
 0x3be   :  { %6867 = vmatpush1.bf16.msra.mxu0 %v9462_v29  ;;  %8028 = vmatprep.subr.bf16.mxu1 %v9494_v41 }
 0x3bf   :  { %6868 = vmatprep.subr.bf16.mxu0 %v9470_v32 }
 0x3c1   :  { %8029 = vmatpush3.bf16.msra.mxu1 %v9495_v13 }
 0x3c2   :  { %6869 = vmatpush1.bf16.msra.mxu0 %v9468_v56  ;;  %8030 = vmatprep.subr.bf16.mxu1 %v9496_v31 }
 0x3c3   :  { %6870 = vmatprep.subr.bf16.mxu0 %v9476_v33 }
 0x3c5   :  { %8031 = vmatpush3.bf16.msra.mxu1 %v9497_v28 }
 0x3c6   :  { %6871 = vmatpush1.bf16.msra.mxu0 %v9474_v34  ;;  %8032 = vmatprep.subr.bf16.mxu1 %v9498_v49 }
 0x3c7   :  { %6872 = vmatprep.subr.bf16.mxu0 %v9482_v53 }
 0x3c9   :  { %8033 = vmatpush3.bf16.msra.mxu1 %v9499_v52 }
 0x3ca   :  { %6873 = vmatpush1.bf16.msra.mxu0 %v9480_v12 }
 0x3cd   :  { %6875 = vmatmul.mubr.bf16.vlgmr.msra.gmra.mrb[0].mxu0 %v1303_v40 }
 0x45f   :  { %v6302_v50 = vpop.f32.mrb[0].mxu1 }
 0x460   :  { %v6304_v55 = vpop.f32.mrb[1].mxu1  ;;  %v8040_v62 = vadd.f32 %v6302_v50, %v965_v60 }
 0x461   :  { %v6306_v30 = vpop.f32.mrb[2].mxu1  ;;  %v8043_v44 = vadd.f32 %v6304_v55, %v969_v61 }
 0x462   :  { %v6307_v36 = vpop.f32.mrb[3].mxu1 }
 0x47f   :  { %v6917_v57 = vpop.f32.mrb[4].mxu1 }
 0x480   :  { %v6919_v39 = vpop.f32.mrb[5].mxu1 }
 0x481   :  { %v6921_v3 = vpop.f32.mrb[6].mxu1 }
 0x482   :  { %v6922_v59 = vpop.f32.mrb[7].mxu1 }
 0x4a0   :  { %v6876_v25 = vpop.f32.mrb[0].mxu0 }
 0x4a1   :  { %v8041_v1 = vadd.f32 %v8040_v62, %v6876_v25  ;;  %v6878_v4 = vpop.f32.mrb[1].mxu0 }
 0x4a2   :  { %v8044_v48 = vadd.f32 %v8043_v44, %v6878_v4  ;;  %v6880_v14 = vpop.f32.mrb[2].mxu0 }
 0x4a3   :  { %v8042_v6 = vadd.f32 %v8041_v1, %v6917_v57  ;;  %v6881_v7 = vpop.f32.mrb[3].mxu0 }
 0x4a4   :  { %v8045_v24 = vadd.f32 %v8044_v48, %v6919_v39 }
 0x4a5   :  { %v6924_v38 = vmax.f32 %v8042_v6, 0.0 }
 0x4a6   :  { %v6925_v9 = vmax.f32 %v8045_v24, 0.0 }
 0x4a7   :  { %v6926_v10 = vpack.c.bf16 %v6924_v38, %v6924_v38 }
 0x4a8   :  { %v6927_v58 = vpack.c.bf16 %v6925_v9, %v6925_v9 }
 0x4aa   :  { %7095 = vmatprep.mubr.bf16.mxu1 %v6927_v58 }
 0x4ab   :  { %7096 = vmatmul.mubr.bf16.vlgmr.msra.gmra.mrb[8].mxu1 %v6926_v10 }
 0x57e   :  { %v8034_v40 = vpop.f32.mrb[8].mxu1 }
 0x57f   :  { %v8035_v11 = vpop.f32.mrb[9].mxu1 }
 0x580   :  { %v8036_v16 = vadd.f32 %v8035_v11, %v8034_v40  ;;  %v8037_v54 = vpop.f32.mrb[10].mxu1 }
 0x581   :  { %v8038_v18 = vpop.f32.mrb[11].mxu1 }
 0x582   :  { %v7098_v2 = vadd.f32 %v8036_v16, %v8001_v45 }
 0x584   :  { %7103 = vst [vmem:[#allocation10] sm:$0x3] %v7098_v2 }
 0x585   :  { %9601 = shalt.err (!%p9598_p8)
}
 0x586   :  { %s9602_s10 = scalar_lea.hbm %s10020_s5, 32 }
 0x587   :  { %p9603_p9 = scmp.ne.s32.totalorder %s10020_s5, %s9602_s10  ;;  %p9606_p10 = scmp.lt.u32.totalorder %s9602_s10, %s10020_s5 }
 0x589   :  { %p9608_p11 = pnand %p9606_p10, %p9603_p9 }
 0x58b   :  { %9611 = shalt.err (!%p9608_p11)
}
 0x58c   :  { %7113 = dma.vmem_to_hbm [thread:$0]  %s7111_s6, 32, %s10020_s5, [#allocation4]  }
 0x58d   :  { %9618 = dma.done.wait [#allocation4], 32  }
 0x58e   :  { %9619 = vsyncadd [#allocation4], 4294967264 }
 0x58f   :  { %7117 = vsyncpa [#allocation3], 1 }
 0x590   :  { %7118 = vsyncpa [#allocation6], 1 }
 0x591   :  { %7119 = vsyncpa [#allocation9], 1 }
 0x592   :  { %7120 = vsyncpa [#allocation4], 1 }

</bundles_post_ra>
